<compile_context>
chip_gen: v5e
topology: v5e:2x2
jax: 0.10.0
libtpu: 0.0.40
codegen_flags: <defaults>
</compile_context>

<pallas_src>
import jax
import jax.numpy as jnp
from jax.experimental import pallas as pl
from jax.experimental.pallas import tpu as pltpu


# ----------------------------- Pallas kernel ------------------------------ #
def vae_kernel(
    x_ref, eps_ref,                  # data: bf16 flattened input, f32 gaussian noise (padded latent)
    ew1_ref, eb1_ref,                # encoder hidden layer  (bf16 W, f32 b)
    wh_ref, bh_ref,                  # fused encoder heads: [hidden, 2*Lp], [1, 2*Lp]
    dw1_ref, db1_ref,                # decoder hidden layer  (bf16 W, f32 b)
    dw2_ref, db2_ref,                # decoder output layer  (bf16 W, f32 b)
    recon_ref, head_ref,             # outputs: sigmoid recon, [mean | log_std] (padded)
):
    x = x_ref[...]                                                   # bf16 (TB, D_in)

    # ---- encoder: x -> hidden -> [mean | log_std] (single fused head matmul) ----
    h = jnp.dot(x, ew1_ref[...], preferred_element_type=jnp.float32) + eb1_ref[...]
    h = jnp.maximum(h, 0.0)                                          # ReLU, f32

    head = (
        jnp.dot(h.astype(jnp.bfloat16), wh_ref[...], preferred_element_type=jnp.float32)
        + bh_ref[...]
    )                                                                # (TB, 2*Lp) f32
    lp = head.shape[-1] // 2
    mean = head[:, :lp]
    log_std = head[:, lp:]

    # ---- reparameterization: z = mean + eps * exp(log_std)  (f32) ----
    z = mean + eps_ref[...] * jnp.exp(log_std)

    # ---- decoder: z -> hidden -> sigmoid(recon) ----
    hd = (
        jnp.dot(z.astype(jnp.bfloat16), dw1_ref[...], preferred_element_type=jnp.float32)
        + db1_ref[...]
    )
    hd = jnp.maximum(hd, 0.0)                                        # ReLU, f32
    logits = (
        jnp.dot(hd.astype(jnp.bfloat16), dw2_ref[...], preferred_element_type=jnp.float32)
        + db2_ref[...]
    )

    recon_ref[...] = jax.nn.sigmoid(logits)                          # f32, lane-dense
    head_ref[...] = head                                             # f32, lane-dense


# ------------------------------- wrapper ----------------------------------- #
def vae_forward(x_nchw, eps, params, *, tb=128):
    """Fused VAE forward. x_nchw: [B, C, H, W] f32; eps: [B, LATENT] f32 noise."""
    B, C, H, W = x_nchw.shape
    D_in = C * H * W
    latent = eps.shape[1]
    lp = ((latent + 127) // 128) * 128          # latent padded to 128 lanes
    hidden = params["ew1"].shape[1]
    assert params["wh"].shape == (hidden, 2 * lp)

    # Flatten, cast matmul input to bf16, pad batch to a multiple of TB.
    x_flat = x_nchw.reshape(B, D_in).astype(jnp.bfloat16)
    n_blk = pl.cdiv(B, tb)
    B_pad = n_blk * tb
    x_p = jnp.pad(x_flat, ((0, B_pad - B), (0, 0)))
    eps_p = jnp.pad(eps.astype(jnp.float32), ((0, B_pad - B), (0, lp - latent)))

    data_map = lambda i: (i, 0)       # batch-tiled
    res_map = lambda i: (0, 0)        # VMEM-resident across grid steps

    grid_spec = pltpu.PrefetchScalarGridSpec(
        num_scalar_prefetch=0,
        grid=(n_blk,),
        in_specs=[
            pl.BlockSpec((tb, D_in), data_map),        # x
            pl.BlockSpec((tb, lp), data_map),          # eps
            pl.BlockSpec((D_in, hidden), res_map),     # ew1
            pl.BlockSpec((1, hidden), res_map),        # eb1
            pl.BlockSpec((hidden, 2 * lp), res_map),   # wh (fused heads)
            pl.BlockSpec((1, 2 * lp), res_map),        # bh
            pl.BlockSpec((lp, hidden), res_map),       # dw1
            pl.BlockSpec((1, hidden), res_map),        # db1
            pl.BlockSpec((hidden, D_in), res_map),     # dw2
            pl.BlockSpec((1, D_in), res_map),          # db2
        ],
        out_specs=(
            pl.BlockSpec((tb, D_in), data_map),        # recon (flat)
            pl.BlockSpec((tb, 2 * lp), data_map),      # [mean | log_std] (padded)
        ),
    )

    recon_flat, head = pl.pallas_call(
        vae_kernel,
        out_shape=(
            jax.ShapeDtypeStruct((B_pad, D_in), jnp.float32),
            jax.ShapeDtypeStruct((B_pad, 2 * lp), jnp.float32),
        ),
        grid_spec=grid_spec,
        compiler_params=pltpu.CompilerParams(
            dimension_semantics=("parallel",),
        ),
    )(
        x_p, eps_p,
        params["ew1"], params["eb1"],
        params["wh"], params["bh"],
        params["dw1"], params["db1"],
        params["dw2"], params["db2"],
    )

    recon = recon_flat[:B].reshape(B, C, H, W)
    mean = head[:B, :latent]
    log_std = head[:B, lp:lp + latent]
    return recon, mean, log_std


# ------------------------- deterministic params ---------------------------- #
def init_params(key, d_in, hidden, latent):
    """Builds MLP encoder/decoder params; fuses + pads the latent heads."""
    lp = ((latent + 127) // 128) * 128
    ks = jax.random.split(key, 5)
    scale = lambda fan_in: 1.0 / jnp.sqrt(jnp.float32(fan_in))

    wmu = jax.random.normal(ks[0], (hidden, latent), jnp.float32) * scale(hidden)
    wls = jax.random.normal(ks[1], (hidden, latent), jnp.float32) * scale(hidden)
    dw1 = jax.random.normal(ks[2], (latent, hidden), jnp.float32) * scale(latent)

    # Pad latent axes to 128 lanes with zeros (inert) and fuse the two heads.
    wmu_p = jnp.pad(wmu, ((0, 0), (0, lp - latent)))
    wls_p = jnp.pad(wls, ((0, 0), (0, lp - latent)))
    wh = jnp.concatenate([wmu_p, wls_p], axis=1)            # (hidden, 2*lp)
    bh = jnp.zeros((1, 2 * lp), jnp.float32)
    dw1_p = jnp.pad(dw1, ((0, lp - latent), (0, 0)))        # (lp, hidden)

    return {
        "ew1": (jax.random.normal(ks[3], (d_in, hidden), jnp.float32)
                * scale(d_in)).astype(jnp.bfloat16),
        "eb1": jnp.zeros((1, hidden), jnp.float32),
        "wh": wh.astype(jnp.bfloat16),
        "bh": bh,
        "dw1": dw1_p.astype(jnp.bfloat16),
        "db1": jnp.zeros((1, hidden), jnp.float32),
        "dw2": (jax.random.normal(ks[4], (hidden, d_in), jnp.float32)
                * scale(hidden)).astype(jnp.bfloat16),
        "db2": jnp.zeros((1, d_in), jnp.float32),
    }


if __name__ == "__main__":
    key = jax.random.PRNGKey(0)
    k_x, k_eps, k_p = jax.random.split(key, 3)

    B, C, H, W = 2, 4, 16, 16
    D_in = C * H * W        # 1024
    HIDDEN = 128
    LATENT = 32

    x = jax.random.normal(k_x, (B, C, H, W), jnp.float32)
    # torch.randn_like(log_std) equivalent: standard normal noise of shape [B, LATENT].
    eps = jax.random.normal(k_eps, (B, LATENT), jnp.float32)
    params = init_params(k_p, D_in, HIDDEN, LATENT)

    fwd = jax.jit(vae_forward)
    recon, mean, log_std = fwd(x, eps, params)
    jax.block_until_ready((recon, mean, log_std))

    assert recon.shape == (B, C, H, W)
    assert mean.shape == (B, LATENT)
    assert log_std.shape == (B, LATENT)
    assert bool(jnp.isfinite(recon).all())
    assert bool(jnp.isfinite(mean).all())
    assert bool(jnp.isfinite(log_std).all())
    # Sigmoid output must lie in (0, 1).
    assert bool((recon >= 0.0).all()) and bool((recon <= 1.0).all())

    print("KERNEL_OK")
</pallas_src>

<mosaic_0001>
module attributes {stable_mosaic.version = 11 : i64} {
  func.func @vae_kernel(%arg0: i32, %arg1: memref<128x1024xbf16, #tpu.memory_space<vmem>>, %arg2: memref<128x128xf32, #tpu.memory_space<vmem>>, %arg3: memref<1024x128xbf16, #tpu.memory_space<vmem>>, %arg4: memref<1x128xf32, #tpu.memory_space<vmem>>, %arg5: memref<128x256xbf16, #tpu.memory_space<vmem>>, %arg6: memref<1x256xf32, #tpu.memory_space<vmem>>, %arg7: memref<128x128xbf16, #tpu.memory_space<vmem>>, %arg8: memref<1x128xf32, #tpu.memory_space<vmem>>, %arg9: memref<128x1024xbf16, #tpu.memory_space<vmem>>, %arg10: memref<1x1024xf32, #tpu.memory_space<vmem>>, %arg11: memref<128x1024xf32, #tpu.memory_space<vmem>>, %arg12: memref<128x256xf32, #tpu.memory_space<vmem>>) attributes {dimension_semantics = [#tpu.dimension_semantics<parallel>], iteration_bounds = array<i64: 1>, scalar_prefetch = 0 : i64, scratch_operands = 0 : i64, tpu.core_type = #tpu.core_type<tc>, window_params = [{transform_indices = @transform_0, window_bounds = array<i64: 128, 1024>}, {transform_indices = @transform_1, window_bounds = array<i64: 128, 128>}, {pipeline_mode = #tpu.pipeline_mode<synchronous>, transform_indices = @transform_2, window_bounds = array<i64: 1024, 128>}, {pipeline_mode = #tpu.pipeline_mode<synchronous>, transform_indices = @transform_3, window_bounds = array<i64: 1, 128>}, {pipeline_mode = #tpu.pipeline_mode<synchronous>, transform_indices = @transform_4, window_bounds = array<i64: 128, 256>}, {pipeline_mode = #tpu.pipeline_mode<synchronous>, transform_indices = @transform_5, window_bounds = array<i64: 1, 256>}, {pipeline_mode = #tpu.pipeline_mode<synchronous>, transform_indices = @transform_6, window_bounds = array<i64: 128, 128>}, {pipeline_mode = #tpu.pipeline_mode<synchronous>, transform_indices = @transform_7, window_bounds = array<i64: 1, 128>}, {pipeline_mode = #tpu.pipeline_mode<synchronous>, transform_indices = @transform_8, window_bounds = array<i64: 128, 1024>}, {pipeline_mode = #tpu.pipeline_mode<synchronous>, transform_indices = @transform_9, window_bounds = array<i64: 1, 1024>}, {transform_indices = @transform_10, window_bounds = array<i64: 128, 1024>}, {transform_indices = @transform_11, window_bounds = array<i64: 128, 256>}]} {
    %c0 = arith.constant 0 : index
    %c0_0 = arith.constant 0 : index
    %0 = vector.load %arg1[%c0, %c0_0] : memref<128x1024xbf16, #tpu.memory_space<vmem>>, vector<128x1024xbf16>
    %c0_1 = arith.constant 0 : index
    %c0_2 = arith.constant 0 : index
    %1 = vector.load %arg3[%c0_1, %c0_2] : memref<1024x128xbf16, #tpu.memory_space<vmem>>, vector<1024x128xbf16>
    %cst = arith.constant dense<0.000000e+00> : vector<128x128xf32>
    %2 = tpu.matmul %0, %1, %cst {dimension_numbers = #tpu.dot_dimension_numbers<[1], [0], [0], [1], [0, 0, 1, 1], [], []>} : vector<128x1024xbf16>, vector<1024x128xbf16>, vector<128x128xf32> -> vector<128x128xf32>
    %c0_3 = arith.constant 0 : index
    %c0_4 = arith.constant 0 : index
    %3 = vector.load %arg4[%c0_3, %c0_4] : memref<1x128xf32, #tpu.memory_space<vmem>>, vector<1x128xf32>
    %4 = vector.broadcast %3 : vector<1x128xf32> to vector<128x128xf32>
    %5 = arith.addf %2, %4 : vector<128x128xf32>
    %cst_5 = arith.constant 0.000000e+00 : f32
    %6 = vector.broadcast %cst_5 : f32 to vector<128x128xf32>
    %7 = arith.maximumf %5, %6 : vector<128x128xf32>
    %8 = arith.truncf %7 : vector<128x128xf32> to vector<128x128xbf16>
    %c0_6 = arith.constant 0 : index
    %c0_7 = arith.constant 0 : index
    %9 = vector.load %arg5[%c0_6, %c0_7] : memref<128x256xbf16, #tpu.memory_space<vmem>>, vector<128x256xbf16>
    %cst_8 = arith.constant dense<0.000000e+00> : vector<128x256xf32>
    %10 = tpu.matmul %8, %9, %cst_8 {dimension_numbers = #tpu.dot_dimension_numbers<[1], [0], [0], [1], [0, 0, 1, 1], [], []>} : vector<128x128xbf16>, vector<128x256xbf16>, vector<128x256xf32> -> vector<128x256xf32>
    %c0_9 = arith.constant 0 : index
    %c0_10 = arith.constant 0 : index
    %11 = vector.load %arg6[%c0_9, %c0_10] : memref<1x256xf32, #tpu.memory_space<vmem>>, vector<1x256xf32>
    %12 = vector.broadcast %11 : vector<1x256xf32> to vector<128x256xf32>
    %13 = arith.addf %10, %12 : vector<128x256xf32>
    %14 = vector.extract_strided_slice %13 {offsets = [0, 0], sizes = [128, 128], strides = [1, 1]} : vector<128x256xf32> to vector<128x128xf32>
    %15 = vector.extract_strided_slice %13 {offsets = [0, 128], sizes = [128, 128], strides = [1, 1]} : vector<128x256xf32> to vector<128x128xf32>
    %c0_11 = arith.constant 0 : index
    %c0_12 = arith.constant 0 : index
    %16 = vector.load %arg2[%c0_11, %c0_12] : memref<128x128xf32, #tpu.memory_space<vmem>>, vector<128x128xf32>
    %17 = math.exp %15 : vector<128x128xf32>
    %18 = arith.mulf %16, %17 : vector<128x128xf32>
    %19 = arith.addf %14, %18 : vector<128x128xf32>
    %20 = arith.truncf %19 : vector<128x128xf32> to vector<128x128xbf16>
    %c0_13 = arith.constant 0 : index
    %c0_14 = arith.constant 0 : index
    %21 = vector.load %arg7[%c0_13, %c0_14] : memref<128x128xbf16, #tpu.memory_space<vmem>>, vector<128x128xbf16>
    %cst_15 = arith.constant dense<0.000000e+00> : vector<128x128xf32>
    %22 = tpu.matmul %20, %21, %cst_15 {dimension_numbers = #tpu.dot_dimension_numbers<[1], [0], [0], [1], [0, 0, 1, 1], [], []>} : vector<128x128xbf16>, vector<128x128xbf16>, vector<128x128xf32> -> vector<128x128xf32>
    %c0_16 = arith.constant 0 : index
    %c0_17 = arith.constant 0 : index
    %23 = vector.load %arg8[%c0_16, %c0_17] : memref<1x128xf32, #tpu.memory_space<vmem>>, vector<1x128xf32>
    %24 = vector.broadcast %23 : vector<1x128xf32> to vector<128x128xf32>
    %25 = arith.addf %22, %24 : vector<128x128xf32>
    %cst_18 = arith.constant 0.000000e+00 : f32
    %26 = vector.broadcast %cst_18 : f32 to vector<128x128xf32>
    %27 = arith.maximumf %25, %26 : vector<128x128xf32>
    %28 = arith.truncf %27 : vector<128x128xf32> to vector<128x128xbf16>
    %c0_19 = arith.constant 0 : index
    %c0_20 = arith.constant 0 : index
    %29 = vector.load %arg9[%c0_19, %c0_20] : memref<128x1024xbf16, #tpu.memory_space<vmem>>, vector<128x1024xbf16>
    %cst_21 = arith.constant dense<0.000000e+00> : vector<128x1024xf32>
    %30 = tpu.matmul %28, %29, %cst_21 {dimension_numbers = #tpu.dot_dimension_numbers<[1], [0], [0], [1], [0, 0, 1, 1], [], []>} : vector<128x128xbf16>, vector<128x1024xbf16>, vector<128x1024xf32> -> vector<128x1024xf32>
    %c0_22 = arith.constant 0 : index
    %c0_23 = arith.constant 0 : index
    %31 = vector.load %arg10[%c0_22, %c0_23] : memref<1x1024xf32, #tpu.memory_space<vmem>>, vector<1x1024xf32>
    %32 = vector.broadcast %31 : vector<1x1024xf32> to vector<128x1024xf32>
    %33 = arith.addf %30, %32 : vector<128x1024xf32>
    %34 = arith.negf %33 : vector<128x1024xf32>
    %35 = math.exp %34 : vector<128x1024xf32>
    %cst_24 = arith.constant 1.000000e+00 : f32
    %36 = vector.broadcast %cst_24 : f32 to vector<128x1024xf32>
    %37 = arith.addf %36, %35 : vector<128x1024xf32>
    %38 = arith.divf %36, %37 : vector<128x1024xf32>
    %c0_25 = arith.constant 0 : index
    %c0_26 = arith.constant 0 : index
    %39 = vector.load %arg11[%c0_25, %c0_26] : memref<128x1024xf32, #tpu.memory_space<vmem>>, vector<128x1024xf32>
    tpu.vector_store %arg11[%c0_25, %c0_26], %38 {strides = array<i32>} : memref<128x1024xf32, #tpu.memory_space<vmem>>, vector<128x1024xf32>,
    %c0_27 = arith.constant 0 : index
    %c0_28 = arith.constant 0 : index
    %40 = vector.load %arg12[%c0_27, %c0_28] : memref<128x256xf32, #tpu.memory_space<vmem>>, vector<128x256xf32>
    tpu.vector_store %arg12[%c0_27, %c0_28], %13 {strides = array<i32>} : memref<128x256xf32, #tpu.memory_space<vmem>>, vector<128x256xf32>,
    return
  }
  func.func @transform_0(%arg0: i32) -> (i32, i32) {
    %c0_i32 = arith.constant 0 : i32
    %c0_i32_0 = arith.constant 0 : i32
    return %arg0, %c0_i32 : i32, i32
  }
  func.func @transform_1(%arg0: i32) -> (i32, i32) {
    %c0_i32 = arith.constant 0 : i32
    %c0_i32_0 = arith.constant 0 : i32
    return %arg0, %c0_i32 : i32, i32
  }
  func.func @transform_2(%arg0: i32) -> (i32, i32) {
    %c0_i32 = arith.constant 0 : i32
    %c0_i32_0 = arith.constant 0 : i32
    %c0_i32_1 = arith.constant 0 : i32
    return %c0_i32, %c0_i32_0 : i32, i32
  }
  func.func @transform_3(%arg0: i32) -> (i32, i32) {
    %c0_i32 = arith.constant 0 : i32
    %c0_i32_0 = arith.constant 0 : i32
    %c0_i32_1 = arith.constant 0 : i32
    return %c0_i32, %c0_i32_0 : i32, i32
  }
  func.func @transform_4(%arg0: i32) -> (i32, i32) {
    %c0_i32 = arith.constant 0 : i32
    %c0_i32_0 = arith.constant 0 : i32
    %c0_i32_1 = arith.constant 0 : i32
    return %c0_i32, %c0_i32_0 : i32, i32
  }
  func.func @transform_5(%arg0: i32) -> (i32, i32) {
    %c0_i32 = arith.constant 0 : i32
    %c0_i32_0 = arith.constant 0 : i32
    %c0_i32_1 = arith.constant 0 : i32
    return %c0_i32, %c0_i32_0 : i32, i32
  }
  func.func @transform_6(%arg0: i32) -> (i32, i32) {
    %c0_i32 = arith.constant 0 : i32
    %c0_i32_0 = arith.constant 0 : i32
    %c0_i32_1 = arith.constant 0 : i32
    return %c0_i32, %c0_i32_0 : i32, i32
  }
  func.func @transform_7(%arg0: i32) -> (i32, i32) {
    %c0_i32 = arith.constant 0 : i32
    %c0_i32_0 = arith.constant 0 : i32
    %c0_i32_1 = arith.constant 0 : i32
    return %c0_i32, %c0_i32_0 : i32, i32
  }
  func.func @transform_8(%arg0: i32) -> (i32, i32) {
    %c0_i32 = arith.constant 0 : i32
    %c0_i32_0 = arith.constant 0 : i32
    %c0_i32_1 = arith.constant 0 : i32
    return %c0_i32, %c0_i32_0 : i32, i32
  }
  func.func @transform_9(%arg0: i32) -> (i32, i32) {
    %c0_i32 = arith.constant 0 : i32
    %c0_i32_0 = arith.constant 0 : i32
    %c0_i32_1 = arith.constant 0 : i32
    return %c0_i32, %c0_i32_0 : i32, i32
  }
  func.func @transform_10(%arg0: i32) -> (i32, i32) {
    %c0_i32 = arith.constant 0 : i32
    %c0_i32_0 = arith.constant 0 : i32
    return %arg0, %c0_i32 : i32, i32
  }
  func.func @transform_11(%arg0: i32) -> (i32, i32) {
    %c0_i32 = arith.constant 0 : i32
    %c0_i32_0 = arith.constant 0 : i32
    return %arg0, %c0_i32 : i32, i32
  }
}

</mosaic_0001>

<bundles_post_ra>
// kernel: vae_forward.1
= control target key start
LH: loop header
LB: loop body
LE: loop exit
PB: predicated region body
PF: predicated region fallthrough
CT: control target
= control target key end

     0   :  { %17 = vsyncpa [#allocation3], 0  ;;  %s7001_s20 = smov [#allocation2]   ;;  %s7002_s22 = smov 512   ;;  %s10630_s0 = inlined_call_operand.vmem [shape: bf16[128,1024], index: 0, kind: input, shape index: {}]   ;;  %s10631_s1 = inlined_call_operand.vmem [shape: f32[128,128], index: 1, kind: input, shape index: {}]   ;;  %s10632_s2 = inlined_call_operand.vmem [shape: bf16[1024,128], index: 2, kind: input, shape index: {}]   ;;  %s10633_s3 = inlined_call_operand.vmem [shape: f32[1,128], index: 3, kind: input, shape index: {}]   ;;  %s10634_s4 = inlined_call_operand.vmem [shape: bf16[128,256], index: 4, kind: input, shape index: {}]   ;;  %s10635_s5 = inlined_call_operand.vmem [shape: f32[1,256], index: 5, kind: input, shape index: {}]   ;;  %s10636_s6 = inlined_call_operand.vmem [shape: bf16[128,128], index: 6, kind: input, shape index: {}]   ;;  %s10637_s7 = inlined_call_operand.vmem [shape: f32[1,128], index: 7, kind: input, shape index: {}]   ;;  %s10638_s8 = inlined_call_operand.hbm [shape: bf16[128,1024], index: 8, kind: input, shape index: {}]   ;;  %s10639_s9 = inlined_call_operand.vmem [shape: f32[1,1024], index: 9, kind: input, shape index: {}]   ;;  %s10640_s10 = inlined_call_operand.vmem [shape: f32[128,1024], index: 10, kind: output, shape index: {0}]   ;;  %s10641_s11 = inlined_call_operand.vmem [shape: f32[128,256], index: 11, kind: output, shape index: {1}]  }
   0x1   :  { %s38_s19 = sshll.u32 %s10638_s8, 4  ;;  %s40_s21 = sshll.u32 %s7001_s20, 4  ;;  %s39_s19 = int_to_ptr.hbm [resolvable:$true] %s38_s19  ;;  %s41_s21 = int_to_ptr.vmem [resolvable:$true] %s40_s21 }
   0x2   :  { %s7003_s23 = smov 32  }
   0x3   :  { %46 = dma.hbm_to_vmem [thread:$0]  %s39_s19, 8192, %s41_s21, [#allocation3], %s7002_s22, %s7002_s22, %s7003_s23  }
   0x4   :  { %6999 = dma.done.wait [#allocation3], 8192  }
   0x5   :  { %7000 = vsyncadd [#allocation3], 4294959104  ;;  %v6256_v0 = vld [vmem:[%s10632_s2 + $0x38] sm:$0xff]  ;;  %v6255_v3 = vld [vmem:[%s10632_s2 + $0x30] sm:$0xff] }
   0x6   :  { %v7073_v1 = vld [vmem:[%s10632_s2 + $0xb8] sm:$0xff]  ;;  %6401 = vmatpush.bf16.msra.mxu3 %v6256_v0  ;;  %v7087_v4 = vld [vmem:[%s10632_s2 + $0xb0] sm:$0xff]  ;;  %953 = vmatpush.bf16.msra.mxu0 %v6256_v0  ;;  %v6254_v6 = vld [vmem:[%s10632_s2 + $0x28] sm:$0xff] }
   0x7   :  { %v7078_v2 = vld [vmem:[%s10632_s2 + $0x78] sm:$0xff]  ;;  %6417 = vmatpush.bf16.msra.mxu2 %v7073_v1  ;;  %v7093_v5 = vld [vmem:[%s10632_s2 + $0x70] sm:$0xff]  ;;  %v7102_v7 = vld [vmem:[%s10632_s2 + $0xa8] sm:$0xff] }
   0x8   :  { %6409 = vmatpush.bf16.msra.mxu1 %v7078_v2  ;;  %v7108_v8 = vld [vmem:[%s10632_s2 + $0x68] sm:$0xff]  ;;  %v6253_v9 = vld [vmem:[%s10632_s2 + $0x20] sm:$0xff]  ;;  %v6252_v12 = vld [vmem:[%s10632_s2 + $0x18] sm:$0xff] }
   0x9   :  { %v7117_v10 = vld [vmem:[%s10632_s2 + $0xa0] sm:$0xff]  ;;  %v7132_v13 = vld [vmem:[%s10632_s2 + $0x98] sm:$0xff]  ;;  %v6251_v15 = vld [vmem:[%s10632_s2 + $0x10] sm:$0xff] }
   0xa   :  { %6402 = vmatpush.bf16.msra.mxu3 %v6255_v3  ;;  %954 = vmatpush.bf16.msra.mxu0 %v6255_v3  ;;  %v7123_v11 = vld [vmem:[%s10632_s2 + $0x60] sm:$0xff]  ;;  %v7138_v14 = vld [vmem:[%s10632_s2 + $0x58] sm:$0xff]  ;;  %v7147_v16 = vld [vmem:[%s10632_s2 + $0x90] sm:$0xff] }
   0xb   :  { %6418 = vmatpush.bf16.msra.mxu2 %v7087_v4  ;;  %v7153_v17 = vld [vmem:[%s10632_s2 + $0x50] sm:$0xff]  ;;  %v6250_v18 = vld [vmem:[%s10632_s2 + $0x8] sm:$0xff]  ;;  %v6249_v21 = vld [vmem:[%s10632_s2] sm:$0xff] }
   0xc   :  { %6410 = vmatpush.bf16.msra.mxu1 %v7093_v5  ;;  %v7162_v19 = vld [vmem:[%s10632_s2 + $0x88] sm:$0xff]  ;;  %v5259_v22 = vld [vmem:[%s10630_s0 + $0x80] sm:$0xf]  ;;  %v6280_v27 = vld [vmem:[%s10632_s2 + $0xf8] sm:$0xff] }
   0xd   :  { %v6258_v20 = vld [vmem:[%s10632_s2 + $0x48] sm:$0xff]  ;;  %v6205_v23 = vld [vmem:[%s10630_s0 + $0x9c] sm:$0xf0]  ;;  %v6201_v31 = vld [vmem:[%s10630_s0 + $0x84] sm:$0xf] }
   0xe   :  { %6403 = vmatpush.bf16.msra.mxu3 %v6254_v6  ;;  %955 = vmatpush.bf16.msra.mxu0 %v6254_v6  ;;  %v7181_v24 = vld [vmem:[%s10632_s2 + $0x80] sm:$0xff]  ;;  %v5267_v25 = vld [vmem:[%s10630_s0 + $0x88] sm:$0xf]  ;;  %v5260_v33 = vor.u32 %v6205_v23, %v5259_v22  ;;  %v6279_v37 = vld [vmem:[%s10632_s2 + $0xf0] sm:$0xff] }
   0xf   :  { %6419 = vmatpush.bf16.msra.mxu2 %v7102_v7  ;;  %v6206_v26 = vld [vmem:[%s10630_s0 + $0xa4] sm:$0xf0]  ;;  %v5195_v28 = vld [vmem:[%s10630_s0] sm:$0xf]  ;;  %v5261_v32 = vld [vmem:[%s10630_s0 + $0xa0] sm:$0xf0] }
  0x10   :  { %6411 = vmatpush.bf16.msra.mxu1 %v7108_v8  ;;  %v6189_v29 = vld [vmem:[%s10630_s0 + $0x1c] sm:$0xf0]  ;;  %v5268_v34 = vor.u32 %v6206_v26, %v5267_v25  ;;  %v5264_v36 = vor.u32 %v6201_v31, %v5261_v32  ;;  %v6278_v38 = vld [vmem:[%s10632_s2 + $0xe8] sm:$0xff]  ;;  %v6209_v46 = vld [vmem:[%s10630_s0 + $0xc4] sm:$0xf] }
  0x11   :  { %v6257_v30 = vld [vmem:[%s10632_s2 + $0x40] sm:$0xff]  ;;  %v5196_v35 = vor.u32 %v6189_v29, %v5195_v28  ;;  %v5299_v42 = vld [vmem:[%s10630_s0 + $0xc8] sm:$0xf]  ;;  %v6276_v52 = vld [vmem:[%s10632_s2 + $0xd8] sm:$0xff] }
  0x12   :  { %6404 = vmatpush.bf16.msra.mxu3 %v6253_v9  ;;  %956 = vmatpush.bf16.msra.mxu0 %v6253_v9  ;;  %v6277_v39 = vld [vmem:[%s10632_s2 + $0xe0] sm:$0xff]  ;;  %v6214_v43 = vld [vmem:[%s10630_s0 + $0xe4] sm:$0xf0]  ;;  %v6275_v53 = vld [vmem:[%s10632_s2 + $0xd0] sm:$0xff] }
  0x13   :  { %6420 = vmatpush.bf16.msra.mxu2 %v7117_v10  ;;  %v5291_v40 = vld [vmem:[%s10630_s0 + $0xc0] sm:$0xf]  ;;  %v5293_v47 = vld [vmem:[%s10630_s0 + $0xe0] sm:$0xf0]  ;;  %v5300_v49 = vor.u32 %v6214_v43, %v5299_v42  ;;  %v5331_v56 = vld [vmem:[%s10630_s0 + $0x108] sm:$0xf] }
  0x14   :  { %6412 = vmatpush.bf16.msra.mxu1 %v7123_v11  ;;  %v6213_v41 = vld [vmem:[%s10630_s0 + $0xdc] sm:$0xf0]  ;;  %v5296_v51 = vor.u32 %v6209_v46, %v5293_v47  ;;  %v6222_v57 = vld [vmem:[%s10630_s0 + $0x124] sm:$0xf0]  ;;  %v6185_v58 = vld [vmem:[%s10630_s0 + $0x4] sm:$0xf] }
  0x15   :  { %v5227_v44 = vld [vmem:[%s10630_s0 + $0x40] sm:$0xf]  ;;  %v5292_v48 = vor.u32 %v6213_v41, %v5291_v40  ;;  %v5197_v59 = vld [vmem:[%s10630_s0 + $0x20] sm:$0xf0]  ;;  %v5332_v63 = vor.u32 %v6222_v57, %v5331_v56  ;;  %v6304_v3 = vld [vmem:[%s10632_s2 + $0x1b8] sm:$0xff] }
  0x16   :  { %6405 = vmatpush.bf16.msra.mxu3 %v6252_v12  ;;  %957 = vmatpush.bf16.msra.mxu0 %v6252_v12  ;;  %v6197_v45 = vld [vmem:[%s10630_s0 + $0x5c] sm:$0xf0]  ;;  %v6217_v60 = vld [vmem:[%s10630_s0 + $0x104] sm:$0xf]  ;;  %v5200_v0 = vor.u32 %v6185_v58, %v5197_v59  ;;  %v6303_v6 = vld [vmem:[%s10632_s2 + $0x1b0] sm:$0xff] }
  0x17   :  { %6421 = vmatpush.bf16.msra.mxu2 %v7132_v13  ;;  %v5228_v50 = vor.u32 %v6197_v45, %v5227_v44  ;;  %v5323_v54 = vld [vmem:[%s10630_s0 + $0x100] sm:$0xf]  ;;  %v5325_v61 = vld [vmem:[%s10630_s0 + $0x120] sm:$0xf0]  ;;  %v5363_v12 = vld [vmem:[%s10630_s0 + $0x148] sm:$0xf] }
  0x18   :  { %6413 = vmatpush.bf16.msra.mxu1 %v7138_v14  ;;  %v6221_v55 = vld [vmem:[%s10630_s0 + $0x11c] sm:$0xf0]  ;;  %v6294_v23 = vld [vmem:[%s10632_s2 + $0x168] sm:$0xff]  ;;  %v6288_v28 = vld [vmem:[%s10632_s2 + $0x138] sm:$0xff] }
  0x19   :  { %v5324_v62 = vor.u32 %v6221_v55, %v5323_v54  ;;  %v5355_v9 = vld [vmem:[%s10630_s0 + $0x140] sm:$0xf]  ;;  %v5395_v31 = vld [vmem:[%s10630_s0 + $0x188] sm:$0xf]  ;;  %v6312_v44 = vld [vmem:[%s10632_s2 + $0x1f8] sm:$0xff] }
  0x1a   :  { %6406 = vmatpush.bf16.msra.mxu3 %v6251_v15  ;;  %958 = vmatpush.bf16.msra.mxu0 %v6251_v15  ;;  %v5229_v15 = vld [vmem:[%s10630_s0 + $0x60] sm:$0xf0]  ;;  %v5387_v29 = vld [vmem:[%s10630_s0 + $0x180] sm:$0xf]  ;;  %v6238_v32 = vld [vmem:[%s10630_s0 + $0x1a4] sm:$0xf0] }
  0x1b   :  { %6422 = vmatpush.bf16.msra.mxu2 %v7147_v16  ;;  %v6301_v25 = vld [vmem:[%s10632_s2 + $0x1a0] sm:$0xff]  ;;  %v6298_v41 = vld [vmem:[%s10632_s2 + $0x188] sm:$0xff]  ;;  %v6283_v58 = vld [vmem:[%s10632_s2 + $0x110] sm:$0xff] }
  0x1c   :  { %6414 = vmatpush.bf16.msra.mxu1 %v7153_v17  ;;  %v6273_v26 = vld [vmem:[%s10632_s2 + $0xc0] sm:$0xff]  ;;  %v6286_v43 = vld [vmem:[%s10632_s2 + $0x128] sm:$0xff] }
  0x1d   :  { %v6290_v45 = vld [vmem:[%s10632_s2 + $0x148] sm:$0xff]  ;;  %v6297_v46 = vld [vmem:[%s10632_s2 + $0x180] sm:$0xff] }
  0x1e   :  { %6407 = vmatpush.bf16.msra.mxu3 %v6250_v18  ;;  %959 = vmatpush.bf16.msra.mxu0 %v6250_v18  ;;  %v5357_v18 = vld [vmem:[%s10630_s0 + $0x160] sm:$0xf0]  ;;  %v5235_v54 = vld [vmem:[%s10630_s0 + $0x48] sm:$0xf] }
  0x1f   :  { %6423 = vmatpush.bf16.msra.mxu2 %v7162_v19  ;;  %v6285_v47 = vld [vmem:[%s10632_s2 + $0x120] sm:$0xff]  ;;  %v6198_v55 = vld [vmem:[%s10630_s0 + $0x64] sm:$0xf0] }
  0x20   :  { %6415 = vmatpush.bf16.msra.mxu1 %v6258_v20  ;;  %v6241_v56 = vld [vmem:[%s10630_s0 + $0x1c4] sm:$0xf] }
  0x21   :  { %v5421_v57 = vld [vmem:[%s10630_s0 + $0x1e0] sm:$0xf0] }
  0x22   :  { %6408 = vmatpush.bf16.msra.mxu3 %v6249_v21  ;;  %960 = vmatpush.bf16.msra.mxu0 %v6249_v21 }
  0x23   :  { %6424 = vmatpush.bf16.msra.mxu2 %v7181_v24 }
  0x24   :  { %6416 = vmatpush.bf16.msra.mxu1 %v6257_v30 }
  0x25   :  { %971 = vmatmul.bf16.vlgmr.msra.gmra.mxu3 %v5260_v33  ;;  %961 = vmatmul.bf16.vlgmr.msra.gmra.mxu0 %v5196_v35  ;;  %v6233_v33 = vld [vmem:[%s10630_s0 + $0x184] sm:$0xf]  ;;  %v6190_v35 = vld [vmem:[%s10630_s0 + $0x24] sm:$0xf0] }
  0x26   :  { %1100 = vmatpush.bf16.msrb.mxu3 %v6280_v27  ;;  %1002 = vmatpush.bf16.msrb.mxu0 %v7078_v2  ;;  %v5328_v2 = vor.u32 %v6217_v60, %v5325_v61  ;;  %v6300_v27 = vld [vmem:[%s10632_s2 + $0x198] sm:$0xff]  ;;  %v5236_v61 = vor.u32 %v6198_v55, %v5235_v54  ;;  %v5307_v55 = vld [vmem:[%s10630_s0 + $0xd0] sm:$0xf] }
  0x27   :  { %1069 = vmatmul.bf16.vlgmr.msra.gmra.mxu2 %v5268_v34  ;;  %1020 = vmatmul.bf16.vlgmr.msra.gmra.mxu1 %v5264_v36  ;;  %v5203_v34 = vld [vmem:[%s10630_s0 + $0x8] sm:$0xf]  ;;  %v5389_v36 = vld [vmem:[%s10630_s0 + $0x1a0] sm:$0xf0]  ;;  %v6216_v54 = vld [vmem:[%s10630_s0 + $0xf4] sm:$0xf0] }
  0x28   :  { %1247 = vmatpush.bf16.msrb.mxu2 %v6304_v3  ;;  %v5204_v40 = vor.u32 %v6190_v35, %v5203_v34  ;;  %v5392_v42 = vor.u32 %v6233_v33, %v5389_v36  ;;  %v6186_v3 = vld [vmem:[%s10630_s0 + $0xc] sm:$0xf]  ;;  %v5275_v33 = vld [vmem:[%s10630_s0 + $0x90] sm:$0xf]  ;;  %v6203_v35 = vld [vmem:[%s10630_s0 + $0x94] sm:$0xf] }
  0x29   :  { %v6207_v34 = vld [vmem:[%s10630_s0 + $0xac] sm:$0xf0]  ;;  %v5277_v36 = vld [vmem:[%s10630_s0 + $0xb0] sm:$0xf0] }
  0x2a   :  { %1101 = vmatpush.bf16.msrb.mxu3 %v6279_v37  ;;  %1003 = vmatpush.bf16.msrb.mxu0 %v7093_v5  ;;  %v6274_v5 = vld [vmem:[%s10632_s2 + $0xc8] sm:$0xff]  ;;  %v6291_v37 = vld [vmem:[%s10632_s2 + $0x150] sm:$0xff] }
  0x2c   :  { %1248 = vmatpush.bf16.msrb.mxu2 %v6303_v6  ;;  %v6192_v6 = vld [vmem:[%s10630_s0 + $0x34] sm:$0xf0] }
  0x2e   :  { %1102 = vmatpush.bf16.msrb.mxu3 %v6278_v38  ;;  %1004 = vmatpush.bf16.msrb.mxu0 %v7108_v8  ;;  %v6295_v8 = vld [vmem:[%s10632_s2 + $0x170] sm:$0xff] }
  0x32   :  { %1103 = vmatpush.bf16.msrb.mxu3 %v6277_v39  ;;  %1005 = vmatpush.bf16.msrb.mxu0 %v7123_v11  ;;  %v6229_v11 = vld [vmem:[%s10630_s0 + $0x15c] sm:$0xf0]  ;;  %v5396_v39 = vor.u32 %v6238_v32, %v5395_v31  ;;  %v5283_v31 = vld [vmem:[%s10630_s0 + $0x98] sm:$0xf] }
  0x33   :  { %v6208_v32 = vld [vmem:[%s10630_s0 + $0xb4] sm:$0xf0] }
  0x35   :  { %976 = vmatmul.bf16.gmra.mxu3 %v5292_v48  ;;  %966 = vmatmul.bf16.gmra.mxu0 %v5228_v50  ;;  %v6289_v48 = vld [vmem:[%s10632_s2 + $0x140] sm:$0xff] }
  0x36   :  { %1006 = vmatpush.bf16.msrb.mxu0 %v7138_v14  ;;  %1104 = vmatpush.bf16.msrb.mxu3 %v6276_v52  ;;  %v6193_v14 = vld [vmem:[%s10630_s0 + $0x44] sm:$0xf]  ;;  %v5419_v50 = vld [vmem:[%s10630_s0 + $0x1c0] sm:$0xf]  ;;  %v5427_v52 = vld [vmem:[%s10630_s0 + $0x1c8] sm:$0xf] }
  0x37   :  { %1074 = vmatmul.bf16.gmra.mxu2 %v5300_v49  ;;  %1025 = vmatmul.bf16.gmra.mxu1 %v5296_v51  ;;  %v6284_v49 = vld [vmem:[%s10632_s2 + $0x118] sm:$0xff]  ;;  %v6245_v51 = vld [vmem:[%s10630_s0 + $0x1dc] sm:$0xf0] }
  0x38   :  { %v5420_v59 = vor.u32 %v6245_v51, %v5419_v50  ;;  %v6210_v51 = vld [vmem:[%s10630_s0 + $0xcc] sm:$0xf] }
  0x3a   :  { %1007 = vmatpush.bf16.msrb.mxu0 %v7153_v17  ;;  %1105 = vmatpush.bf16.msrb.mxu3 %v6275_v53  ;;  %v6225_v17 = vld [vmem:[%s10630_s0 + $0x144] sm:$0xf]  ;;  %v6246_v53 = vld [vmem:[%s10630_s0 + $0x1e4] sm:$0xf0] }
  0x3b   :  { %v5360_v22 = vor.u32 %v6225_v17, %v5357_v18  ;;  %v5428_v60 = vor.u32 %v6246_v53, %v5427_v52  ;;  %v6310_v17 = vld [vmem:[%s10632_s2 + $0x1e8] sm:$0xff]  ;;  %v5315_v53 = vld [vmem:[%s10630_s0 + $0xd8] sm:$0xf] }
  0x3c   :  { %v6194_v18 = vld [vmem:[%s10630_s0 + $0x4c] sm:$0xf] }
  0x3d   :  { %v5301_v52 = vld [vmem:[%s10630_s0 + $0xe8] sm:$0xf0] }
  0x3e   :  { %1008 = vmatpush.bf16.msrb.mxu0 %v6258_v20  ;;  %1106 = vmatpush.bf16.msrb.mxu3 %v6274_v5  ;;  %v5356_v20 = vor.u32 %v6229_v11, %v5355_v9  ;;  %v5205_v5 = vld [vmem:[%s10630_s0 + $0x28] sm:$0xf0]  ;;  %v6187_v9 = vld [vmem:[%s10630_s0 + $0x14] sm:$0xf] }
  0x3f   :  { %v5213_v11 = vld [vmem:[%s10630_s0 + $0x30] sm:$0xf0] }
  0x42   :  { %1009 = vmatpush.bf16.msrb.mxu0 %v6257_v30  ;;  %1107 = vmatpush.bf16.msrb.mxu3 %v6273_v26  ;;  %v6299_v30 = vld [vmem:[%s10632_s2 + $0x190] sm:$0xff] }
  0x43   :  { %v5245_v26 = vld [vmem:[%s10630_s0 + $0x70] sm:$0xf0] }
  0x45   :  { %981 = vmatmul.bf16.gmra.mxu3 %v5324_v62  ;;  %1010 = vmatmul.bf16.vlgmr.msrb.gmra.mxu0 %v5200_v0  ;;  %v5424_v62 = vor.u32 %v6241_v56, %v5421_v57  ;;  %v6311_v0 = vld [vmem:[%s10632_s2 + $0x1f0] sm:$0xff] }
  0x46   :  { %1051 = vmatpush.bf16.msra.mxu0 %v7073_v1  ;;  %v6296_v1 = vld [vmem:[%s10632_s2 + $0x178] sm:$0xff]  ;;  %1296 = vmatpush.bf16.msra.mxu3 %v6312_v44  ;;  %v6215_v56 = vld [vmem:[%s10630_s0 + $0xec] sm:$0xf0] }
  0x47   :  { %1079 = vmatmul.bf16.gmra.mxu2 %v5332_v63  ;;  %1030 = vmatmul.bf16.gmra.mxu1 %v5328_v2  ;;  %v6282_v63 = vld [vmem:[%s10632_s2 + $0x108] sm:$0xff]  ;;  %v6281_v2 = vld [vmem:[%s10632_s2 + $0x100] sm:$0xff] }
  0x48   :  { %1198 = vmatpush.bf16.msrb.mxu1 %v6296_v1  ;;  %v5219_v1 = vld [vmem:[%s10630_s0 + $0x18] sm:$0xf] }
  0x4a   :  { %1052 = vmatpush.bf16.msra.mxu0 %v7087_v4  ;;  %v6302_v4 = vld [vmem:[%s10632_s2 + $0x1a8] sm:$0xff]  ;;  %1297 = vmatpush.bf16.msra.mxu3 %v6311_v0  ;;  %v5308_v0 = vor.u32 %v6215_v56, %v5307_v55  ;;  %v6227_v55 = vld [vmem:[%s10630_s0 + $0x154] sm:$0xf] }
  0x4b   :  { %1249 = vmatpush.bf16.msrb.mxu2 %v6302_v4  ;;  %v6191_v4 = vld [vmem:[%s10630_s0 + $0x2c] sm:$0xf0]  ;;  %v5373_v56 = vld [vmem:[%s10630_s0 + $0x170] sm:$0xf0] }
  0x4c   :  { %1199 = vmatpush.bf16.msrb.mxu1 %v6295_v8  ;;  %v5211_v8 = vld [vmem:[%s10630_s0 + $0x10] sm:$0xf] }
  0x4e   :  { %1053 = vmatpush.bf16.msra.mxu0 %v7102_v7  ;;  %v6230_v7 = vld [vmem:[%s10630_s0 + $0x164] sm:$0xf0]  ;;  %1298 = vmatpush.bf16.msra.mxu3 %v6310_v17  ;;  %v6218_v17 = vld [vmem:[%s10630_s0 + $0x10c] sm:$0xf] }
  0x4f   :  { %v5364_v21 = vor.u32 %v6230_v7, %v5363_v12  ;;  %1250 = vmatpush.bf16.msrb.mxu2 %v6301_v25  ;;  %v5208_v12 = vor.u32 %v6186_v3, %v5205_v5  ;;  %v5220_v7 = vor.u32 %v6192_v6, %v5219_v1  ;;  %v6195_v25 = vld [vmem:[%s10630_s0 + $0x54] sm:$0xf] }
  0x50   :  { %1200 = vmatpush.bf16.msrb.mxu1 %v6294_v23  ;;  %v6199_v23 = vld [vmem:[%s10630_s0 + $0x6c] sm:$0xf0] }
  0x52   :  { %1054 = vmatpush.bf16.msra.mxu0 %v7117_v10  ;;  %v5232_v10 = vor.u32 %v6193_v14, %v5229_v15  ;;  %v5212_v14 = vor.u32 %v6191_v4, %v5211_v8  ;;  %v5216_v15 = vor.u32 %v6187_v9, %v5213_v11  ;;  %v6307_v8 = vld [vmem:[%s10632_s2 + $0x1d0] sm:$0xff] }
  0x53   :  { %1251 = vmatpush.bf16.msrb.mxu2 %v6300_v27 }
  0x55   :  { %986 = vmatmul.bf16.gmra.mxu3 %v5356_v20  ;;  %1015 = vmatmul.bf16.gmra.mxu0 %v5232_v10  ;;  %v5237_v20 = vld [vmem:[%s10630_s0 + $0x68] sm:$0xf0]  ;;  %v6200_v10 = vld [vmem:[%s10630_s0 + $0x74] sm:$0xf0] }
  0x56   :  { %1055 = vmatpush.bf16.msra.mxu0 %v7132_v13  ;;  %v6293_v13 = vld [vmem:[%s10632_s2 + $0x160] sm:$0xff] }
  0x57   :  { %1084 = vmatmul.bf16.gmra.mxu2 %v5364_v21  ;;  %1035 = vmatmul.bf16.gmra.mxu1 %v5360_v22  ;;  %v5251_v21 = vld [vmem:[%s10630_s0 + $0x58] sm:$0xf]  ;;  %v5243_v22 = vld [vmem:[%s10630_s0 + $0x50] sm:$0xf] }
  0x58   :  { %1201 = vmatpush.bf16.msrb.mxu1 %v6293_v13  ;;  %1252 = vmatpush.bf16.msrb.mxu2 %v6299_v30  ;;  %v5240_v13 = vor.u32 %v6194_v18, %v5237_v20  ;;  %v5252_v27 = vor.u32 %v6200_v10, %v5251_v21  ;;  %v6202_v30 = vld [vmem:[%s10630_s0 + $0x8c] sm:$0xf]  ;;  %v5347_v20 = vld [vmem:[%s10630_s0 + $0x118] sm:$0xf]  ;;  %v5339_v10 = vld [vmem:[%s10630_s0 + $0x110] sm:$0xf] }
  0x59   :  { %v5333_v18 = vld [vmem:[%s10630_s0 + $0x128] sm:$0xf0]  ;;  %v6224_v21 = vld [vmem:[%s10630_s0 + $0x134] sm:$0xf0] }
  0x5a   :  { %1056 = vmatpush.bf16.msra.mxu0 %v7147_v16  ;;  %v6292_v16 = vld [vmem:[%s10632_s2 + $0x158] sm:$0xff] }
  0x5c   :  { %1202 = vmatpush.bf16.msrb.mxu1 %v6292_v16  ;;  %1253 = vmatpush.bf16.msrb.mxu2 %v6298_v41  ;;  %v5248_v16 = vor.u32 %v6195_v25, %v5245_v26 }
  0x5e   :  { %1057 = vmatpush.bf16.msra.mxu0 %v7162_v19  ;;  %v6237_v19 = vld [vmem:[%s10630_s0 + $0x19c] sm:$0xf0] }
  0x5f   :  { %v5388_v38 = vor.u32 %v6237_v19, %v5387_v29  ;;  %v6309_v29 = vld [vmem:[%s10632_s2 + $0x1e0] sm:$0xff]  ;;  %v5269_v19 = vld [vmem:[%s10630_s0 + $0xa8] sm:$0xf0] }
  0x60   :  { %1203 = vmatpush.bf16.msrb.mxu1 %v6291_v37  ;;  %1254 = vmatpush.bf16.msrb.mxu2 %v6297_v46  ;;  %v5284_v37 = vor.u32 %v6208_v32, %v5283_v31 }
  0x61   :  { %1299 = vmatpush.bf16.msra.mxu3 %v6309_v29  ;;  %v5348_v29 = vor.u32 %v6224_v21, %v5347_v20 }
  0x62   :  { %1058 = vmatpush.bf16.msra.mxu0 %v7181_v24  ;;  %v6287_v24 = vld [vmem:[%s10632_s2 + $0x130] sm:$0xff] }
  0x64   :  { %1204 = vmatpush.bf16.msrb.mxu1 %v6290_v45 }
  0x65   :  { %991 = vmatmul.bf16.gmra.mxu3 %v5388_v38  ;;  %1059 = vmatmul.bf16.vlgmr.msra.gmra.mxu0 %v5204_v40  ;;  %v5276_v38 = vor.u32 %v6207_v34, %v5275_v33  ;;  %v5280_v40 = vor.u32 %v6203_v35, %v5277_v36  ;;  %v6306_v36 = vld [vmem:[%s10632_s2 + $0x1c8] sm:$0xff] }
  0x66   :  { %1149 = vmatpush.bf16.msrb.mxu0 %v6288_v28  ;;  %v5244_v28 = vor.u32 %v6199_v23, %v5243_v22  ;;  %v6223_v22 = vld [vmem:[%s10630_s0 + $0x12c] sm:$0xf0] }
  0x67   :  { %1089 = vmatmul.bf16.gmra.mxu2 %v5396_v39  ;;  %1040 = vmatmul.bf16.gmra.mxu1 %v5392_v42  ;;  %v7522_v42 = vld [vmem:[%s10633_s3] ss:$0 sm:$0xff] }
  0x68   :  { %1205 = vmatpush.bf16.msrb.mxu1 %v6289_v48 }
  0x6a   :  { %1150 = vmatpush.bf16.msrb.mxu0 %v6287_v24  ;;  %v5272_v24 = vor.u32 %v6202_v30, %v5269_v19  ;;  %v5340_v30 = vor.u32 %v6223_v22, %v5339_v10  ;;  %v6235_v10 = vld [vmem:[%s10630_s0 + $0x194] sm:$0xf] }
  0x6b   :  { %v5405_v22 = vld [vmem:[%s10630_s0 + $0x1b0] sm:$0xf0] }
  0x6e   :  { %1151 = vmatpush.bf16.msrb.mxu0 %v6286_v43  ;;  %v6308_v43 = vld [vmem:[%s10632_s2 + $0x1d8] sm:$0xff] }
  0x6f   :  { %1300 = vmatpush.bf16.msra.mxu3 %v6308_v43 }
  0x72   :  { %1152 = vmatpush.bf16.msrb.mxu0 %v6285_v47 }
  0x73   :  { %1301 = vmatpush.bf16.msra.mxu3 %v6307_v8 }
  0x75   :  { %996 = vmatmul.bf16.gmra.mxu3 %v5420_v59  ;;  %1064 = vmatmul.bf16.gmra.mxu0 %v5236_v61  ;;  %v6211_v59 = vld [vmem:[%s10630_s0 + $0xd4] sm:$0xf] }
  0x76   :  { %1153 = vmatpush.bf16.msrb.mxu0 %v6284_v49 }
  0x77   :  { %1094 = vmatmul.bf16.gmra.mxu2 %v5428_v60  ;;  %1045 = vmatmul.bf16.gmra.mxu1 %v5424_v62  ;;  %v5309_v60 = vld [vmem:[%s10630_s0 + $0xf0] sm:$0xf0]  ;;  %v5304_v62 = vor.u32 %v6210_v51, %v5301_v52  ;;  %v6231_v51 = vld [vmem:[%s10630_s0 + $0x16c] sm:$0xf0] }
  0x78   :  { %v5312_v5 = vor.u32 %v6211_v59, %v5309_v60  ;;  %1302 = vmatpush.bf16.msra.mxu3 %v6306_v36  ;;  %v5443_v36 = vld [vmem:[%s10630_s0 + $0x1d8] sm:$0xf] }
  0x7a   :  { %1154 = vmatpush.bf16.msrb.mxu0 %v6283_v58 }
  0x7e   :  { %1155 = vmatpush.bf16.msrb.mxu0 %v6282_v63  ;;  %v5316_v63 = vor.u32 %v6216_v54, %v5315_v53 }
  0x82   :  { %1156 = vmatpush.bf16.msrb.mxu0 %v6281_v2 }
  0x85   :  { %1108 = vmatmul.bf16.vlgmr.msrb.gmra.mxu3 %v5208_v12  ;;  %1157 = vmatmul.bf16.vlgmr.msrb.gmra.mxu0 %v5212_v14 }
  0x87   :  { %1255 = vmatmul.bf16.vlgmr.msrb.gmra.mxu2 %v5220_v7  ;;  %1206 = vmatmul.bf16.vlgmr.msrb.gmra.mxu1 %v5216_v15 }
  0x95   :  { %1113 = vmatmul.bf16.gmra.mxu3 %v5240_v13  ;;  %1162 = vmatmul.bf16.gmra.mxu0 %v5244_v28  ;;  %v6219_v13 = vld [vmem:[%s10630_s0 + $0x114] sm:$0xf] }
  0x97   :  { %1260 = vmatmul.bf16.gmra.mxu2 %v5252_v27  ;;  %1211 = vmatmul.bf16.gmra.mxu1 %v5248_v16  ;;  %v5341_v27 = vld [vmem:[%s10630_s0 + $0x130] sm:$0xf0]  ;;  %v5336_v16 = vor.u32 %v6218_v17, %v5333_v18  ;;  %v5403_v17 = vld [vmem:[%s10630_s0 + $0x190] sm:$0xf] }
  0x98   :  { %v5344_v32 = vor.u32 %v6219_v13, %v5341_v27  ;;  %v6239_v18 = vld [vmem:[%s10630_s0 + $0x1ac] sm:$0xf0]  ;;  %v5408_v13 = vor.u32 %v6235_v10, %v5405_v22  ;;  %v6325_v22 = vld [vmem:[%s10634_s4 + $0x64] sm:$0xf] }
  0xa2   :  { %v962_v39 = vpop.f32.mrf.mxu0 }
  0xa3   :  { %v963_v23 = vadd.f32 %v7522_v42, %v962_v39 }
  0xa4   :  { %v1021_v41 = vpop.f32.mrf.mxu1 }
  0xa5   :  { %1118 = vmatmul.bf16.gmra.mxu3 %v5272_v24  ;;  %1167 = vmatmul.bf16.gmra.mxu0 %v5276_v38 }
  0xa7   :  { %1265 = vmatmul.bf16.gmra.mxu2 %v5284_v37  ;;  %1216 = vmatmul.bf16.gmra.mxu1 %v5280_v40 }
  0xa8   :  { %v972_v44 = vpop.f32.mrf.mxu3 }
  0xa9   :  { %v973_v46 = vadd.f32 %v7522_v42, %v972_v44  ;;  %v6226_v44 = vld [vmem:[%s10630_s0 + $0x14c] sm:$0xf] }
  0xaa   :  { %v1070_v45 = vpop.f32.mrf.mxu2  ;;  %v7528_v48 = vpop.f32.mrf.mxu0 }
  0xab   :  { %v1022_v47 = vadd.f32 %v1021_v41, %v973_v46  ;;  %v5379_v46 = vld [vmem:[%s10630_s0 + $0x158] sm:$0xf] }
  0xac   :  { %v1023_v49 = vpop.f32.mrf.mxu1 }
  0xad   :  { %v7530_v50 = vadd.f32 %v1070_v45, %v1022_v47  ;;  %v5365_v45 = vld [vmem:[%s10630_s0 + $0x168] sm:$0xf0]  ;;  %v6232_v47 = vld [vmem:[%s10630_s0 + $0x174] sm:$0xf0] }
  0xb0   :  { %v974_v57 = vpop.f32.mrf.mxu3 }
  0xb1   :  { %v975_v61 = vadd.f32 %v7522_v42, %v974_v57  ;;  %v5368_v57 = vor.u32 %v6226_v44, %v5365_v45  ;;  %v6243_v45 = vld [vmem:[%s10630_s0 + $0x1d4] sm:$0xf] }
  0xb2   :  { %v1072_v58 = vpop.f32.mrf.mxu2  ;;  %v967_v3 = vpop.f32.mrf.mxu0 }
  0xb3   :  { %v1024_v2 = vadd.f32 %v1023_v49, %v975_v61  ;;  %v5371_v49 = vld [vmem:[%s10630_s0 + $0x150] sm:$0xf]  ;;  %v968_v52 = vadd.f32 %v7522_v42, %v967_v3  ;;  %v5376_v61 = vor.u32 %v6227_v55, %v5373_v56  ;;  %v6327_v56 = vld [vmem:[%s10634_s4 + $0x74] sm:$0xf] }
  0xb4   :  { %v1026_v1 = vpop.f32.mrf.mxu1  ;;  %v5372_v59 = vor.u32 %v6231_v51, %v5371_v49 }
  0xb5   :  { %v7557_v6 = vadd.f32 %v1072_v58, %v1024_v2  ;;  %1123 = vmatmul.bf16.gmra.mxu3 %v5304_v62  ;;  %1172 = vmatmul.bf16.gmra.mxu0 %v5308_v0  ;;  %v5380_v58 = vor.u32 %v6232_v47, %v5379_v46  ;;  %v6305_v0 = vld [vmem:[%s10632_s2 + $0x1c0] sm:$0xff]  ;;  %v5437_v46 = vld [vmem:[%s10630_s0 + $0x1f0] sm:$0xf0] }
  0xb6   :  { %1303 = vmatpush.bf16.msra.mxu3 %v6305_v0 }
  0xb7   :  { %1270 = vmatmul.bf16.gmra.mxu2 %v5316_v63  ;;  %1221 = vmatmul.bf16.gmra.mxu1 %v5312_v5 }
  0xb8   :  { %v977_v4 = vpop.f32.mrf.mxu3 }
  0xb9   :  { %v978_v11 = vadd.f32 %v7522_v42, %v977_v4 }
  0xba   :  { %v1075_v9 = vpop.f32.mrf.mxu2  ;;  %v7563_v7 = vpop.f32.mrf.mxu0 }
  0xbb   :  { %v1027_v12 = vadd.f32 %v1026_v1, %v978_v11  ;;  %v5397_v11 = vld [vmem:[%s10630_s0 + $0x1a8] sm:$0xf0] }
  0xbc   :  { %v1028_v14 = vpop.f32.mrf.mxu1 }
  0xbd   :  { %v7565_v15 = vadd.f32 %v1075_v9, %v1027_v12  ;;  %v6234_v9 = vld [vmem:[%s10630_s0 + $0x18c] sm:$0xf]  ;;  %v5411_v12 = vld [vmem:[%s10630_s0 + $0x198] sm:$0xf] }
  0xc0   :  { %v979_v25 = vpop.f32.mrf.mxu3 }
  0xc1   :  { %v980_v28 = vadd.f32 %v7522_v42, %v979_v25 }
  0xc2   :  { %v1077_v26 = vpop.f32.mrf.mxu2  ;;  %v1011_v31 = vpop.f32.mrf.mxu0 }
  0xc3   :  { %v1029_v19 = vadd.f32 %v1028_v14, %v980_v28  ;;  %v7593_v33 = vadd.f32 %v1011_v31, %v963_v23  ;;  %v6240_v14 = vld [vmem:[%s10630_s0 + $0x1b4] sm:$0xf0]  ;;  %v5400_v23 = vor.u32 %v6234_v9, %v5397_v11  ;;  %v6242_v31 = vld [vmem:[%s10630_s0 + $0x1cc] sm:$0xf] }
  0xc4   :  { %v1031_v34 = vpop.f32.mrf.mxu1  ;;  %v5412_v25 = vor.u32 %v6240_v14, %v5411_v12  ;;  %v5763_v12 = vld [vmem:[%s10634_s4 + $0x70] sm:$0xf]  ;;  %v6328_v14 = vld [vmem:[%s10634_s4 + $0x74] sm:$0xf0] }
  0xc5   :  { %v7595_v35 = vadd.f32 %v1077_v26, %v1029_v19  ;;  %1128 = vmatmul.bf16.gmra.mxu3 %v5336_v16  ;;  %1177 = vmatmul.bf16.gmra.mxu0 %v5340_v30  ;;  %v5404_v26 = vor.u32 %v6239_v18, %v5403_v17  ;;  %v5764_v17 = vor.u32 %v6328_v14, %v5763_v12  ;;  %v6212_v12 = vld [vmem:[%s10630_s0 + $0xdc] sm:$0xf] }
  0xc6   :  { %v965_v18 = vadd.f32 %v7522_v42, %v7528_v48  ;;  %v5317_v14 = vld [vmem:[%s10630_s0 + $0xf8] sm:$0xf0] }
  0xc7   :  { %1275 = vmatmul.bf16.gmra.mxu2 %v5348_v29  ;;  %1226 = vmatmul.bf16.gmra.mxu1 %v5344_v32 }
  0xc8   :  { %v982_v24 = vpop.f32.mrf.mxu3  ;;  %1471 = vmatpush.bf16.msra.mxu0 %v5764_v17 }
  0xc9   :  { %v983_v38 = vadd.f32 %v7522_v42, %v982_v24  ;;  %v6248_v24 = vld [vmem:[%s10630_s0 + $0x1f4] sm:$0xf0] }
  0xca   :  { %v1080_v37 = vpop.f32.mrf.mxu2  ;;  %v7601_v40 = vpop.f32.mrf.mxu0  ;;  %v5444_v49 = vor.u32 %v6248_v24, %v5443_v36  ;;  %v6326_v36 = vld [vmem:[%s10634_s4 + $0x64] sm:$0xf0] }
  0xcb   :  { %v1032_v39 = vadd.f32 %v1031_v34, %v983_v38  ;;  %v5429_v34 = vld [vmem:[%s10630_s0 + $0x1e8] sm:$0xf0]  ;;  %v6247_v38 = vld [vmem:[%s10630_s0 + $0x1ec] sm:$0xf0] }
  0xcc   :  { %v7603_v41 = vpop.f32.mrf.mxu1  ;;  %v5432_v47 = vor.u32 %v6242_v31, %v5429_v34 }
  0xcd   :  { %v7605_v43 = vadd.f32 %v1080_v37, %v1032_v39  ;;  %v5435_v37 = vld [vmem:[%s10630_s0 + $0x1d0] sm:$0xf] }
  0xce   :  { %v5436_v51 = vor.u32 %v6247_v38, %v5435_v37  ;;  %v970_v37 = vadd.f32 %v7522_v42, %v7563_v7 }
  0xd0   :  { %v7626_v53 = vpop.f32.mrf.mxu3 }
  0xd2   :  { %v7628_v54 = vpop.f32.mrf.mxu2  ;;  %v1016_v60 = vpop.f32.mrf.mxu0 }
  0xd3   :  { %v7636_v62 = vadd.f32 %v1016_v60, %v968_v52  ;;  %v5440_v52 = vor.u32 %v6243_v45, %v5437_v46  ;;  %v6323_v45 = vld [vmem:[%s10634_s4 + $0x54] sm:$0xf]  ;;  %v5749_v46 = vld [vmem:[%s10634_s4 + $0x58] sm:$0xf0] }
  0xd4   :  { %v1036_v63 = vpop.f32.mrf.mxu1 }
  0xd5   :  { %1133 = vmatmul.bf16.gmra.mxu3 %v5368_v57  ;;  %1182 = vmatmul.bf16.gmra.mxu0 %v5372_v59  ;;  %v5765_v57 = vld [vmem:[%s10634_s4 + $0x78] sm:$0xf0] }
  0xd6   :  { %v5768_v60 = vor.u32 %v6327_v56, %v5765_v57  ;;  %v5285_v57 = vld [vmem:[%s10630_s0 + $0xb8] sm:$0xf0] }
  0xd7   :  { %1280 = vmatmul.bf16.gmra.mxu2 %v5380_v58  ;;  %1231 = vmatmul.bf16.gmra.mxu1 %v5376_v61 }
  0xd8   :  { %v987_v2 = vpop.f32.mrf.mxu3  ;;  %1520 = vmatpush.bf16.msra.mxu1 %v5768_v60 }
  0xd9   :  { %v988_v5 = vadd.f32 %v7522_v42, %v987_v2 }
  0xda   :  { %v1085_v3 = vpop.f32.mrf.mxu2  ;;  %v1018_v55 = vpop.f32.mrf.mxu0 }
  0xdb   :  { %v1037_v1 = vadd.f32 %v1036_v63, %v988_v5  ;;  %v6188_v5 = vld [vmem:[%s10630_s0 + $0x1c] sm:$0xf] }
  0xdc   :  { %v7642_v8 = vpop.f32.mrf.mxu1 }
  0xdd   :  { %v7644_v4 = vadd.f32 %v1085_v3, %v1037_v1  ;;  %v5221_v1 = vld [vmem:[%s10630_s0 + $0x38] sm:$0xf0] }
  0xde   :  { %v5224_v11 = vor.u32 %v6188_v5, %v5221_v1 }
  0xe0   :  { %v7664_v20 = vpop.f32.mrf.mxu3 }
  0xe2   :  { %v7666_v21 = vpop.f32.mrf.mxu2  ;;  %v1060_v3 = vpop.f32.mrf.mxu0 }
  0xe3   :  { %v1061_v10 = vadd.f32 %v1060_v3, %v7593_v33  ;;  %v6196_v33 = vld [vmem:[%s10630_s0 + $0x5c] sm:$0xf]  ;;  %v5741_v3 = vld [vmem:[%s10634_s4 + $0x48] sm:$0xf0] }
  0xe4   :  { %v1041_v27 = vpop.f32.mrf.mxu1 }
  0xe5   :  { %1138 = vmatmul.bf16.gmra.mxu3 %v5400_v23  ;;  %1187 = vmatmul.bf16.gmra.mxu0 %v5404_v26  ;;  %v5757_v23 = vld [vmem:[%s10634_s4 + $0x68] sm:$0xf0] }
  0xe7   :  { %1285 = vmatmul.bf16.gmra.mxu2 %v5412_v25  ;;  %1236 = vmatmul.bf16.gmra.mxu1 %v5408_v13  ;;  %v5760_v13 = vor.u32 %v6325_v22, %v5757_v23  ;;  %v5739_v22 = vld [vmem:[%s10634_s4 + $0x40] sm:$0xf] }
  0xe8   :  { %v992_v28 = vpop.f32.mrf.mxu3 }
  0xe9   :  { %v993_v29 = vadd.f32 %v7522_v42, %v992_v28  ;;  %1521 = vmatpush.bf16.msra.mxu1 %v5760_v13 }
  0xea   :  { %v1090_v16 = vpop.f32.mrf.mxu2  ;;  %v1062_v25 = vpop.f32.mrf.mxu0 }
  0xeb   :  { %v1042_v30 = vadd.f32 %v1041_v27, %v993_v29  ;;  %v1014_v27 = vadd.f32 %v7601_v40, %v965_v18  ;;  %v5755_v40 = vld [vmem:[%s10634_s4 + $0x60] sm:$0xf] }
  0xec   :  { %v7680_v32 = vpop.f32.mrf.mxu1  ;;  %v5756_v24 = vor.u32 %v6326_v36, %v5755_v40  ;;  %v6317_v36 = vld [vmem:[%s10634_s4 + $0x24] sm:$0xf] }
  0xed   :  { %v7675_v19 = vadd.f32 %v1090_v16, %v1042_v30  ;;  %v1063_v48 = vadd.f32 %v1062_v25, %v1014_v27  ;;  %v5253_v16 = vld [vmem:[%s10630_s0 + $0x78] sm:$0xf0]  ;;  %v6319_v25 = vld [vmem:[%s10634_s4 + $0x34] sm:$0xf] }
  0xee   :  { %v5256_v31 = vor.u32 %v6196_v33, %v5253_v16  ;;  %1472 = vmatpush.bf16.msra.mxu0 %v5756_v24  ;;  %v5349_v33 = vld [vmem:[%s10630_s0 + $0x138] sm:$0xf0] }
  0xf0   :  { %v7697_v39 = vpop.f32.mrf.mxu3 }
  0xf2   :  { %v7699_v44 = vpop.f32.mrf.mxu2  ;;  %v1065_v34 = vpop.f32.mrf.mxu0 }
  0xf3   :  { %v1066_v38 = vadd.f32 %v1065_v34, %v7636_v62  ;;  %v6204_v62 = vld [vmem:[%s10630_s0 + $0x9c] sm:$0xf]  ;;  %v5731_v34 = vld [vmem:[%s10634_s4 + $0x30] sm:$0xf] }
  0xf4   :  { %v1046_v59 = vpop.f32.mrf.mxu1  ;;  %v5288_v60 = vor.u32 %v6204_v62, %v5285_v57  ;;  %v5717_v62 = vld [vmem:[%s10634_s4 + $0x18] sm:$0xf0] }
  0xf5   :  { %1143 = vmatmul.bf16.gmra.mxu3 %v5432_v47  ;;  %1192 = vmatmul.bf16.gmra.mxu0 %v5436_v51  ;;  %v1019_v51 = vadd.f32 %v1018_v55, %v970_v37  ;;  %v5747_v55 = vld [vmem:[%s10634_s4 + $0x50] sm:$0xf] }
  0xf7   :  { %1290 = vmatmul.bf16.gmra.mxu2 %v5444_v49  ;;  %1241 = vmatmul.bf16.gmra.mxu1 %v5440_v52  ;;  %v5752_v49 = vor.u32 %v6323_v45, %v5749_v46  ;;  %v6228_v45 = vld [vmem:[%s10630_s0 + $0x15c] sm:$0xf] }
  0xf8   :  { %v997_v58 = vpop.f32.mrf.mxu3  ;;  %v5381_v46 = vld [vmem:[%s10630_s0 + $0x178] sm:$0xf0] }
  0xf9   :  { %v998_v61 = vadd.f32 %v7522_v42, %v997_v58  ;;  %1522 = vmatpush.bf16.msra.mxu1 %v5752_v49  ;;  %v5384_v49 = vor.u32 %v6228_v45, %v5381_v46 }
  0xfa   :  { %v1095_v63 = vpop.f32.mrf.mxu2  ;;  %v1067_v56 = vpop.f32.mrf.mxu0 }
  0xfb   :  { %v1047_v0 = vadd.f32 %v1046_v59, %v998_v61  ;;  %v1068_v7 = vadd.f32 %v1067_v56, %v1019_v51  ;;  %v6324_v61 = vld [vmem:[%s10634_s4 + $0x54] sm:$0xf0]  ;;  %v5723_v51 = vld [vmem:[%s10634_s4 + $0x20] sm:$0xf] }
  0xfd   :  { %v7714_v2 = vadd.f32 %v1095_v63, %v1047_v0  ;;  %v5748_v63 = vor.u32 %v6324_v61, %v5747_v55  ;;  %v6321_v0 = vld [vmem:[%s10634_s4 + $0x44] sm:$0xf]  ;;  %v7861_v55 = vpop.f32.mrf.mxu1 }
  0xfe   :  { %v5744_v1 = vor.u32 %v6321_v0, %v5741_v3  ;;  %v6236_v0 = vld [vmem:[%s10630_s0 + $0x19c] sm:$0xf] }
  0xff   :  { %1473 = vmatpush.bf16.msra.mxu0 %v5748_v63  ;;  %v5413_v3 = vld [vmem:[%s10630_s0 + $0x1b8] sm:$0xf0] }
 0x100   :  { %v7722_v9 = vpop.f32.mrf.mxu3  ;;  %1523 = vmatpush.bf16.msra.mxu1 %v5744_v1  ;;  %v5416_v1 = vor.u32 %v6236_v0, %v5413_v3 }
 0x102   :  { %v7863_v61 = vpop.f32.mrf.mxu2  ;;  %v1158_v63 = vpop.f32.mrf.mxu0 }
 0x105   :  { %1304 = vmatmul.bf16.vlgmr.msra.gmra.mxu3 %v5224_v11 }
 0x108   :  { %v1109_v26 = vpop.f32.mrf.mxu3 }
 0x109   :  { %v7740_v28 = vadd.f32 %v1109_v26, %v1061_v10  ;;  %v5320_v10 = vor.u32 %v6212_v12, %v5317_v14  ;;  %v1207_v12 = vpop.f32.mrf.mxu1  ;;  %v6316_v14 = vld [vmem:[%s10634_s4 + $0x14] sm:$0xf0] }
 0x110   :  { %v1111_v29 = vpop.f32.mrf.mxu3 }
 0x111   :  { %v7748_v30 = vadd.f32 %v1111_v29, %v1063_v48  ;;  %v6220_v48 = vld [vmem:[%s10630_s0 + $0x11c] sm:$0xf] }
 0x115   :  { %1309 = vmatmul.bf16.gmra.mxu3 %v5256_v31  ;;  %v5352_v31 = vor.u32 %v6220_v48, %v5349_v33  ;;  %v6244_v48 = vld [vmem:[%s10630_s0 + $0x1dc] sm:$0xf] }
 0x116   :  { %v5445_v33 = vld [vmem:[%s10630_s0 + $0x1f8] sm:$0xf0] }
 0x118   :  { %v1114_v47 = vpop.f32.mrf.mxu3 }
 0x119   :  { %v7765_v52 = vadd.f32 %v1114_v47, %v1066_v38 }
 0x120   :  { %v1116_v58 = vpop.f32.mrf.mxu3 }
 0x121   :  { %v7773_v59 = vadd.f32 %v1116_v58, %v1068_v7  ;;  %v6315_v7 = vld [vmem:[%s10634_s4 + $0x14] sm:$0xf] }
 0x122   :  { %v5720_v58 = vor.u32 %v6315_v7, %v5717_v62 }
 0x125   :  { %1314 = vmatmul.bf16.gmra.mxu3 %v5288_v60 }
 0x128   :  { %v1119_v5 = vpop.f32.mrf.mxu3 }
 0x129   :  { %v7788_v11 = vadd.f32 %v1119_v5, %v7530_v50  ;;  %v6322_v50 = vld [vmem:[%s10634_s4 + $0x44] sm:$0xf0] }
 0x12a   :  { %v5740_v23 = vor.u32 %v6322_v50, %v5739_v22  ;;  %v6313_v22 = vld [vmem:[%s10634_s4 + $0x4] sm:$0xf]  ;;  %v5709_v50 = vld [vmem:[%s10634_s4 + $0x8] sm:$0xf0] }
 0x12c   :  { %1474 = vmatpush.bf16.msra.mxu0 %v5740_v23  ;;  %v1160_v23 = vpop.f32.mrf.mxu0 }
 0x12d   :  { %v1161_v62 = vadd.f32 %v1160_v23, %v7748_v30 }
 0x130   :  { %v1121_v17 = vpop.f32.mrf.mxu3 }
 0x131   :  { %v7797_v18 = vadd.f32 %v1121_v17, %v7557_v6  ;;  %v5733_v6 = vld [vmem:[%s10634_s4 + $0x38] sm:$0xf0] }
 0x132   :  { %v5736_v13 = vor.u32 %v6319_v25, %v5733_v6  ;;  %v5712_v6 = vor.u32 %v6313_v22, %v5709_v50 }
 0x134   :  { %1524 = vmatpush.bf16.msra.mxu1 %v5736_v13  ;;  %v1209_v13 = vpop.f32.mrf.mxu1 }
 0x135   :  { %1319 = vmatmul.bf16.gmra.mxu3 %v5320_v10  ;;  %v1256_v10 = vpop.f32.mrf.mxu2  ;;  %v1210_v3 = vadd.f32 %v1209_v13, %v1161_v62 }
 0x138   :  { %v1124_v26 = vpop.f32.mrf.mxu3 }
 0x139   :  { %v7812_v27 = vadd.f32 %v1124_v26, %v7565_v15  ;;  %v6320_v15 = vld [vmem:[%s10634_s4 + $0x34] sm:$0xf0] }
 0x13a   :  { %v5732_v40 = vor.u32 %v6320_v15, %v5731_v34  ;;  %v5448_v34 = vor.u32 %v6244_v48, %v5445_v33  ;;  %v5707_v15 = vld [vmem:[%s10634_s4] sm:$0xf] }
 0x13c   :  { %1475 = vmatpush.bf16.msra.mxu0 %v5732_v40  ;;  %v1163_v40 = vpop.f32.mrf.mxu0 }
 0x13d   :  { %v1164_v30 = vadd.f32 %v1163_v40, %v7765_v52 }
 0x140   :  { %v1126_v16 = vpop.f32.mrf.mxu3 }
 0x141   :  { %v7821_v29 = vadd.f32 %v1126_v16, %v7595_v35  ;;  %v5725_v35 = vld [vmem:[%s10634_s4 + $0x28] sm:$0xf0]  ;;  %v1258_v16 = vpop.f32.mrf.mxu2 }
 0x142   :  { %v5728_v37 = vor.u32 %v6317_v36, %v5725_v35  ;;  %v1212_v35 = vpop.f32.mrf.mxu1 }
 0x144   :  { %1525 = vmatpush.bf16.msra.mxu1 %v5728_v37  ;;  %v1165_v46 = vpop.f32.mrf.mxu0 }
 0x145   :  { %1324 = vmatmul.bf16.gmra.mxu3 %v5352_v31  ;;  %v1166_v23 = vadd.f32 %v1165_v46, %v7773_v59 }
 0x148   :  { %v1129_v24 = vpop.f32.mrf.mxu3  ;;  %1526 = vmatpush.bf16.msra.mxu1 %v5720_v58 }
 0x149   :  { %v7836_v38 = vadd.f32 %v1129_v24, %v7605_v43  ;;  %v6318_v43 = vld [vmem:[%s10634_s4 + $0x24] sm:$0xf0]  ;;  %v1261_v45 = vpop.f32.mrf.mxu2 }
 0x14a   :  { %v5724_v56 = vor.u32 %v6318_v43, %v5723_v51 }
 0x14c   :  { %1476 = vmatpush.bf16.msra.mxu0 %v5724_v56  ;;  %1527 = vmatpush.bf16.msra.mxu1 %v5712_v6  ;;  %v1159_v56 = vadd.f32 %v1158_v63, %v7740_v28  ;;  %v1168_v7 = vpop.f32.mrf.mxu0 }
 0x14e   :  { %v1208_v58 = vadd.f32 %v1207_v12, %v1159_v56 }
 0x150   :  { %v7844_v47 = vpop.f32.mrf.mxu3 }
 0x151   :  { %v1263_v43 = vpop.f32.mrf.mxu2 }
 0x154   :  { %v1170_v22 = vpop.f32.mrf.mxu0 }
 0x155   :  { %1329 = vmatmul.bf16.gmra.mxu3 %v5384_v49  ;;  %v1214_v49 = vpop.f32.mrf.mxu1 }
 0x158   :  { %v1134_v57 = vpop.f32.mrf.mxu3 }
 0x159   :  { %v7859_v60 = vadd.f32 %v1134_v57, %v7644_v4  ;;  %v5715_v4 = vld [vmem:[%s10634_s4 + $0x10] sm:$0xf] }
 0x15a   :  { %v5716_v17 = vor.u32 %v6316_v14, %v5715_v4  ;;  %v1266_v4 = vpop.f32.mrf.mxu2  ;;  %v1259_v14 = vadd.f32 %v1258_v16, %v1210_v3  ;;  %v6335_v16 = vld [vmem:[%s10636_s6 + $0x30] sm:$0xff] }
 0x15c   :  { %1477 = vmatpush.bf16.msra.mxu0 %v5716_v17  ;;  %v1173_v33 = vpop.f32.mrf.mxu0 }
 0x15d   :  { %v1217_v0 = vpop.f32.mrf.mxu1 }
 0x160   :  { %v7871_v5 = vpop.f32.mrf.mxu3 }
 0x162   :  { %v1268_v13 = vpop.f32.mrf.mxu2 }
 0x164   :  { %v1175_v62 = vpop.f32.mrf.mxu0 }
 0x165   :  { %1334 = vmatmul.bf16.gmra.mxu3 %v5416_v1  ;;  %v1257_v1 = vadd.f32 %v1256_v10, %v1208_v58  ;;  %v1219_v6 = vpop.f32.mrf.mxu1  ;;  %v1213_v10 = vadd.f32 %v1212_v35, %v1164_v30 }
 0x168   :  { %v1139_v25 = vpop.f32.mrf.mxu3 }
 0x169   :  { %v7886_v26 = vadd.f32 %v1139_v25, %v7675_v19  ;;  %v6314_v19 = vld [vmem:[%s10634_s4 + $0x4] sm:$0xf0] }
 0x16a   :  { %v5708_v36 = vor.u32 %v6314_v19, %v5707_v15  ;;  %v1262_v15 = vadd.f32 %v1261_v45, %v1213_v10  ;;  %v1271_v56 = vpop.f32.mrf.mxu2  ;;  %v6333_v10 = vld [vmem:[%s10636_s6 + $0x20] sm:$0xff] }
 0x16c   :  { %1478 = vmatpush.bf16.msra.mxu0 %v5708_v36 }
 0x16d   :  { %v1222_v19 = vpop.f32.mrf.mxu1 }
 0x170   :  { %v7894_v31 = vpop.f32.mrf.mxu3 }
 0x175   :  { %1339 = vmatmul.bf16.gmra.mxu3 %v5448_v34  ;;  %v1215_v34 = vadd.f32 %v1214_v49, %v1166_v23  ;;  %v1171_v49 = vadd.f32 %v1170_v22, %v7797_v18  ;;  %v1224_v58 = vpop.f32.mrf.mxu1 }
 0x177   :  { %v1264_v36 = vadd.f32 %v1263_v43, %v1215_v34  ;;  %v6334_v43 = vld [vmem:[%s10636_s6 + $0x28] sm:$0xff] }
 0x178   :  { %v1144_v24 = vpop.f32.mrf.mxu3 }
 0x179   :  { %v7903_v37 = vadd.f32 %v1144_v24, %v7714_v2  ;;  %v6336_v2 = vld [vmem:[%s10636_s6 + $0x38] sm:$0xff] }
 0x17a   :  { %1725 = vmatpush.bf16.msra.mxu2 %v6336_v2  ;;  %v1220_v2 = vadd.f32 %v1219_v6, %v1171_v49  ;;  %v1176_v6 = vadd.f32 %v1175_v62, %v7821_v29 }
 0x17e   :  { %1726 = vmatpush.bf16.msra.mxu2 %v6335_v16 }
 0x180   :  { %v7905_v51 = vpop.f32.mrf.mxu3 }
 0x182   :  { %1727 = vmatpush.bf16.msra.mxu2 %v6334_v43 }
 0x186   :  { %1728 = vmatpush.bf16.msra.mxu2 %v6333_v10 }
 0x188   :  { %v1305_v57 = vpop.f32.mrf.mxu3 }
 0x189   :  { %v1306_v17 = vadd.f32 %v1305_v57, %v1257_v1  ;;  %v1169_v57 = vadd.f32 %v1168_v7, %v7788_v11  ;;  %v1273_v1 = vpop.f32.mrf.mxu2 }
 0x18b   :  { %v1345_v28 = vmax.f32 %v1306_v17, 0.0  ;;  %v1218_v45 = vadd.f32 %v1217_v0, %v1169_v57  ;;  %v1178_v17 = vpop.f32.mrf.mxu0 }
 0x190   :  { %v1307_v50 = vpop.f32.mrf.mxu3 }
 0x191   :  { %v1308_v25 = vadd.f32 %v1307_v50, %v1259_v14  ;;  %v1267_v14 = vadd.f32 %v1266_v4, %v1218_v45  ;;  %v1269_v50 = vadd.f32 %v1268_v13, %v1220_v2  ;;  %v1276_v0 = vpop.f32.mrf.mxu2  ;;  %v985_v4 = vadd.f32 %v7522_v42, %v7626_v53 }
 0x193   :  { %v1346_v63 = vmax.f32 %v1308_v25, 0.0 }
 0x195   :  { %v1361_v12 = vpack.c.bf16 %v1346_v63, %v1345_v28  ;;  %v1227_v28 = vpop.f32.mrf.mxu1  ;;  %v1174_v63 = vadd.f32 %v1173_v33, %v7812_v27  ;;  %v1034_v27 = vadd.f32 %v7603_v41, %v985_v4 }
 0x197   :  { %1479 = vmatmul.bf16.vlgmr.msra.gmra.mxu0 %v1361_v12  ;;  %1528 = vmatmul.bf16.vlgmr.msra.gmra.mxu1 %v1361_v12  ;;  %v1180_v12 = vpop.f32.mrf.mxu0  ;;  %v1223_v13 = vadd.f32 %v1222_v19, %v1174_v63 }
 0x198   :  { %v1310_v48 = vpop.f32.mrf.mxu3 }
 0x199   :  { %v1311_v24 = vadd.f32 %v1310_v48, %v1262_v15  ;;  %v1225_v48 = vadd.f32 %v1224_v58, %v1176_v6  ;;  %v1272_v33 = vadd.f32 %v1271_v56, %v1223_v13  ;;  %v1278_v15 = vpop.f32.mrf.mxu2  ;;  %v990_v56 = vadd.f32 %v7522_v42, %v7664_v20 }
 0x19b   :  { %v1347_v59 = vmax.f32 %v1311_v24, 0.0  ;;  %v1274_v16 = vadd.f32 %v1273_v1, %v1225_v48  ;;  %v1083_v24 = vadd.f32 %v7628_v54, %v1034_v27  ;;  %v1039_v45 = vadd.f32 %v7642_v8, %v990_v56 }
 0x19d   :  { %v1229_v34 = vpop.f32.mrf.mxu1  ;;  %v1132_v53 = vadd.f32 %v7844_v47, %v1083_v24  ;;  %v6332_v47 = vld [vmem:[%s10636_s6 + $0x18] sm:$0xff] }
 0x19e   :  { %1729 = vmatpush.bf16.msra.mxu2 %v6332_v47 }
 0x1a0   :  { %v1312_v52 = vpop.f32.mrf.mxu3 }
 0x1a1   :  { %v1313_v40 = vadd.f32 %v1312_v52, %v1264_v36  ;;  %v1281_v58 = vpop.f32.mrf.mxu2 }
 0x1a3   :  { %v1348_v46 = vmax.f32 %v1313_v40, 0.0  ;;  %v1183_v40 = vpop.f32.mrf.mxu0 }
 0x1a5   :  { %v1362_v35 = vpack.c.bf16 %v1348_v46, %v1347_v59  ;;  %v1179_v46 = vadd.f32 %v1178_v17, %v7836_v38  ;;  %v1232_v57 = vpop.f32.mrf.mxu1  ;;  %v1088_v17 = vadd.f32 %v7666_v21, %v1039_v45 }
 0x1a7   :  { %1484 = vmatmul.bf16.gmra.mxu0 %v1362_v35  ;;  %1533 = vmatmul.bf16.gmra.mxu1 %v1362_v35  ;;  %v1181_v35 = vadd.f32 %v1180_v12, %v1132_v53  ;;  %v1228_v49 = vadd.f32 %v1227_v28, %v1179_v46  ;;  %v1137_v20 = vadd.f32 %v7871_v5, %v1088_v17  ;;  %v6331_v5 = vld [vmem:[%s10636_s6 + $0x10] sm:$0xff] }
 0x1a8   :  { %v1315_v3 = vpop.f32.mrf.mxu3  ;;  %v1184_v28 = vadd.f32 %v1183_v40, %v7859_v60  ;;  %1730 = vmatpush.bf16.msra.mxu2 %v6331_v5 }
 0x1a9   :  { %v1316_v25 = vadd.f32 %v1315_v3, %v1267_v14  ;;  %v1230_v54 = vadd.f32 %v1229_v34, %v1181_v35  ;;  %v1277_v38 = vadd.f32 %v1276_v0, %v1228_v49 }
 0x1aa   :  { %v1233_v0 = vadd.f32 %v1232_v57, %v1184_v28 }
 0x1ab   :  { %v1349_v18 = vmax.f32 %v1316_v25, 0.0  ;;  %v1185_v3 = vpop.f32.mrf.mxu0  ;;  %v1279_v2 = vadd.f32 %v1278_v15, %v1230_v54 }
 0x1ac   :  { %v1186_v63 = vadd.f32 %v1185_v3, %v1137_v20 }
 0x1ad   :  { %v1234_v1 = vpop.f32.mrf.mxu1 }
 0x1ae   :  { %v1235_v21 = vadd.f32 %v1234_v1, %v1186_v63 }
 0x1b0   :  { %v1317_v11 = vpop.f32.mrf.mxu3 }
 0x1b1   :  { %v1318_v7 = vadd.f32 %v1317_v11, %v1269_v50 }
 0x1b3   :  { %v1350_v22 = vmax.f32 %v1318_v7, 0.0  ;;  %v1283_v7 = vpop.f32.mrf.mxu2 }
 0x1b4   :  { %v1284_v4 = vadd.f32 %v1283_v7, %v1235_v21  ;;  %v1385_v7 = vld [vmem:[%s10635_s5] sm:$0x3] }
 0x1b5   :  { %v1363_v30 = vpack.c.bf16 %v1350_v22, %v1349_v18  ;;  %v1188_v22 = vpop.f32.mrf.mxu0  ;;  %v1237_v6 = vpop.f32.mrf.mxu1  ;;  %v7966_v28 = vperm.slane %v1385_v7, 0 }
 0x1b6   :  { %v1189_v15 = vadd.f32 %v1188_v22, %v7886_v26 }
 0x1b7   :  { %1489 = vmatmul.bf16.gmra.mxu0 %v1363_v30  ;;  %1538 = vmatmul.bf16.gmra.mxu1 %v1363_v30  ;;  %v995_v30 = vadd.f32 %v7522_v42, %v7697_v39 }
 0x1b8   :  { %v1320_v23 = vpop.f32.mrf.mxu3  ;;  %v1238_v53 = vadd.f32 %v1237_v6, %v1189_v15 }
 0x1b9   :  { %v1321_v29 = vadd.f32 %v1320_v23, %v1272_v33  ;;  %v1044_v12 = vadd.f32 %v7680_v32, %v995_v30  ;;  %v1282_v23 = vadd.f32 %v1281_v58, %v1233_v0  ;;  %v6330_v32 = vld [vmem:[%s10636_s6 + $0x8] sm:$0xff] }
 0x1ba   :  { %1731 = vmatpush.bf16.msra.mxu2 %v6330_v32 }
 0x1bb   :  { %v1351_v19 = vmax.f32 %v1321_v29, 0.0  ;;  %v1286_v60 = vpop.f32.mrf.mxu2  ;;  %v1093_v34 = vadd.f32 %v7699_v44, %v1044_v12  ;;  %v1000_v44 = vadd.f32 %v7522_v42, %v7722_v9 }
 0x1bc   :  { %v1287_v26 = vadd.f32 %v1286_v60, %v1238_v53  ;;  %v6027_v60 = vld [vmem:[#allocation2 + $0x1c0] sm:$0xf]  ;;  %v6029_v53 = vld [vmem:[#allocation2 + $0x1e0] sm:$0xf0] }
 0x1bd   :  { %v1190_v48 = vpop.f32.mrf.mxu0  ;;  %v1142_v39 = vadd.f32 %v7894_v31, %v1093_v34  ;;  %v1239_v29 = vpop.f32.mrf.mxu1 }
 0x1bf   :  { %v1191_v24 = vadd.f32 %v1190_v48, %v1142_v39 }
 0x1c0   :  { %v1322_v36 = vpop.f32.mrf.mxu3 }
 0x1c1   :  { %v1323_v52 = vadd.f32 %v1322_v36, %v1274_v16 }
 0x1c3   :  { %v1352_v59 = vmax.f32 %v1323_v52, 0.0  ;;  %v1288_v52 = vpop.f32.mrf.mxu2 }
 0x1c5   :  { %v1364_v62 = vpack.c.bf16 %v1352_v59, %v1351_v19  ;;  %v1193_v31 = vpop.f32.mrf.mxu0  ;;  %v1240_v19 = vadd.f32 %v1239_v29, %v1191_v24  ;;  %v1049_v59 = vadd.f32 %v7861_v55, %v1000_v44  ;;  %v1242_v46 = vpop.f32.mrf.mxu1  ;;  %v1570_v29 = vld [vmem:[%s10631_s1 + $0x8] sm:$0xff]  ;;  %v6393_v44 = vld [vmem:[#allocation2 + $0x1c4] sm:$0xf] }
 0x1c6   :  { %v1194_v9 = vadd.f32 %v1193_v31, %v7903_v37  ;;  %v6329_v37 = vld [vmem:[%s10636_s6] sm:$0xff]  ;;  %v6035_v31 = vld [vmem:[#allocation2 + $0x1c8] sm:$0xf] }
 0x1c7   :  { %1494 = vmatmul.bf16.gmra.mxu0 %v1364_v62  ;;  %1543 = vmatmul.bf16.gmra.mxu1 %v1364_v62  ;;  %v1289_v62 = vadd.f32 %v1288_v52, %v1240_v19 }
 0x1c8   :  { %v1325_v41 = vpop.f32.mrf.mxu3  ;;  %1732 = vmatpush.bf16.msra.mxu2 %v6329_v37  ;;  %v6003_v37 = vld [vmem:[#allocation2 + $0x188] sm:$0xf] }
 0x1c9   :  { %v1326_v43 = vadd.f32 %v1325_v41, %v1277_v38  ;;  %v1098_v41 = vadd.f32 %v7863_v61, %v1049_v59 }
 0x1cb   :  { %v1353_v25 = vmax.f32 %v1326_v43, 0.0  ;;  %v1291_v49 = vpop.f32.mrf.mxu2  ;;  %v1147_v58 = vadd.f32 %v7905_v51, %v1098_v41 }
 0x1cd   :  { %v1195_v42 = vpop.f32.mrf.mxu0  ;;  %v1244_v55 = vpop.f32.mrf.mxu1 }
 0x1ce   :  { %v1196_v45 = vadd.f32 %v1195_v42, %v1147_v58  ;;  %v6386_v42 = vld [vmem:[#allocation2 + $0x18c] sm:$0xf] }
 0x1d0   :  { %v1327_v14 = vpop.f32.mrf.mxu3  ;;  %v1245_v43 = vadd.f32 %v1244_v55, %v1196_v45  ;;  %v1571_v55 = vld [vmem:[%s10631_s1 + $0x10] sm:$0xff] }
 0x1d1   :  { %v1328_v50 = vadd.f32 %v1327_v14, %v1279_v2  ;;  %v1243_v2 = vadd.f32 %v1242_v46, %v1194_v9  ;;  %v6398_v46 = vld [vmem:[#allocation2 + $0x1e4] sm:$0xf0] }
 0x1d3   :  { %v1354_v11 = vmax.f32 %v1328_v50, 0.0  ;;  %v1293_v1 = vpop.f32.mrf.mxu2  ;;  %v1292_v14 = vadd.f32 %v1291_v49, %v1243_v2 }
 0x1d4   :  { %v1294_v61 = vadd.f32 %v1293_v1, %v1245_v43 }
 0x1d5   :  { %v1365_v18 = vpack.c.bf16 %v1354_v11, %v1353_v25 }
 0x1d7   :  { %1499 = vmatmul.bf16.gmra.mxu0 %v1365_v18  ;;  %1548 = vmatmul.bf16.gmra.mxu1 %v1365_v18  ;;  %v7968_v18 = vperm.slane %v1385_v7, 1 }
 0x1d8   :  { %v1330_v8 = vpop.f32.mrf.mxu3 }
 0x1d9   :  { %v1331_v13 = vadd.f32 %v1330_v8, %v1282_v23 }
 0x1db   :  { %v1355_v33 = vmax.f32 %v1331_v13, 0.0  ;;  %v6394_v13 = vld [vmem:[#allocation2 + $0x1cc] sm:$0xf] }
 0x1e0   :  { %v1332_v10 = vpop.f32.mrf.mxu3 }
 0x1e1   :  { %v1333_v27 = vadd.f32 %v1332_v10, %v1284_v4  ;;  %v6397_v4 = vld [vmem:[#allocation2 + $0x1dc] sm:$0xf0]  ;;  %v6037_v10 = vld [vmem:[#allocation2 + $0x1e8] sm:$0xf0] }
 0x1e2   :  { %v6028_v48 = vor.u32 %v6397_v4, %v6027_v60  ;;  %v6040_v39 = vor.u32 %v6394_v13, %v6037_v10  ;;  %v5963_v60 = vld [vmem:[#allocation2 + $0x140] sm:$0xf]  ;;  %v6378_v13 = vld [vmem:[#allocation2 + $0x14c] sm:$0xf] }
 0x1e3   :  { %v1356_v16 = vmax.f32 %v1333_v27, 0.0  ;;  %v1569_v27 = vld [vmem:[%s10631_s1] sm:$0xff]  ;;  %v5973_v10 = vld [vmem:[#allocation2 + $0x168] sm:$0xf0] }
 0x1e4   :  { %2200 = vmatpush.bf16.msrb.mxu3 %v6028_v48  ;;  %2347 = vmatpush.bf16.msrb.mxu2 %v6040_v39  ;;  %v6381_v4 = vld [vmem:[#allocation2 + $0x15c] sm:$0xf0]  ;;  %v5976_v39 = vor.u32 %v6378_v13, %v5973_v10  ;;  %v6362_v13 = vld [vmem:[#allocation2 + $0xcc] sm:$0xf] }
 0x1e5   :  { %v1366_v36 = vpack.c.bf16 %v1356_v16, %v1355_v33  ;;  %v5964_v48 = vor.u32 %v6381_v4, %v5963_v60  ;;  %v5899_v60 = vld [vmem:[#allocation2 + $0xc0] sm:$0xf]  ;;  %v5909_v10 = vld [vmem:[#allocation2 + $0xe8] sm:$0xf0] }
 0x1e6   :  { %v6365_v4 = vld [vmem:[#allocation2 + $0xdc] sm:$0xf0] }
 0x1e7   :  { %1504 = vmatmul.bf16.gmra.mxu0 %v1366_v36  ;;  %1553 = vmatmul.bf16.gmra.mxu1 %v1366_v36 }
 0x1e8   :  { %v1335_v40 = vpop.f32.mrf.mxu3 }
 0x1e9   :  { %v1336_v57 = vadd.f32 %v1335_v40, %v1287_v26  ;;  %v6032_v26 = vor.u32 %v6393_v44, %v6029_v53  ;;  %v6377_v44 = vld [vmem:[#allocation2 + $0x144] sm:$0xf] }
 0x1ea   :  { %v5965_v53 = vld [vmem:[#allocation2 + $0x160] sm:$0xf0] }
 0x1eb   :  { %v1357_v54 = vmax.f32 %v1336_v57, 0.0  ;;  %2249 = vmatpush.bf16.msrb.mxu0 %v6032_v26  ;;  %v5968_v26 = vor.u32 %v6377_v44, %v5965_v53  ;;  %v6361_v44 = vld [vmem:[#allocation2 + $0xc4] sm:$0xf] }
 0x1ec   :  { %v5901_v53 = vld [vmem:[#allocation2 + $0xe0] sm:$0xf0] }
 0x1f0   :  { %v1337_v35 = vpop.f32.mrf.mxu3 }
 0x1f1   :  { %v1338_v56 = vadd.f32 %v1337_v35, %v1289_v62  ;;  %v6036_v62 = vor.u32 %v6398_v46, %v6035_v31  ;;  %v5971_v31 = vld [vmem:[#allocation2 + $0x148] sm:$0xf] }
 0x1f2   :  { %v6382_v46 = vld [vmem:[#allocation2 + $0x164] sm:$0xf0] }
 0x1f3   :  { %v1358_v47 = vmax.f32 %v1338_v56, 0.0  ;;  %2298 = vmatpush.bf16.msrb.mxu1 %v6036_v62  ;;  %v5972_v62 = vor.u32 %v6382_v46, %v5971_v31  ;;  %v5907_v31 = vld [vmem:[#allocation2 + $0xc8] sm:$0xf] }
 0x1f4   :  { %v6366_v46 = vld [vmem:[#allocation2 + $0xe4] sm:$0xf0] }
 0x1f5   :  { %v1367_v3 = vpack.c.bf16 %v1358_v47, %v1357_v54  ;;  %v5995_v54 = vld [vmem:[#allocation2 + $0x180] sm:$0xf] }
 0x1f6   :  { %v6389_v47 = vld [vmem:[#allocation2 + $0x19c] sm:$0xf0] }
 0x1f7   :  { %1509 = vmatmul.bf16.gmra.mxu0 %v1367_v3  ;;  %1558 = vmatmul.bf16.gmra.mxu1 %v1367_v3  ;;  %v5996_v9 = vor.u32 %v6389_v47, %v5995_v54  ;;  %v6005_v3 = vld [vmem:[#allocation2 + $0x1a8] sm:$0xf0]  ;;  %v5931_v54 = vld [vmem:[#allocation2 + $0x100] sm:$0xf] }
 0x1f8   :  { %v1340_v38 = vpop.f32.mrf.mxu3  ;;  %v6373_v47 = vld [vmem:[#allocation2 + $0x11c] sm:$0xf0] }
 0x1f9   :  { %v1341_v17 = vadd.f32 %v1340_v38, %v1292_v14  ;;  %v6008_v38 = vor.u32 %v6386_v42, %v6005_v3  ;;  %2201 = vmatpush.bf16.msrb.mxu3 %v5996_v9  ;;  %v6370_v42 = vld [vmem:[#allocation2 + $0x10c] sm:$0xf]  ;;  %v5932_v9 = vor.u32 %v6373_v47, %v5931_v54  ;;  %v5867_v54 = vld [vmem:[#allocation2 + $0x80] sm:$0xf] }
 0x1fa   :  { %v5941_v3 = vld [vmem:[#allocation2 + $0x128] sm:$0xf0]  ;;  %v6357_v47 = vld [vmem:[#allocation2 + $0x9c] sm:$0xf0] }
 0x1fb   :  { %v1359_v51 = vmax.f32 %v1341_v17, 0.0  ;;  %2348 = vmatpush.bf16.msrb.mxu2 %v6008_v38  ;;  %v5944_v38 = vor.u32 %v6370_v42, %v5941_v3  ;;  %v6354_v42 = vld [vmem:[#allocation2 + $0x8c] sm:$0xf] }
 0x1fc   :  { %v5877_v3 = vld [vmem:[#allocation2 + $0xa8] sm:$0xf0] }
 0x1fd   :  { %2202 = vmatpush.bf16.msrb.mxu3 %v5964_v48  ;;  %v5900_v48 = vor.u32 %v6365_v4, %v5899_v60  ;;  %v6349_v60 = vld [vmem:[#allocation2 + $0x5c] sm:$0xf0]  ;;  %v6346_v4 = vld [vmem:[#allocation2 + $0x4c] sm:$0xf] }
 0x1ff   :  { %2349 = vmatpush.bf16.msrb.mxu2 %v5976_v39  ;;  %v5912_v39 = vor.u32 %v6362_v13, %v5909_v10  ;;  %v5845_v10 = vld [vmem:[#allocation2 + $0x68] sm:$0xf0] }
 0x200   :  { %v1342_v50 = vpop.f32.mrf.mxu3 }
 0x201   :  { %v1343_v20 = vadd.f32 %v1342_v50, %v1294_v61  ;;  %v1572_v61 = vld [vmem:[%s10631_s1 + $0x18] sm:$0xff]  ;;  %2203 = vmatpush.bf16.msrb.mxu3 %v5932_v9  ;;  %v5868_v9 = vor.u32 %v6357_v47, %v5867_v54 }
 0x203   :  { %v1360_v25 = vmax.f32 %v1343_v20, 0.0  ;;  %2350 = vmatpush.bf16.msrb.mxu2 %v5944_v38 }
 0x205   :  { %v1368_v11 = vpack.c.bf16 %v1360_v25, %v1359_v51  ;;  %v6385_v25 = vld [vmem:[#allocation2 + $0x184] sm:$0xf]  ;;  %2204 = vmatpush.bf16.msrb.mxu3 %v5900_v48 }
 0x207   :  { %1514 = vmatmul.bf16.gmra.mxu0 %v1368_v11  ;;  %1563 = vmatmul.bf16.gmra.mxu1 %v1368_v11  ;;  %v5997_v11 = vld [vmem:[#allocation2 + $0x1a0] sm:$0xf0] }
 0x208   :  { %2351 = vmatpush.bf16.msrb.mxu2 %v5912_v39  ;;  %v5837_v39 = vld [vmem:[#allocation2 + $0x60] sm:$0xf0] }
 0x209   :  { %2205 = vmatpush.bf16.msrb.mxu3 %v5868_v9 }
 0x214   :  { %v1480_v22 = vpop.f32.mrf.mxu0  ;;  %v1529_v63 = vpop.f32.mrf.mxu1 }
 0x215   :  { %v1481_v8 = vadd.f32 %v1480_v22, %v7966_v28  ;;  %v1530_v30 = vadd.f32 %v1529_v63, %v7968_v18  ;;  %v6000_v63 = vor.u32 %v6385_v25, %v5997_v11  ;;  %v6369_v25 = vld [vmem:[#allocation2 + $0x104] sm:$0xf] }
 0x216   :  { %v5933_v11 = vld [vmem:[#allocation2 + $0x120] sm:$0xf0] }
 0x217   :  { %5152 = vst [vmem:[%s10641_s11] sm:$0xff] %v1481_v8  ;;  %v1585_v0 = vmul.f32 1.442695, %v1530_v30  ;;  %2250 = vmatpush.bf16.msrb.mxu0 %v6000_v63  ;;  %v5936_v63 = vor.u32 %v6369_v25, %v5933_v11  ;;  %v1580_v11 = vld [vmem:[%s10631_s1 + $0x58] sm:$0xff] }
 0x218   :  { %5153 = vst [vmem:[%s10641_s11 + $0x8] sm:$0xff] %v1530_v30 }
 0x219   :  { %6430 = vpow2.f32 %v1585_v0 }
 0x21b   :  { %2251 = vmatpush.bf16.msrb.mxu0 %v5968_v26  ;;  %v5904_v26 = vor.u32 %v6361_v44, %v5901_v53  ;;  %v1581_v44 = vld [vmem:[%s10631_s1 + $0x60] sm:$0xff] }
 0x21c   :  { %v1482_v6 = vpop.f32.mrf.mxu0  ;;  %v1531_v21 = vpop.f32.mrf.mxu1 }
 0x21d   :  { %v1483_v5 = vadd.f32 %v1482_v6, %v7966_v28  ;;  %v1532_v12 = vadd.f32 %v1531_v21, %v7968_v18 }
 0x21f   :  { %5154 = vst [vmem:[%s10641_s11 + $0x10] sm:$0xff] %v1483_v5  ;;  %v1587_v23 = vmul.f32 1.442695, %v1532_v12  ;;  %v6431_v34 = vpop.eup %6430  ;;  %2252 = vmatpush.bf16.msrb.mxu0 %v5936_v63 }
 0x220   :  { %5155 = vst [vmem:[%s10641_s11 + $0x18] sm:$0xff] %v1532_v12  ;;  %v1617_v24 = vmul.f32 %v6431_v34, %v1569_v27  ;;  %v1573_v27 = vld [vmem:[%s10631_s1 + $0x20] sm:$0xff] }
 0x221   :  { %6432 = vpow2.f32 %v1587_v23 }
 0x222   :  { %v1633_v19 = vadd.f32 %v1617_v24, %v1481_v8  ;;  %v6390_v8 = vld [vmem:[#allocation2 + $0x1a4] sm:$0xf0] }
 0x223   :  { %v6004_v30 = vor.u32 %v6390_v8, %v6003_v37  ;;  %v5939_v37 = vld [vmem:[#allocation2 + $0x108] sm:$0xf]  ;;  %2253 = vmatpush.bf16.msrb.mxu0 %v5904_v26 }
 0x224   :  { %v1485_v33 = vpop.f32.mrf.mxu0  ;;  %v1534_v16 = vpop.f32.mrf.mxu1  ;;  %v6374_v8 = vld [vmem:[#allocation2 + $0x124] sm:$0xf0] }
 0x225   :  { %v1486_v15 = vadd.f32 %v1485_v33, %v7966_v28  ;;  %v1535_v36 = vadd.f32 %v1534_v16, %v7968_v18  ;;  %2299 = vmatpush.bf16.msrb.mxu1 %v6004_v30  ;;  %v5940_v30 = vor.u32 %v6374_v8, %v5939_v37 }
 0x227   :  { %v6433_v32 = vpop.eup %6432  ;;  %5156 = vst [vmem:[%s10641_s11 + $0x20] sm:$0xff] %v1486_v15  ;;  %v1589_v40 = vmul.f32 1.442695, %v1535_v36 }
 0x228   :  { %v1618_v52 = vmul.f32 %v6433_v32, %v1570_v29  ;;  %5157 = vst [vmem:[%s10641_s11 + $0x28] sm:$0xff] %v1535_v36  ;;  %v1574_v36 = vld [vmem:[%s10631_s1 + $0x28] sm:$0xff] }
 0x229   :  { %6434 = vpow2.f32 %v1589_v40  ;;  %2300 = vmatpush.bf16.msrb.mxu1 %v5972_v62  ;;  %v5908_v62 = vor.u32 %v6366_v46, %v5907_v31 }
 0x22a   :  { %v1634_v59 = vadd.f32 %v1618_v52, %v1483_v5 }
 0x22c   :  { %v1487_v57 = vpop.f32.mrf.mxu0  ;;  %v1536_v35 = vpop.f32.mrf.mxu1  ;;  %v1649_v41 = vpack.c.bf16 %v1634_v59, %v1633_v19 }
 0x22d   :  { %v1488_v56 = vadd.f32 %v1487_v57, %v7966_v28  ;;  %v1537_v49 = vadd.f32 %v1536_v35, %v7968_v18  ;;  %2301 = vmatpush.bf16.msrb.mxu1 %v5940_v30 }
 0x22e   :  { %1733 = vmatmul.bf16.vlgmr.msra.gmra.mxu2 %v1649_v41 }
 0x22f   :  { %5158 = vst [vmem:[%s10641_s11 + $0x30] sm:$0xff] %v1488_v56  ;;  %v1591_v58 = vmul.f32 1.442695, %v1537_v49  ;;  %v6435_v45 = vpop.eup %6434 }
 0x230   :  { %5159 = vst [vmem:[%s10641_s11 + $0x38] sm:$0xff] %v1537_v49  ;;  %v1619_v17 = vmul.f32 %v6435_v45, %v1571_v55  ;;  %v1575_v55 = vld [vmem:[%s10631_s1 + $0x30] sm:$0xff] }
 0x231   :  { %6436 = vpow2.f32 %v1591_v58  ;;  %2302 = vmatpush.bf16.msrb.mxu1 %v5908_v62  ;;  %v1582_v62 = vld [vmem:[%s10631_s1 + $0x68] sm:$0xff] }
 0x232   :  { %v1635_v7 = vadd.f32 %v1619_v17, %v1486_v15 }
 0x234   :  { %v1490_v2 = vpop.f32.mrf.mxu0  ;;  %v1539_v43 = vpop.f32.mrf.mxu1 }
 0x235   :  { %v1491_v1 = vadd.f32 %v1490_v2, %v7966_v28  ;;  %v1540_v14 = vadd.f32 %v1539_v43, %v7968_v18 }
 0x237   :  { %v6437_v50 = vpop.eup %6436  ;;  %5160 = vst [vmem:[%s10641_s11 + $0x40] sm:$0xff] %v1491_v1  ;;  %v1593_v20 = vmul.f32 1.442695, %v1540_v14 }
 0x238   :  { %5161 = vst [vmem:[%s10641_s11 + $0x48] sm:$0xff] %v1540_v14  ;;  %v1620_v51 = vmul.f32 %v6437_v50, %v1572_v61  ;;  %v1576_v61 = vld [vmem:[%s10631_s1 + $0x38] sm:$0xff] }
 0x239   :  { %6438 = vpow2.f32 %v1593_v20 }
 0x23a   :  { %v1636_v22 = vadd.f32 %v1620_v51, %v1488_v56 }
 0x23c   :  { %v1492_v0 = vpop.f32.mrf.mxu0  ;;  %v1541_v6 = vpop.f32.mrf.mxu1  ;;  %v1650_v21 = vpack.c.bf16 %v1636_v22, %v1635_v7 }
 0x23d   :  { %v1493_v5 = vadd.f32 %v1492_v0, %v7966_v28  ;;  %v1542_v12 = vadd.f32 %v1541_v6, %v7968_v18 }
 0x23e   :  { %1738 = vmatmul.bf16.gmra.mxu2 %v1650_v21 }
 0x23f   :  { %5162 = vst [vmem:[%s10641_s11 + $0x50] sm:$0xff] %v1493_v5  ;;  %v1595_v23 = vmul.f32 1.442695, %v1542_v12  ;;  %v6439_v34 = vpop.eup %6438 }
 0x240   :  { %5163 = vst [vmem:[%s10641_s11 + $0x58] sm:$0xff] %v1542_v12  ;;  %v1621_v24 = vmul.f32 %v6439_v34, %v1573_v27  ;;  %v1577_v27 = vld [vmem:[%s10631_s1 + $0x40] sm:$0xff] }
 0x241   :  { %6440 = vpow2.f32 %v1595_v23 }
 0x242   :  { %v1637_v19 = vadd.f32 %v1621_v24, %v1491_v1 }
 0x244   :  { %v1495_v33 = vpop.f32.mrf.mxu0  ;;  %v1544_v16 = vpop.f32.mrf.mxu1 }
 0x245   :  { %v1496_v29 = vadd.f32 %v1495_v33, %v7966_v28  ;;  %v1545_v15 = vadd.f32 %v1544_v16, %v7968_v18 }
 0x247   :  { %v6441_v32 = vpop.eup %6440  ;;  %5164 = vst [vmem:[%s10641_s11 + $0x60] sm:$0xff] %v1496_v29  ;;  %v1597_v52 = vmul.f32 1.442695, %v1545_v15 }
 0x248   :  { %5165 = vst [vmem:[%s10641_s11 + $0x68] sm:$0xff] %v1545_v15  ;;  %v1622_v40 = vmul.f32 %v6441_v32, %v1574_v36  ;;  %v1578_v36 = vld [vmem:[%s10631_s1 + $0x48] sm:$0xff] }
 0x249   :  { %6442 = vpow2.f32 %v1597_v52 }
 0x24a   :  { %v1638_v59 = vadd.f32 %v1622_v40, %v1493_v5 }
 0x24c   :  { %v1497_v57 = vpop.f32.mrf.mxu0  ;;  %v1546_v35 = vpop.f32.mrf.mxu1  ;;  %v1651_v41 = vpack.c.bf16 %v1638_v59, %v1637_v19 }
 0x24d   :  { %v1498_v56 = vadd.f32 %v1497_v57, %v7966_v28  ;;  %v1547_v49 = vadd.f32 %v1546_v35, %v7968_v18 }
 0x24e   :  { %1743 = vmatmul.bf16.gmra.mxu2 %v1651_v41 }
 0x24f   :  { %5166 = vst [vmem:[%s10641_s11 + $0x70] sm:$0xff] %v1498_v56  ;;  %v1599_v58 = vmul.f32 1.442695, %v1547_v49  ;;  %v6443_v45 = vpop.eup %6442 }
 0x250   :  { %5167 = vst [vmem:[%s10641_s11 + $0x78] sm:$0xff] %v1547_v49  ;;  %v1623_v17 = vmul.f32 %v6443_v45, %v1575_v55  ;;  %v6353_v45 = vld [vmem:[#allocation2 + $0x84] sm:$0xf] }
 0x251   :  { %6444 = vpow2.f32 %v1599_v58  ;;  %v5869_v55 = vld [vmem:[#allocation2 + $0xa0] sm:$0xf0] }
 0x252   :  { %v1639_v7 = vadd.f32 %v1623_v17, %v1496_v29 }
 0x254   :  { %v1500_v2 = vpop.f32.mrf.mxu0  ;;  %v1549_v43 = vpop.f32.mrf.mxu1 }
 0x255   :  { %v1501_v1 = vadd.f32 %v1500_v2, %v7966_v28  ;;  %v1550_v14 = vadd.f32 %v1549_v43, %v7968_v18  ;;  %v1579_v2 = vld [vmem:[%s10631_s1 + $0x50] sm:$0xff]  ;;  %v5880_v43 = vor.u32 %v6354_v42, %v5877_v3 }
 0x257   :  { %v6445_v50 = vpop.eup %6444  ;;  %5168 = vst [vmem:[%s10641_s11 + $0x80] sm:$0xff] %v1501_v1  ;;  %v1601_v20 = vmul.f32 1.442695, %v1550_v14  ;;  %2352 = vmatpush.bf16.msrb.mxu2 %v5880_v43  ;;  %v5811_v43 = vld [vmem:[#allocation2 + $0x8] sm:$0xf] }
 0x258   :  { %5169 = vst [vmem:[%s10641_s11 + $0x88] sm:$0xff] %v1550_v14  ;;  %v1624_v51 = vmul.f32 %v6445_v50, %v1576_v61  ;;  %v5875_v14 = vld [vmem:[#allocation2 + $0x88] sm:$0xf] }
 0x259   :  { %6446 = vpow2.f32 %v1601_v20  ;;  %v6358_v61 = vld [vmem:[#allocation2 + $0xa4] sm:$0xf0] }
 0x25a   :  { %v1640_v22 = vadd.f32 %v1624_v51, %v1498_v56  ;;  %v5876_v20 = vor.u32 %v6358_v61, %v5875_v14  ;;  %v6342_v14 = vld [vmem:[#allocation2 + $0x24] sm:$0xf0] }
 0x25c   :  { %v1502_v0 = vpop.f32.mrf.mxu0  ;;  %v1551_v6 = vpop.f32.mrf.mxu1  ;;  %v1652_v21 = vpack.c.bf16 %v1640_v22, %v1639_v7  ;;  %2303 = vmatpush.bf16.msrb.mxu1 %v5876_v20 }
 0x25d   :  { %v1503_v5 = vadd.f32 %v1502_v0, %v7966_v28  ;;  %v1552_v12 = vadd.f32 %v1551_v6, %v7968_v18 }
 0x25e   :  { %1748 = vmatmul.bf16.gmra.mxu2 %v1652_v21 }
 0x25f   :  { %5170 = vst [vmem:[%s10641_s11 + $0x90] sm:$0xff] %v1503_v5  ;;  %v1603_v23 = vmul.f32 1.442695, %v1552_v12  ;;  %v6447_v34 = vpop.eup %6446 }
 0x260   :  { %5171 = vst [vmem:[%s10641_s11 + $0x98] sm:$0xff] %v1552_v12  ;;  %v1625_v24 = vmul.f32 %v6447_v34, %v1577_v27  ;;  %v5848_v34 = vor.u32 %v6346_v4, %v5845_v10  ;;  %v6345_v27 = vld [vmem:[#allocation2 + $0x44] sm:$0xf]  ;;  %v6011_v4 = vld [vmem:[#allocation2 + $0x190] sm:$0xf] }
 0x261   :  { %6448 = vpow2.f32 %v1603_v23  ;;  %v5835_v23 = vld [vmem:[#allocation2 + $0x40] sm:$0xf] }
 0x262   :  { %v1641_v19 = vadd.f32 %v1625_v24, %v1501_v1  ;;  %v5872_v1 = vor.u32 %v6353_v45, %v5869_v55  ;;  %v5836_v48 = vor.u32 %v6349_v60, %v5835_v23  ;;  %2353 = vmatpush.bf16.msrb.mxu2 %v5848_v34  ;;  %v6341_v24 = vld [vmem:[#allocation2 + $0x1c] sm:$0xf0]  ;;  %v6021_v34 = vld [vmem:[#allocation2 + $0x1b8] sm:$0xf0] }
 0x264   :  { %v1505_v33 = vpop.f32.mrf.mxu0  ;;  %v1554_v16 = vpop.f32.mrf.mxu1  ;;  %2254 = vmatpush.bf16.msrb.mxu0 %v5872_v1  ;;  %2206 = vmatpush.bf16.msrb.mxu3 %v5836_v48  ;;  %v6388_v48 = vld [vmem:[#allocation2 + $0x19c] sm:$0xf] }
 0x265   :  { %v1506_v29 = vadd.f32 %v1505_v33, %v7966_v28  ;;  %v1555_v15 = vadd.f32 %v1554_v16, %v7968_v18  ;;  %v5840_v33 = vor.u32 %v6345_v27, %v5837_v39  ;;  %v5843_v16 = vld [vmem:[#allocation2 + $0x48] sm:$0xf]  ;;  %v6024_v27 = vor.u32 %v6388_v48, %v6021_v34  ;;  %v8149_v39 = vld [vmem:[%s10637_s7] ss:$0 sm:$0xff]  ;;  %v6368_v34 = vld [vmem:[#allocation2 + $0xf4] sm:$0xf0] }
 0x267   :  { %v6449_v32 = vpop.eup %6448  ;;  %5172 = vst [vmem:[%s10641_s11 + $0xa0] sm:$0xff] %v1506_v29  ;;  %v1605_v52 = vmul.f32 1.442695, %v1555_v15 }
 0x268   :  { %5173 = vst [vmem:[%s10641_s11 + $0xa8] sm:$0xff] %v1555_v15  ;;  %v1626_v40 = vmul.f32 %v6449_v32, %v1578_v36  ;;  %v5803_v15 = vld [vmem:[#allocation2] sm:$0xf]  ;;  %v6338_v32 = vld [vmem:[#allocation2 + $0xc] sm:$0xf]  ;;  %2255 = vmatpush.bf16.msrb.mxu0 %v5840_v33 }
 0x269   :  { %6450 = vpow2.f32 %v1605_v52  ;;  %v5813_v52 = vld [vmem:[#allocation2 + $0x28] sm:$0xf0]  ;;  %v5804_v53 = vor.u32 %v6341_v24, %v5803_v15  ;;  %v6387_v33 = vld [vmem:[#allocation2 + $0x194] sm:$0xf]  ;;  %v6019_v15 = vld [vmem:[#allocation2 + $0x198] sm:$0xf] }
 0x26a   :  { %v1642_v59 = vadd.f32 %v1626_v40, %v1503_v5  ;;  %v5816_v31 = vor.u32 %v6338_v32, %v5813_v52 }
 0x26b   :  { %2207 = vmatpush.bf16.msrb.mxu3 %v5804_v53 }
 0x26c   :  { %v1507_v57 = vpop.f32.mrf.mxu0  ;;  %v1556_v35 = vpop.f32.mrf.mxu1  ;;  %v1653_v41 = vpack.c.bf16 %v1642_v59, %v1641_v19  ;;  %2354 = vmatpush.bf16.msrb.mxu2 %v5816_v31 }
 0x26d   :  { %v1508_v56 = vadd.f32 %v1507_v57, %v7966_v28  ;;  %v1557_v49 = vadd.f32 %v1556_v35, %v7968_v18 }
 0x26e   :  { %1753 = vmatmul.bf16.gmra.mxu2 %v1653_v41 }
 0x26f   :  { %5174 = vst [vmem:[%s10641_s11 + $0xb0] sm:$0xff] %v1508_v56  ;;  %v1607_v58 = vmul.f32 1.442695, %v1557_v49  ;;  %v6451_v38 = vpop.eup %6450 }
 0x270   :  { %5175 = vst [vmem:[%s10641_s11 + $0xb8] sm:$0xff] %v1557_v49  ;;  %v1627_v37 = vmul.f32 %v6451_v38, %v1579_v2  ;;  %v1583_v38 = vld [vmem:[%s10631_s1 + $0x70] sm:$0xff]  ;;  %v6337_v2 = vld [vmem:[#allocation2 + $0x4] sm:$0xf] }
 0x271   :  { %6452 = vpow2.f32 %v1607_v58 }
 0x272   :  { %v1643_v8 = vadd.f32 %v1627_v37, %v1506_v29  ;;  %v6350_v29 = vld [vmem:[#allocation2 + $0x64] sm:$0xf0]  ;;  %v6043_v37 = vld [vmem:[#allocation2 + $0x1d0] sm:$0xf] }
 0x273   :  { %v5844_v36 = vor.u32 %v6350_v29, %v5843_v16  ;;  %v6013_v16 = vld [vmem:[#allocation2 + $0x1b0] sm:$0xf0] }
 0x274   :  { %v1510_v17 = vpop.f32.mrf.mxu0  ;;  %v1559_v50 = vpop.f32.mrf.mxu1  ;;  %v6016_v29 = vor.u32 %v6387_v33, %v6013_v16 }
 0x275   :  { %v1511_v51 = vadd.f32 %v1510_v17, %v7966_v28  ;;  %v1560_v25 = vadd.f32 %v1559_v50, %v7968_v18  ;;  %2304 = vmatpush.bf16.msrb.mxu1 %v5844_v36  ;;  %v5812_v17 = vor.u32 %v6342_v14, %v5811_v43  ;;  %v6392_v36 = vld [vmem:[#allocation2 + $0x1b4] sm:$0xf0]  ;;  %v6375_v43 = vld [vmem:[#allocation2 + $0x12c] sm:$0xf0]  ;;  %v5957_v14 = vld [vmem:[#allocation2 + $0x138] sm:$0xf0] }
 0x276   :  { %v6020_v24 = vor.u32 %v6392_v36, %v6019_v15 }
 0x277   :  { %v6453_v7 = vpop.eup %6452  ;;  %5176 = vst [vmem:[%s10641_s11 + $0xc0] sm:$0xff] %v1511_v51  ;;  %v1609_v63 = vmul.f32 1.442695, %v1560_v25 }
 0x278   :  { %5177 = vst [vmem:[%s10641_s11 + $0xc8] sm:$0xff] %v1560_v25  ;;  %v1628_v22 = vmul.f32 %v6453_v7, %v1580_v11  ;;  %v6399_v7 = vld [vmem:[#allocation2 + $0x1ec] sm:$0xf0] }
 0x279   :  { %6454 = vpow2.f32 %v1609_v63  ;;  %2305 = vmatpush.bf16.msrb.mxu1 %v5812_v17  ;;  %v6044_v63 = vor.u32 %v6399_v7, %v6043_v37  ;;  %v6371_v17 = vld [vmem:[#allocation2 + $0x114] sm:$0xf] }
 0x27a   :  { %v1644_v30 = vadd.f32 %v1628_v22, %v1508_v56  ;;  %v6396_v22 = vld [vmem:[#allocation2 + $0x1dc] sm:$0xf] }
 0x27b   :  { %2396 = vmatpush.bf16.msra.mxu3 %v6044_v63 }
 0x27c   :  { %v1512_v0 = vpop.f32.mrf.mxu0  ;;  %v1561_v6 = vpop.f32.mrf.mxu1  ;;  %v1654_v21 = vpack.c.bf16 %v1644_v30, %v1643_v8  ;;  %v6053_v8 = vld [vmem:[#allocation2 + $0x1f8] sm:$0xf0] }
 0x27d   :  { %v1513_v5 = vadd.f32 %v1512_v0, %v7966_v28  ;;  %v1562_v12 = vadd.f32 %v1561_v6, %v7968_v18  ;;  %v6056_v30 = vor.u32 %v6396_v22, %v6053_v8  ;;  %v6395_v0 = vld [vmem:[#allocation2 + $0x1d4] sm:$0xf] }
 0x27e   :  { %1758 = vmatmul.bf16.gmra.mxu2 %v1654_v21  ;;  %v6045_v6 = vld [vmem:[#allocation2 + $0x1f0] sm:$0xf0]  ;;  %v6051_v21 = vld [vmem:[#allocation2 + $0x1d8] sm:$0xf] }
 0x27f   :  { %5178 = vst [vmem:[%s10641_s11 + $0xd0] sm:$0xff] %v1513_v5  ;;  %v1611_v13 = vmul.f32 1.442695, %v1562_v12  ;;  %v6455_v40 = vpop.eup %6454  ;;  %2543 = vmatpush.bf16.msra.mxu2 %v6056_v30 }
 0x280   :  { %5179 = vst [vmem:[%s10641_s11 + $0xd8] sm:$0xff] %v1562_v12  ;;  %v1629_v57 = vmul.f32 %v6455_v40, %v1581_v44  ;;  %v6400_v12 = vld [vmem:[#allocation2 + $0x1f4] sm:$0xf0] }
 0x281   :  { %6456 = vpow2.f32 %v1611_v13  ;;  %v6052_v23 = vor.u32 %v6400_v12, %v6051_v21  ;;  %v6391_v13 = vld [vmem:[#allocation2 + $0x1ac] sm:$0xf0] }
 0x282   :  { %v1645_v49 = vadd.f32 %v1629_v57, %v1511_v51  ;;  %v6012_v10 = vor.u32 %v6391_v13, %v6011_v4  ;;  %v5989_v57 = vld [vmem:[#allocation2 + $0x178] sm:$0xf0]  ;;  %v6367_v21 = vld [vmem:[#allocation2 + $0xec] sm:$0xf0]  ;;  %v6363_v4 = vld [vmem:[#allocation2 + $0xd4] sm:$0xf] }
 0x283   :  { %2494 = vmatpush.bf16.msra.mxu1 %v6052_v23  ;;  %2544 = vmatpush.bf16.msra.mxu2 %v6024_v27  ;;  %v5925_v23 = vld [vmem:[#allocation2 + $0xf8] sm:$0xf0]  ;;  %v5917_v13 = vld [vmem:[#allocation2 + $0xf0] sm:$0xf0] }
 0x284   :  { %v1515_v19 = vpop.f32.mrf.mxu0  ;;  %v1564_v59 = vpop.f32.mrf.mxu1  ;;  %2397 = vmatpush.bf16.msra.mxu3 %v6012_v10  ;;  %v5920_v48 = vor.u32 %v6363_v4, %v5917_v13  ;;  %v5923_v10 = vld [vmem:[#allocation2 + $0xd8] sm:$0xf] }
 0x285   :  { %v1516_v26 = vadd.f32 %v1515_v19, %v7966_v28  ;;  %v1565_v46 = vadd.f32 %v1564_v59, %v7968_v18  ;;  %v5979_v59 = vld [vmem:[#allocation2 + $0x150] sm:$0xf]  ;;  %v5924_v27 = vor.u32 %v6368_v34, %v5923_v10  ;;  %v5827_v4 = vld [vmem:[#allocation2 + $0x18] sm:$0xf] }
 0x286   :  { %v6344_v13 = vld [vmem:[#allocation2 + $0x34] sm:$0xf0] }
 0x287   :  { %v6457_v35 = vpop.eup %6456  ;;  %5180 = vst [vmem:[%s10641_s11 + $0xe0] sm:$0xff] %v1516_v26  ;;  %v1613_v56 = vmul.f32 1.442695, %v1565_v46  ;;  %2495 = vmatpush.bf16.msra.mxu1 %v6020_v24 }
 0x288   :  { %5181 = vst [vmem:[%s10641_s11 + $0xe8] sm:$0xff] %v1565_v46  ;;  %v1630_v41 = vmul.f32 %v6457_v35, %v1582_v62  ;;  %v6380_v46 = vld [vmem:[#allocation2 + $0x15c] sm:$0xf] }
 0x289   :  { %6458 = vpow2.f32 %v1613_v56  ;;  %v5992_v35 = vor.u32 %v6380_v46, %v5989_v57  ;;  %v5981_v56 = vld [vmem:[#allocation2 + $0x170] sm:$0xf0]  ;;  %v5891_v57 = vld [vmem:[#allocation2 + $0x98] sm:$0xf] }
 0x28a   :  { %v1646_v58 = vadd.f32 %v1630_v41, %v1513_v5  ;;  %v6048_v5 = vor.u32 %v6395_v0, %v6045_v6  ;;  %v6379_v41 = vld [vmem:[#allocation2 + $0x154] sm:$0xf]  ;;  %v5915_v6 = vld [vmem:[#allocation2 + $0xd0] sm:$0xf] }
 0x28b   :  { %2545 = vmatpush.bf16.msra.mxu2 %v5992_v35  ;;  %v5916_v12 = vor.u32 %v6367_v21, %v5915_v6  ;;  %v5885_v46 = vld [vmem:[#allocation2 + $0xb0] sm:$0xf0]  ;;  %v6360_v35 = vld [vmem:[#allocation2 + $0xb4] sm:$0xf0]  ;;  %v5829_v21 = vld [vmem:[#allocation2 + $0x38] sm:$0xf0] }
 0x28c   :  { %v1517_v54 = vpop.f32.mrf.mxu0  ;;  %v1566_v47 = vpop.f32.mrf.mxu1  ;;  %v1655_v42 = vpack.c.bf16 %v1646_v58, %v1645_v49  ;;  %v5984_v49 = vor.u32 %v6379_v41, %v5981_v56  ;;  %v5987_v58 = vld [vmem:[#allocation2 + $0x158] sm:$0xf]  ;;  %v5892_v41 = vor.u32 %v6360_v35, %v5891_v57 }
 0x28d   :  { %v1518_v9 = vadd.f32 %v1517_v54, %v7966_v28  ;;  %v1567_v3 = vadd.f32 %v1566_v47, %v7968_v18  ;;  %v5805_v28 = vld [vmem:[#allocation2 + $0x20] sm:$0xf0]  ;;  %v1584_v18 = vld [vmem:[%s10631_s1 + $0x78] sm:$0xff] }
 0x28e   :  { %1763 = vmatmul.bf16.gmra.mxu2 %v1655_v42  ;;  %v5808_v1 = vor.u32 %v6337_v2, %v5805_v28  ;;  %v6384_v54 = vld [vmem:[#allocation2 + $0x174] sm:$0xf0]  ;;  %v5947_v28 = vld [vmem:[#allocation2 + $0x110] sm:$0xf] }
 0x28f   :  { %5182 = vst [vmem:[%s10641_s11 + $0xf0] sm:$0xff] %v1518_v9  ;;  %v1615_v45 = vmul.f32 1.442695, %v1567_v3  ;;  %v6459_v55 = vpop.eup %6458  ;;  %v5988_v47 = vor.u32 %v6384_v54, %v5987_v58 }
 0x290   :  { %5183 = vst [vmem:[%s10641_s11 + $0xf8] sm:$0xff] %v1567_v3  ;;  %v1631_v61 = vmul.f32 %v6459_v55, %v1583_v38  ;;  %2256 = vmatpush.bf16.msrb.mxu0 %v5808_v1  ;;  %v5948_v1 = vor.u32 %v6375_v43, %v5947_v28  ;;  %v5861_v28 = vld [vmem:[#allocation2 + $0x78] sm:$0xf0] }
 0x291   :  { %6460 = vpow2.f32 %v1615_v45  ;;  %2496 = vmatpush.bf16.msra.mxu1 %v5988_v47 }
 0x292   :  { %v1647_v51 = vadd.f32 %v1631_v61, %v1516_v26  ;;  %v6383_v26 = vld [vmem:[#allocation2 + $0x16c] sm:$0xf0] }
 0x293   :  { %v5980_v62 = vor.u32 %v6383_v26, %v5979_v59  ;;  %v6355_v26 = vld [vmem:[#allocation2 + $0x94] sm:$0xf] }
 0x294   :  { %2445 = vmatpush.bf16.msra.mxu0 %v6048_v5  ;;  %v6364_v5 = vld [vmem:[#allocation2 + $0xdc] sm:$0xf] }
 0x295   :  { %2398 = vmatpush.bf16.msra.mxu3 %v5980_v62  ;;  %v5888_v62 = vor.u32 %v6355_v26, %v5885_v46 }
 0x297   :  { %v6461_v50 = vpop.eup %6460 }
 0x298   :  { %v1632_v20 = vmul.f32 %v6461_v50, %v1584_v18  ;;  %2446 = vmatpush.bf16.msra.mxu0 %v6016_v29  ;;  %v6372_v18 = vld [vmem:[#allocation2 + $0x11c] sm:$0xf]  ;;  %v5949_v50 = vld [vmem:[#allocation2 + $0x130] sm:$0xf0] }
 0x299   :  { %v5960_v61 = vor.u32 %v6372_v18, %v5957_v14  ;;  %2399 = vmatpush.bf16.msra.mxu3 %v5948_v1  ;;  %v6347_v18 = vld [vmem:[#allocation2 + $0x54] sm:$0xf] }
 0x29a   :  { %v1648_v25 = vadd.f32 %v1632_v20, %v1518_v9  ;;  %v5952_v20 = vor.u32 %v6371_v17, %v5949_v50  ;;  %v5853_v1 = vld [vmem:[#allocation2 + $0x70] sm:$0xf0]  ;;  %v6352_v17 = vld [vmem:[#allocation2 + $0x74] sm:$0xf0] }
 0x29b   :  { %2546 = vmatpush.bf16.msra.mxu2 %v5960_v61  ;;  %v5856_v14 = vor.u32 %v6347_v18, %v5853_v1  ;;  %v5859_v61 = vld [vmem:[#allocation2 + $0x58] sm:$0xf] }
 0x29c   :  { %v1656_v11 = vpack.c.bf16 %v1648_v25, %v1647_v51  ;;  %2447 = vmatpush.bf16.msra.mxu0 %v5984_v49  ;;  %v5955_v51 = vld [vmem:[#allocation2 + $0x118] sm:$0xf]  ;;  %v5860_v50 = vor.u32 %v6352_v17, %v5859_v61 }
 0x29d   :  { %v6376_v25 = vld [vmem:[#allocation2 + $0x134] sm:$0xf0]  ;;  %2400 = vmatpush.bf16.msra.mxu3 %v5916_v12  ;;  %v5821_v12 = vld [vmem:[#allocation2 + $0x30] sm:$0xf0] }
 0x29e   :  { %1768 = vmatmul.bf16.gmra.mxu2 %v1656_v11  ;;  %v5956_v11 = vor.u32 %v6376_v25, %v5955_v51 }
 0x2a0   :  { %2448 = vmatpush.bf16.msra.mxu0 %v5952_v20  ;;  %2497 = vmatpush.bf16.msra.mxu1 %v5956_v11 }
 0x2a4   :  { %2449 = vmatpush.bf16.msra.mxu0 %v5920_v48  ;;  %2498 = vmatpush.bf16.msra.mxu1 %v5924_v27  ;;  %v5828_v48 = vor.u32 %v6344_v13, %v5827_v4 }
 0x2a8   :  { %2450 = vmatpush.bf16.msra.mxu0 %v5888_v62  ;;  %2499 = vmatpush.bf16.msra.mxu1 %v5892_v41 }
 0x2ac   :  { %2451 = vmatpush.bf16.msra.mxu0 %v5856_v14  ;;  %2500 = vmatpush.bf16.msra.mxu1 %v5860_v50 }
 0x2b0   :  { %2501 = vmatpush.bf16.msra.mxu1 %v5828_v48 }
 0x2b1   :  { %v1734_v60 = vpop.f32.mrf.mxu2 }
 0x2b2   :  { %v1735_v32 = vadd.f32 %v8149_v39, %v1734_v60  ;;  %v5928_v60 = vor.u32 %v6364_v5, %v5925_v23  ;;  %v6339_v5 = vld [vmem:[#allocation2 + $0x14] sm:$0xf] }
 0x2b4   :  { %v1774_v44 = vmax.f32 %v1735_v32, 0.0  ;;  %2547 = vmatpush.bf16.msra.mxu2 %v5928_v60  ;;  %v5824_v60 = vor.u32 %v6339_v5, %v5821_v12 }
 0x2b6   :  { %2452 = vmatpush.bf16.msra.mxu0 %v5824_v60 }
 0x2b9   :  { %v1736_v52 = vpop.f32.mrf.mxu2 }
 0x2ba   :  { %v1737_v40 = vadd.f32 %v8149_v39, %v1736_v52  ;;  %v5883_v52 = vld [vmem:[#allocation2 + $0x90] sm:$0xf] }
 0x2bc   :  { %v1775_v53 = vmax.f32 %v1737_v40, 0.0  ;;  %v6359_v40 = vld [vmem:[#allocation2 + $0xac] sm:$0xf0] }
 0x2be   :  { %v8153_v31 = vpack.c.bf16 %v1775_v53, %v1774_v44  ;;  %v6356_v44 = vld [vmem:[#allocation2 + $0x9c] sm:$0xf]  ;;  %v5884_v53 = vor.u32 %v6359_v40, %v5883_v52 }
 0x2c0   :  { %2208 = vmatmul.bf16.vlgmr.msrb.gmra.mxu3 %v8153_v31  ;;  %2257 = vmatmul.bf16.vlgmr.msrb.gmra.mxu0 %v8153_v31 }
 0x2c1   :  { %2306 = vmatmul.bf16.vlgmr.msrb.gmra.mxu1 %v8153_v31  ;;  %2355 = vmatmul.bf16.vlgmr.msrb.gmra.mxu2 %v8153_v31  ;;  %v1739_v19 = vpop.f32.mrf.mxu2 }
 0x2c2   :  { %v1740_v42 = vadd.f32 %v8149_v39, %v1739_v19  ;;  %v5893_v19 = vld [vmem:[#allocation2 + $0xb8] sm:$0xf0]  ;;  %2401 = vmatpush.bf16.msra.mxu3 %v5884_v53 }
 0x2c3   :  { %v5896_v59 = vor.u32 %v6356_v44, %v5893_v19  ;;  %v1862_v19 = vld [vmem:[%s10639_s9] sm:$0xff] }
 0x2c4   :  { %v1776_v45 = vmax.f32 %v1740_v42, 0.0  ;;  %v8220_v26 = vperm.slane %v1862_v19, 2  ;;  %v8226_v41 = vperm.slane %v1862_v19, 0 }
 0x2c5   :  { %2548 = vmatpush.bf16.msra.mxu2 %v5896_v59  ;;  %v8218_v59 = vperm.slane %v1862_v19, 1 }
 0x2c9   :  { %v1741_v9 = vpop.f32.mrf.mxu2 }
 0x2ca   :  { %v1742_v3 = vadd.f32 %v8149_v39, %v1741_v9 }
 0x2cc   :  { %v1777_v55 = vmax.f32 %v1742_v3, 0.0  ;;  %v5851_v3 = vld [vmem:[#allocation2 + $0x50] sm:$0xf] }
 0x2ce   :  { %v8161_v38 = vpack.c.bf16 %v1777_v55, %v1776_v45  ;;  %v6351_v45 = vld [vmem:[#allocation2 + $0x6c] sm:$0xf0]  ;;  %v6348_v55 = vld [vmem:[#allocation2 + $0x5c] sm:$0xf] }
 0x2cf   :  { %v5864_v43 = vor.u32 %v6348_v55, %v5861_v28 }
 0x2d0   :  { %2213 = vmatmul.bf16.gmra.mxu3 %v8161_v38  ;;  %2262 = vmatmul.bf16.gmra.mxu0 %v8161_v38 }
 0x2d1   :  { %2311 = vmatmul.bf16.gmra.mxu1 %v8161_v38  ;;  %2360 = vmatmul.bf16.gmra.mxu2 %v8161_v38  ;;  %v1744_v2 = vpop.f32.mrf.mxu2 }
 0x2d2   :  { %v1745_v37 = vadd.f32 %v8149_v39, %v1744_v2  ;;  %v5852_v2 = vor.u32 %v6351_v45, %v5851_v3  ;;  %2549 = vmatpush.bf16.msra.mxu2 %v5864_v43 }
 0x2d4   :  { %v1778_v63 = vmax.f32 %v1745_v37, 0.0  ;;  %2402 = vmatpush.bf16.msra.mxu3 %v5852_v2 }
 0x2d9   :  { %v1746_v7 = vpop.f32.mrf.mxu2 }
 0x2da   :  { %v1747_v22 = vadd.f32 %v8149_v39, %v1746_v7 }
 0x2dc   :  { %v1779_v8 = vmax.f32 %v1747_v22, 0.0 }
 0x2de   :  { %v8169_v30 = vpack.c.bf16 %v1779_v8, %v1778_v63  ;;  %v5819_v63 = vld [vmem:[#allocation2 + $0x10] sm:$0xf] }
 0x2df   :  { %v6343_v8 = vld [vmem:[#allocation2 + $0x2c] sm:$0xf0] }
 0x2e0   :  { %2218 = vmatmul.bf16.gmra.mxu3 %v8169_v30  ;;  %2267 = vmatmul.bf16.gmra.mxu0 %v8169_v30  ;;  %v5820_v6 = vor.u32 %v6343_v8, %v5819_v63 }
 0x2e1   :  { %2316 = vmatmul.bf16.gmra.mxu1 %v8169_v30  ;;  %2365 = vmatmul.bf16.gmra.mxu2 %v8169_v30  ;;  %v1749_v0 = vpop.f32.mrf.mxu2 }
 0x2e2   :  { %v1750_v33 = vadd.f32 %v8149_v39, %v1749_v0  ;;  %v6340_v0 = vld [vmem:[#allocation2 + $0x1c] sm:$0xf]  ;;  %2403 = vmatpush.bf16.msra.mxu3 %v5820_v6 }
 0x2e3   :  { %v5832_v23 = vor.u32 %v6340_v0, %v5829_v21 }
 0x2e4   :  { %v1780_v15 = vmax.f32 %v1750_v33, 0.0 }
 0x2e5   :  { %2550 = vmatpush.bf16.msra.mxu2 %v5832_v23 }
 0x2e9   :  { %v1751_v16 = vpop.f32.mrf.mxu2 }
 0x2ea   :  { %v1752_v29 = vadd.f32 %v8149_v39, %v1751_v16 }
 0x2ec   :  { %v1781_v36 = vmax.f32 %v1752_v29, 0.0 }
 0x2ee   :  { %v8177_v24 = vpack.c.bf16 %v1781_v36, %v1780_v15 }
 0x2f0   :  { %2223 = vmatmul.bf16.gmra.mxu3 %v8177_v24  ;;  %2272 = vmatmul.bf16.gmra.mxu0 %v8177_v24 }
 0x2f1   :  { %2321 = vmatmul.bf16.gmra.mxu1 %v8177_v24  ;;  %2370 = vmatmul.bf16.gmra.mxu2 %v8177_v24  ;;  %v1754_v32 = vpop.f32.mrf.mxu2 }
 0x2f2   :  { %v1755_v56 = vadd.f32 %v8149_v39, %v1754_v32 }
 0x2f4   :  { %v1782_v54 = vmax.f32 %v1755_v56, 0.0 }
 0x2f9   :  { %v1756_v49 = vpop.f32.mrf.mxu2 }
 0x2fa   :  { %v1757_v58 = vadd.f32 %v8149_v39, %v1756_v49  ;;  %v8230_v49 = vperm.slane %v1862_v19, 3 }
 0x2fc   :  { %v1783_v47 = vmax.f32 %v1757_v58, 0.0 }
 0x2fe   :  { %v8185_v42 = vpack.c.bf16 %v1783_v47, %v1782_v54 }
 0x300   :  { %2228 = vmatmul.bf16.gmra.mxu3 %v8185_v42  ;;  %2277 = vmatmul.bf16.gmra.mxu0 %v8185_v42 }
 0x301   :  { %2326 = vmatmul.bf16.gmra.mxu1 %v8185_v42  ;;  %2375 = vmatmul.bf16.gmra.mxu2 %v8185_v42  ;;  %v1759_v9 = vpop.f32.mrf.mxu2 }
 0x302   :  { %v1760_v20 = vadd.f32 %v8149_v39, %v1759_v9 }
 0x304   :  { %v1784_v11 = vmax.f32 %v1760_v20, 0.0 }
 0x309   :  { %v1761_v51 = vpop.f32.mrf.mxu2 }
 0x30a   :  { %v1762_v25 = vadd.f32 %v8149_v39, %v1761_v51 }
 0x30c   :  { %v1785_v37 = vmax.f32 %v1762_v25, 0.0 }
 0x30e   :  { %v8193_v7 = vpack.c.bf16 %v1785_v37, %v1784_v11 }
 0x310   :  { %2233 = vmatmul.bf16.gmra.mxu3 %v8193_v7  ;;  %2282 = vmatmul.bf16.gmra.mxu0 %v8193_v7 }
 0x311   :  { %2331 = vmatmul.bf16.gmra.mxu1 %v8193_v7  ;;  %2380 = vmatmul.bf16.gmra.mxu2 %v8193_v7  ;;  %v1764_v22 = vpop.f32.mrf.mxu2 }
 0x312   :  { %v1765_v10 = vadd.f32 %v8149_v39, %v1764_v22 }
 0x314   :  { %v1786_v33 = vmax.f32 %v1765_v10, 0.0 }
 0x319   :  { %v1766_v34 = vpop.f32.mrf.mxu2 }
 0x31a   :  { %v1767_v27 = vadd.f32 %v8149_v39, %v1766_v34 }
 0x31c   :  { %v1787_v16 = vmax.f32 %v1767_v27, 0.0 }
 0x31e   :  { %v8201_v29 = vpack.c.bf16 %v1787_v16, %v1786_v33 }
 0x320   :  { %2238 = vmatmul.bf16.gmra.mxu3 %v8201_v29  ;;  %2287 = vmatmul.bf16.gmra.mxu0 %v8201_v29 }
 0x321   :  { %2336 = vmatmul.bf16.gmra.mxu1 %v8201_v29  ;;  %2385 = vmatmul.bf16.gmra.mxu2 %v8201_v29  ;;  %v1769_v15 = vpop.f32.mrf.mxu2 }
 0x322   :  { %v1770_v36 = vadd.f32 %v8149_v39, %v1769_v15 }
 0x324   :  { %v1788_v40 = vmax.f32 %v1770_v36, 0.0 }
 0x329   :  { %v1771_v32 = vpop.f32.mrf.mxu2 }
 0x32a   :  { %v1772_v52 = vadd.f32 %v8149_v39, %v1771_v32 }
 0x32c   :  { %v1789_v44 = vmax.f32 %v1772_v52, 0.0 }
 0x32e   :  { %v8209_v53 = vpack.c.bf16 %v1789_v44, %v1788_v40 }
 0x330   :  { %2243 = vmatmul.bf16.gmra.mxu3 %v8209_v53  ;;  %2292 = vmatmul.bf16.gmra.mxu0 %v8209_v53 }
 0x331   :  { %2341 = vmatmul.bf16.gmra.mxu1 %v8209_v53  ;;  %2390 = vmatmul.bf16.gmra.mxu2 %v8209_v53 }
 0x33d   :  { %v2258_v39 = vpop.f32.mrf.mxu0 }
 0x33e   :  { %v2259_v46 = vadd.f32 %v2258_v39, %v8218_v59  ;;  %v2307_v62 = vpop.f32.mrf.mxu1 }
 0x33f   :  { %v2308_v57 = vadd.f32 %v2307_v62, %v8220_v26 }
 0x340   :  { %v6058_v35 = vmul.f32 -1.442695, %v2259_v46  ;;  %2404 = vmatmul.bf16.vlgmr.msra.gmra.mxu3 %v8153_v31  ;;  %2453 = vmatmul.bf16.vlgmr.msra.gmra.mxu0 %v8153_v31 }
 0x341   :  { %v6059_v56 = vmul.f32 -1.442695, %v2308_v57  ;;  %2502 = vmatmul.bf16.vlgmr.msra.gmra.mxu1 %v8153_v31  ;;  %2551 = vmatmul.bf16.vlgmr.msra.gmra.mxu2 %v8153_v31 }
 0x342   :  { %6462 = vpow2.f32 %v6058_v35 }
 0x343   :  { %6464 = vpow2.f32 %v6059_v56  ;;  %v2209_v58 = vpop.f32.mrf.mxu3 }
 0x344   :  { %v2210_v54 = vadd.f32 %v2209_v58, %v8226_v41  ;;  %v2356_v47 = vpop.f32.mrf.mxu2 }
 0x345   :  { %v2357_v9 = vadd.f32 %v2356_v47, %v8230_v49  ;;  %v2260_v3 = vpop.f32.mrf.mxu0 }
 0x346   :  { %v6057_v45 = vmul.f32 -1.442695, %v2210_v54  ;;  %v2261_v55 = vadd.f32 %v2260_v3, %v8218_v59  ;;  %v2309_v2 = vpop.f32.mrf.mxu1 }
 0x347   :  { %v6060_v28 = vmul.f32 -1.442695, %v2357_v9  ;;  %v2310_v43 = vadd.f32 %v2309_v2, %v8220_v26 }
 0x348   :  { %v6463_v18 = vpop.eup %6462  ;;  %6466 = vpow2.f32 %v6057_v45  ;;  %v6066_v31 = vmul.f32 -1.442695, %v2261_v55 }
 0x349   :  { %v6465_v1 = vpop.eup %6464  ;;  %v8236_v14 = vadd.f32 1.0, %v6463_v18  ;;  %6468 = vpow2.f32 %v6060_v28  ;;  %v6067_v61 = vmul.f32 -1.442695, %v2310_v43 }
 0x34a   :  { %v8238_v17 = vadd.f32 1.0, %v6465_v1  ;;  %6470 = vpow2.f32 %v6066_v31 }
 0x34b   :  { %6472 = vrcp.f32 %v8236_v14  ;;  %v2211_v50 = vpop.f32.mrf.mxu3  ;;  %v3128_v37 = vand.u32 2147483647, %v8236_v14  ;;  %v3130_v22 = vand.u32 2147483648, %v8236_v14  ;;  %vm3124_vm0 = vweird.f32 %v8236_v14 }
 0x34c   :  { %6474 = vrcp.f32 %v8238_v17  ;;  %v2358_v20 = vpop.f32.mrf.mxu2  ;;  %v2212_v51 = vadd.f32 %v2211_v50, %v8226_v41  ;;  %v3145_v63 = vand.u32 2147483648, %v8238_v17  ;;  %v3143_v0 = vand.u32 2147483647, %v8238_v17 }
 0x34d   :  { %6476 = vpow2.f32 %v6067_v61  ;;  %v2263_v25 = vpop.f32.mrf.mxu0  ;;  %v2359_v21 = vadd.f32 %v2358_v20, %v8230_v49  ;;  %vm3139_vm1 = vweird.f32 %v8238_v17  ;;  %vm8261_vm2 = vcmp.eq.f32.partialorder %v3128_v37, 8.507059e+37 }
 0x34e   :  { %v6467_v11 = vpop.eup %6466  ;;  %v2264_v5 = vadd.f32 %v2263_v25, %v8218_v59  ;;  %v2312_v60 = vpop.f32.mrf.mxu1  ;;  %v6065_v13 = vmul.f32 -1.442695, %v2212_v51  ;;  %v3131_v27 = vor.u32 1.1754944e-38, %v3130_v22  ;;  %v3146_v33 = vor.u32 1.1754944e-38, %v3145_v63 }
 0x34f   :  { %v6469_v8 = vpop.eup %6468  ;;  %v8247_v6 = vadd.f32 1.0, %v6467_v11  ;;  %vm8267_vm3 = vcmp.eq.f32.partialorder %v3143_v0, 8.507059e+37  ;;  %v8271_v32 = vmul.f32 -1.442695, %v2359_v21  ;;  %v2313_v52 = vadd.f32 %v2312_v60, %v8220_v26 }
 0x350   :  { %v6471_v12 = vpop.eup %6470  ;;  %v8251_v23 = vadd.f32 1.0, %v6469_v8  ;;  %2409 = vmatmul.bf16.gmra.mxu3 %v8161_v38  ;;  %2458 = vmatmul.bf16.gmra.mxu0 %v8161_v38 }
 0x351   :  { %v6473_v4 = vpop.eup %6472  ;;  %6478 = vrcp.f32 %v8247_v6  ;;  %2507 = vmatmul.bf16.gmra.mxu1 %v8161_v38  ;;  %2556 = vmatmul.bf16.gmra.mxu2 %v8161_v38  ;;  %v8273_v38 = vmul.f32 -1.442695, %v2264_v5  ;;  %v3113_v44 = vand.u32 2147483647, %v8247_v6  ;;  %v3115_v19 = vand.u32 2147483648, %v8247_v6 }
 0x352   :  { %v6475_v48 = vpop.eup %6474  ;;  %v3120_v10 = vmul.f32 %v6473_v4, %v8236_v14  ;;  %6480 = vrcp.f32 %v8251_v23  ;;  %v8278_v39 = vadd.f32 1.0, %v6471_v12  ;;  %v3158_v62 = vand.u32 2147483647, %v8251_v23 }
 0x353   :  { %v6477_v16 = vpop.eup %6476  ;;  %v3135_v15 = vmul.f32 %v6475_v48, %v8238_v17  ;;  %6482 = vpow2.f32 %v6065_v13  ;;  %vm3125_vm4 = vweird.f32 %v6473_v4  ;;  %vm3109_vm5 = vweird.f32 %v8247_v6  ;;  %v2214_v21 = vpop.f32.mrf.mxu3 }
 0x354   :  { %v3121_v40 = vsub.f32 1.0, %v3120_v10  ;;  %v8281_v57 = vadd.f32 1.0, %v6477_v16  ;;  %6484 = vrcp.f32 %v8278_v39  ;;  %vm3140_vm6 = vweird.f32 %v6475_v48  ;;  %vm3126_vm9 = vmor %vm3124_vm0, %vm3125_vm4 }
 0x355   :  { %v3136_v46 = vsub.f32 1.0, %v3135_v15  ;;  %vm3154_vm7 = vweird.f32 %v8251_v23  ;;  %v3160_v54 = vand.u32 2147483648, %v8251_v23  ;;  %vm8288_vm8 = vcmp.eq.f32.partialorder %v3113_v44, 8.507059e+37  ;;  %vm3141_vm11 = vmor %vm3139_vm1, %vm3140_vm6 }
 0x356   :  { %v3122_v35 = vmul.f32 %v6473_v4, %v3121_v40  ;;  %v3116_v55 = vor.u32 1.1754944e-38, %v3115_v19  ;;  %6486 = vrcp.f32 %v8281_v57  ;;  %vm8296_vm10 = vcmp.eq.f32.partialorder %v3158_v62, 8.507059e+37  ;;  %v2265_v40 = vpop.f32.mrf.mxu0  ;;  %v2314_v19 = vpop.f32.mrf.mxu1 }
 0x357   :  { %v6479_v56 = vpop.eup %6478  ;;  %v3137_v58 = vmul.f32 %v6475_v48, %v3136_v46  ;;  %v6075_v18 = vmul.f32 -1.442695, %v2313_v52  ;;  %v3248_v61 = vand.u32 2147483647, %v8278_v39  ;;  %v3250_v50 = vand.u32 2147483648, %v8278_v39 }
 0x358   :  { %v6481_v47 = vpop.eup %6480  ;;  %v3123_v9 = vadd.f32 %v6473_v4, %v3122_v35  ;;  %v3105_v3 = vmul.f32 %v6479_v56, %v8247_v6  ;;  %v3161_v11 = vor.u32 1.1754944e-38, %v3160_v54  ;;  %vm3110_vm12 = vweird.f32 %v6479_v56 }
 0x359   :  { %v3138_v2 = vadd.f32 %v6475_v48, %v3137_v58  ;;  %v3150_v28 = vmul.f32 %v6481_v47, %v8251_v23  ;;  %v6483_v14 = vpop.eup %6482  ;;  %vm3155_vm13 = vweird.f32 %v6481_v47  ;;  %vm3244_vm14 = vweird.f32 %v8278_v39  ;;  %vm3111_vm0 = vmor %vm3109_vm5, %vm3110_vm12 }
 0x35a   :  { %v3127_v31 = vsel %vm3126_vm9, %v6473_v4, %v3123_v9  ;;  %v3106_v1 = vsub.f32 1.0, %v3105_v3  ;;  %v6485_v37 = vpop.eup %6484  ;;  %v8312_v63 = vadd.f32 1.0, %v6483_v14  ;;  %vm8319_vm15 = vcmp.eq.f32.partialorder %v3248_v61, 8.507059e+37  ;;  %vm3156_vm1 = vmor %vm3154_vm7, %vm3155_vm13 }
 0x35b   :  { %v3132_v20 = vsel %vm8261_vm2, %v3131_v27, %v3127_v31  ;;  %v3142_v51 = vsel %vm3141_vm11, %v6475_v48, %v3138_v2  ;;  %v3151_v25 = vsub.f32 1.0, %v3150_v28  ;;  %v3240_v0 = vmul.f32 %v6485_v37, %v8278_v39  ;;  %v2361_v27 = vpop.f32.mrf.mxu2 }
 0x35c   :  { %5025 = vst [vmem:[%s10640_s10 + $0x8] sm:$0xff] %v3132_v20  ;;  %v3147_v17 = vsel %vm8267_vm3, %v3146_v33, %v3142_v51  ;;  %v3107_v22 = vmul.f32 %v6479_v56, %v3106_v1  ;;  %v6487_v5 = vpop.eup %6486  ;;  %v3251_v4 = vor.u32 1.1754944e-38, %v3250_v50  ;;  %6488 = vrcp.f32 %v8312_v63  ;;  %v2216_v1 = vpop.f32.mrf.mxu3 }
 0x35d   :  { %5026 = vst [vmem:[%s10640_s10 + $0x10] sm:$0xff] %v3147_v17  ;;  %v3152_v8 = vmul.f32 %v6481_v47, %v3151_v25  ;;  %v3241_v48 = vsub.f32 1.0, %v3240_v0  ;;  %v3255_v10 = vmul.f32 %v6487_v5, %v8281_v57  ;;  %v3263_v34 = vand.u32 2147483647, %v8281_v57 }
 0x35e   :  { %v3108_v12 = vadd.f32 %v6479_v56, %v3107_v22  ;;  %vm3245_vm2 = vweird.f32 %v6485_v37  ;;  %v3265_v16 = vand.u32 2147483648, %v8281_v57  ;;  %6490 = vpow2.f32 %v8271_v32 }
 0x35f   :  { %v3153_v13 = vadd.f32 %v6481_v47, %v3152_v8  ;;  %v3242_v36 = vmul.f32 %v6485_v37, %v3241_v48  ;;  %v3256_v52 = vsub.f32 1.0, %v3255_v10  ;;  %vm3259_vm3 = vweird.f32 %v8281_v57  ;;  %vm3246_vm5 = vmor %vm3244_vm14, %vm3245_vm2 }
 0x360   :  { %v3112_v33 = vsel %vm3111_vm0, %v6479_v56, %v3108_v12  ;;  %2414 = vmatmul.bf16.gmra.mxu3 %v8169_v30  ;;  %2463 = vmatmul.bf16.gmra.mxu0 %v8169_v30  ;;  %vm3260_vm4 = vweird.f32 %v6487_v5  ;;  %6492 = vpow2.f32 %v8273_v38  ;;  %vm8353_vm6 = vcmp.eq.f32.partialorder %v3263_v34, 8.507059e+37 }
 0x361   :  { %v3117_v6 = vsel %vm8288_vm8, %v3116_v55, %v3112_v33  ;;  %v3157_v15 = vsel %vm3156_vm1, %v6481_v47, %v3153_v13  ;;  %2512 = vmatmul.bf16.gmra.mxu1 %v8169_v30  ;;  %2561 = vmatmul.bf16.gmra.mxu2 %v8169_v30  ;;  %v3243_v32 = vadd.f32 %v6485_v37, %v3242_v36  ;;  %6494 = vpow2.f32 %v6075_v18  ;;  %vm3261_vm7 = vmor %vm3259_vm3, %vm3260_vm4 }
 0x362   :  { %5024 = vst [vmem:[%s10640_s10] sm:$0xff] %v3117_v6  ;;  %v3162_v23 = vsel %vm8296_vm10, %v3161_v11, %v3157_v15  ;;  %v3257_v44 = vmul.f32 %v6487_v5, %v3256_v52  ;;  %v2215_v30 = vadd.f32 %v2214_v21, %v8226_v41  ;;  %v6489_v46 = vpop.eup %6488  ;;  %v3266_v38 = vor.u32 1.1754944e-38, %v3265_v16 }
 0x363   :  { %5027 = vst [vmem:[%s10640_s10 + $0x18] sm:$0xff] %v3162_v23  ;;  %v2362_v35 = vadd.f32 %v2361_v27, %v8230_v49  ;;  %v2266_v56 = vadd.f32 %v2265_v40, %v8218_v59  ;;  %v3247_v58 = vsel %vm3246_vm5, %v6485_v37, %v3243_v32  ;;  %v3225_v47 = vmul.f32 %v6489_v46, %v8312_v63  ;;  %v2363_v51 = vpop.f32.mrf.mxu2 }
 0x364   :  { %v3258_v54 = vadd.f32 %v6487_v5, %v3257_v44  ;;  %v3235_v9 = vand.u32 2147483648, %v8312_v63  ;;  %v6491_v3 = vpop.eup %6490  ;;  %v3252_v39 = vsel %vm8319_vm15, %v3251_v4, %v3247_v58  ;;  %v6073_v45 = vmul.f32 -1.442695, %v2215_v30 }
 0x365   :  { %v6076_v55 = vmul.f32 -1.442695, %v2362_v35  ;;  %v2315_v2 = vadd.f32 %v2314_v19, %v8220_v26  ;;  %5033 = vst [vmem:[%s10640_s10 + $0x48] sm:$0xff] %v3252_v39  ;;  %v3226_v43 = vsub.f32 1.0, %v3225_v47  ;;  %v8370_v18 = vadd.f32 1.0, %v6491_v3  ;;  %v2268_v19 = vpop.f32.mrf.mxu0 }
 0x366   :  { %v3262_v28 = vsel %vm3261_vm7, %v6487_v5, %v3258_v54  ;;  %v6082_v31 = vmul.f32 -1.442695, %v2266_v56  ;;  %v6493_v61 = vpop.eup %6492  ;;  %vm3229_vm8 = vweird.f32 %v8312_v63  ;;  %6496 = vpow2.f32 %v6073_v45 }
 0x367   :  { %v3267_v50 = vsel %vm8353_vm6, %v3266_v38, %v3262_v28  ;;  %v6495_v57 = vpop.eup %6494  ;;  %v3227_v14 = vmul.f32 %v6489_v46, %v3226_v43  ;;  %vm3230_vm9 = vweird.f32 %v6489_v46  ;;  %v3233_v20 = vand.u32 2147483647, %v8312_v63 }
 0x368   :  { %5034 = vst [vmem:[%s10640_s10 + $0x50] sm:$0xff] %v3267_v50  ;;  %6498 = vrcp.f32 %v8370_v18  ;;  %v8380_v25 = vadd.f32 1.0, %v6493_v61  ;;  %v8382_v11 = vadd.f32 1.0, %v6495_v57  ;;  %v2217_v37 = vadd.f32 %v2216_v1, %v8226_v41  ;;  %vm3231_vm10 = vmor %vm3229_vm8, %vm3230_vm9 }
 0x369   :  { %6500 = vpow2.f32 %v6076_v55  ;;  %v3228_v17 = vadd.f32 %v6489_v46, %v3227_v14  ;;  %v3236_v22 = vor.u32 1.1754944e-38, %v3235_v9  ;;  %v6083_v8 = vmul.f32 -1.442695, %v2315_v2 }
 0x36a   :  { %6502 = vpow2.f32 %v6082_v31  ;;  %v3278_v0 = vand.u32 2147483647, %v8370_v18  ;;  %v3280_v21 = vand.u32 2147483648, %v8370_v18  ;;  %v2364_v5 = vadd.f32 %v2363_v51, %v8230_v49 }
 0x36b   :  { %6504 = vrcp.f32 %v8380_v25  ;;  %v3232_v12 = vsel %vm3231_vm10, %v6489_v46, %v3228_v17  ;;  %vm3234_vm11 = vcmp.eq.f32.partialorder %v3233_v20, 8.507059e+37  ;;  %v6081_v13 = vmul.f32 -1.442695, %v2217_v37 }
 0x36c   :  { %6506 = vrcp.f32 %v8382_v11  ;;  %v6497_v60 = vpop.eup %6496  ;;  %v3237_v4 = vsel %vm3234_vm11, %v3236_v22, %v3232_v12  ;;  %vm3274_vm12 = vweird.f32 %v8370_v18  ;;  %v3368_v63 = vand.u32 2147483647, %v8380_v25 }
 0x36d   :  { %5032 = vst [vmem:[%s10640_s10 + $0x40] sm:$0xff] %v3237_v4  ;;  %v3370_v10 = vand.u32 2147483648, %v8380_v25  ;;  %v8398_v34 = vadd.f32 1.0, %v6497_v60  ;;  %vm8401_vm13 = vcmp.eq.f32.partialorder %v3278_v0, 8.507059e+37  ;;  %v3281_v6 = vor.u32 1.1754944e-38, %v3280_v21  ;;  %v2317_v4 = vpop.f32.mrf.mxu1 }
 0x36e   :  { %v6499_v48 = vpop.eup %6498  ;;  %6508 = vpow2.f32 %v6083_v8  ;;  %v8405_v15 = vmul.f32 -1.442695, %v2364_v5  ;;  %vm3364_vm14 = vweird.f32 %v8380_v25  ;;  %v3383_v52 = vand.u32 2147483647, %v8382_v11 }
 0x36f   :  { %v6501_v27 = vpop.eup %6500  ;;  %v3270_v33 = vmul.f32 %v6499_v48, %v8370_v18  ;;  %v3385_v40 = vand.u32 2147483648, %v8382_v11  ;;  %6510 = vrcp.f32 %v8398_v34  ;;  %vm3379_vm15 = vweird.f32 %v8382_v11 }
 0x370   :  { %2419 = vmatmul.bf16.gmra.mxu3 %v8177_v24  ;;  %2468 = vmatmul.bf16.gmra.mxu0 %v8177_v24  ;;  %v6503_v36 = vpop.eup %6502  ;;  %v8416_v44 = vadd.f32 1.0, %v6501_v27  ;;  %6512 = vpow2.f32 %v6081_v13  ;;  %vm3275_vm0 = vweird.f32 %v6499_v48  ;;  %vm8421_vm1 = vcmp.eq.f32.partialorder %v3368_v63, 8.507059e+37 }
 0x371   :  { %2517 = vmatmul.bf16.gmra.mxu1 %v8177_v24  ;;  %2566 = vmatmul.bf16.gmra.mxu2 %v8177_v24  ;;  %v6505_v23 = vpop.eup %6504  ;;  %v3271_v32 = vsub.f32 1.0, %v3270_v33  ;;  %v8418_v30 = vadd.f32 1.0, %v6503_v36  ;;  %v3371_v35 = vor.u32 1.1754944e-38, %v3370_v10  ;;  %v3353_v58 = vand.u32 2147483647, %v8398_v34  ;;  %vm3276_vm4 = vmor %vm3274_vm12, %vm3275_vm0 }
 0x372   :  { %v6507_v46 = vpop.eup %6506  ;;  %v3360_v62 = vmul.f32 %v6505_v23, %v8380_v25  ;;  %6514 = vrcp.f32 %v8416_v44  ;;  %vm8428_vm2 = vcmp.eq.f32.partialorder %v3383_v52, 8.507059e+37  ;;  %v3386_v9 = vor.u32 1.1754944e-38, %v3385_v40  ;;  %v2219_v40 = vpop.f32.mrf.mxu3 }
 0x373   :  { %v3272_v24 = vmul.f32 %v6499_v48, %v3271_v32  ;;  %v3375_v56 = vmul.f32 %v6507_v46, %v8382_v11  ;;  %v8433_v3 = vadd.f32 %v2268_v19, %v8218_v59  ;;  %vm3349_vm3 = vweird.f32 %v8398_v34 }
 0x374   :  { %v3361_v54 = vsub.f32 1.0, %v3360_v62  ;;  %v6509_v39 = vpop.eup %6508  ;;  %6516 = vrcp.f32 %v8418_v30  ;;  %vm3365_vm5 = vweird.f32 %v6505_v23  ;;  %vm3380_vm6 = vweird.f32 %v6507_v46 }
 0x375   :  { %v3273_v45 = vadd.f32 %v6499_v48, %v3272_v24  ;;  %v3376_v55 = vsub.f32 1.0, %v3375_v56  ;;  %v6511_v2 = vpop.eup %6510  ;;  %v3355_v43 = vand.u32 2147483648, %v8398_v34  ;;  %vm8442_vm7 = vcmp.eq.f32.partialorder %v3353_v58, 8.507059e+37  ;;  %vm3366_vm8 = vmor %vm3364_vm14, %vm3365_vm5 }
 0x376   :  { %v3362_v28 = vmul.f32 %v6505_v23, %v3361_v54  ;;  %v6513_v31 = vpop.eup %6512  ;;  %v3345_v50 = vmul.f32 %v6511_v2, %v8398_v34  ;;  %v3398_v14 = vand.u32 2147483647, %v8416_v44  ;;  %v3400_v51 = vand.u32 2147483648, %v8416_v44  ;;  %vm3381_vm10 = vmor %vm3379_vm15, %vm3380_vm6 }
 0x377   :  { %v3277_v1 = vsel %vm3276_vm4, %v6499_v48, %v3273_v45  ;;  %v3377_v61 = vmul.f32 %v6507_v46, %v3376_v55  ;;  %v3488_v37 = vand.u32 2147483647, %v8418_v30  ;;  %vm3350_vm9 = vweird.f32 %v6511_v2 }
 0x378   :  { %v3282_v18 = vsel %vm8401_vm13, %v3281_v6, %v3277_v1  ;;  %v3363_v20 = vadd.f32 %v6505_v23, %v3362_v28  ;;  %v6515_v17 = vpop.eup %6514  ;;  %v3346_v8 = vsub.f32 1.0, %v3345_v50  ;;  %v8457_v0 = vadd.f32 1.0, %v6509_v39  ;;  %vm3351_vm14 = vmor %vm3349_vm3, %vm3350_vm9 }
 0x379   :  { %5035 = vst [vmem:[%s10640_s10 + $0x58] sm:$0xff] %v3282_v18  ;;  %v3378_v22 = vadd.f32 %v6507_v46, %v3377_v61  ;;  %v3390_v5 = vmul.f32 %v6515_v17, %v8416_v44  ;;  %v3490_v12 = vand.u32 2147483648, %v8418_v30  ;;  %v8464_v60 = vadd.f32 1.0, %v6513_v31  ;;  %v2319_v31 = vpop.f32.mrf.mxu1 }
 0x37a   :  { %v3367_v21 = vsel %vm3366_vm8, %v6505_v23, %v3363_v20  ;;  %v6517_v13 = vpop.eup %6516  ;;  %v3347_v63 = vmul.f32 %v6511_v2, %v3346_v8  ;;  %6518 = vrcp.f32 %v8457_v0  ;;  %v3356_v10 = vor.u32 1.1754944e-38, %v3355_v43 }
 0x37b   :  { %v3372_v25 = vsel %vm8421_vm1, %v3371_v35, %v3367_v21  ;;  %v3382_v48 = vsel %vm3381_vm10, %v6507_v46, %v3378_v22  ;;  %v3391_v27 = vsub.f32 1.0, %v3390_v5  ;;  %v3480_v33 = vmul.f32 %v6517_v13, %v8418_v30  ;;  %v2366_v35 = vpop.f32.mrf.mxu2  ;;  %v2221_v5 = vpop.f32.mrf.mxu3 }
 0x37c   :  { %5041 = vst [vmem:[%s10640_s10 + $0x88] sm:$0xff] %v3372_v25  ;;  %v3387_v11 = vsel %vm8428_vm2, %v3386_v9, %v3382_v48  ;;  %v3348_v16 = vadd.f32 %v6511_v2, %v3347_v63  ;;  %vm3394_vm11 = vweird.f32 %v8416_v44  ;;  %vm8479_vm12 = vcmp.eq.f32.partialorder %v3398_v14, 8.507059e+37 }
 0x37d   :  { %5042 = vst [vmem:[%s10640_s10 + $0x90] sm:$0xff] %v3387_v11  ;;  %vm3484_vm13 = vweird.f32 %v8418_v30  ;;  %v3392_v36 = vmul.f32 %v6515_v17, %v3391_v27  ;;  %vm3395_vm15 = vweird.f32 %v6515_v17  ;;  %v3481_v52 = vsub.f32 1.0, %v3480_v33 }
 0x37e   :  { %6520 = vrcp.f32 %v8464_v60  ;;  %v3352_v23 = vsel %vm3351_vm14, %v6511_v2, %v3348_v16  ;;  %v3401_v32 = vor.u32 1.1754944e-38, %v3400_v51  ;;  %vm8488_vm0 = vcmp.eq.f32.partialorder %v3488_v37, 8.507059e+37  ;;  %vm3396_vm2 = vmor %vm3394_vm11, %vm3395_vm15 }
 0x37f   :  { %v3491_v46 = vor.u32 1.1754944e-38, %v3490_v12  ;;  %v3357_v34 = vsel %vm8442_vm7, %v3356_v10, %v3352_v23  ;;  %v3393_v62 = vadd.f32 %v6515_v17, %v3392_v36  ;;  %v3482_v38 = vmul.f32 %v6517_v13, %v3481_v52 }
 0x380   :  { %2424 = vmatmul.bf16.gmra.mxu3 %v8185_v42  ;;  %2473 = vmatmul.bf16.gmra.mxu0 %v8185_v42  ;;  %vm3485_vm1 = vweird.f32 %v6517_v13  ;;  %v6519_v24 = vpop.eup %6518  ;;  %5040 = vst [vmem:[%s10640_s10 + $0x80] sm:$0xff] %v3357_v34  ;;  %vm3499_vm3 = vweird.f32 %v8457_v0  ;;  %6522 = vpow2.f32 %v8405_v15  ;;  %v6090_v56 = vmul.f32 -1.442695, %v8433_v3  ;;  %v2270_v3 = vpop.f32.mrf.mxu0 }
 0x381   :  { %2522 = vmatmul.bf16.gmra.mxu1 %v8185_v42  ;;  %2571 = vmatmul.bf16.gmra.mxu2 %v8185_v42  ;;  %v2318_v58 = vadd.f32 %v2317_v4, %v8220_v26  ;;  %v3397_v54 = vsel %vm3396_vm2, %v6515_v17, %v3393_v62  ;;  %v3483_v47 = vadd.f32 %v6517_v13, %v3482_v38  ;;  %v3503_v9 = vand.u32 2147483647, %v8457_v0  ;;  %vm3486_vm4 = vmor %vm3484_vm13, %vm3485_vm1 }
 0x382   :  { %v3495_v42 = vmul.f32 %v6519_v24, %v8457_v0  ;;  %v3402_v39 = vsel %vm8479_vm12, %v3401_v32, %v3397_v54  ;;  %v3505_v44 = vand.u32 2147483648, %v8457_v0  ;;  %6524 = vpow2.f32 %v6090_v56 }
 0x383   :  { %v6091_v15 = vmul.f32 -1.442695, %v2318_v58  ;;  %5043 = vst [vmem:[%s10640_s10 + $0x98] sm:$0xff] %v3402_v39  ;;  %v3487_v55 = vsel %vm3486_vm4, %v6517_v13, %v3483_v47  ;;  %v2220_v28 = vadd.f32 %v2219_v40, %v8226_v41  ;;  %v2367_v43 = vadd.f32 %v2366_v35, %v8230_v49  ;;  %v2368_v48 = vpop.f32.mrf.mxu2 }
 0x384   :  { %v6521_v45 = vpop.eup %6520  ;;  %v3496_v2 = vsub.f32 1.0, %v3495_v42  ;;  %v3492_v30 = vsel %vm8488_vm0, %v3491_v46, %v3487_v55  ;;  %vm3500_vm5 = vweird.f32 %v6519_v24  ;;  %v2271_v14 = vadd.f32 %v2270_v3, %v8218_v59 }
 0x385   :  { %v3465_v1 = vmul.f32 %v6521_v45, %v8464_v60  ;;  %6526 = vpow2.f32 %v6091_v15  ;;  %5049 = vst [vmem:[%s10640_s10 + $0xc8] sm:$0xff] %v3492_v30  ;;  %v6089_v50 = vmul.f32 -1.442695, %v2220_v28  ;;  %v6092_v57 = vmul.f32 -1.442695, %v2367_v43  ;;  %vm3501_vm6 = vmor %vm3499_vm3, %vm3500_vm5 }
 0x386   :  { %v3497_v61 = vmul.f32 %v6519_v24, %v3496_v2  ;;  %v6523_v18 = vpop.eup %6522  ;;  %v3506_v20 = vor.u32 1.1754944e-38, %v3505_v44  ;;  %v3475_v37 = vand.u32 2147483648, %v8464_v60  ;;  %v2320_v17 = vadd.f32 %v2319_v31, %v8220_v26 }
 0x387   :  { %v3466_v51 = vsub.f32 1.0, %v3465_v1  ;;  %v8530_v8 = vadd.f32 1.0, %v6523_v18  ;;  %6528 = vpow2.f32 %v6089_v50  ;;  %v6098_v21 = vmul.f32 -1.442695, %v2271_v14 }
 0x388   :  { %v3498_v22 = vadd.f32 %v6519_v24, %v3497_v61  ;;  %v6525_v12 = vpop.eup %6524  ;;  %vm3470_vm7 = vweird.f32 %v6521_v45  ;;  %v3473_v13 = vand.u32 2147483647, %v8464_v60  ;;  %6530 = vpow2.f32 %v6092_v57 }
 0x389   :  { %v3467_v4 = vmul.f32 %v6521_v45, %v3466_v51  ;;  %vm3504_vm8 = vcmp.eq.f32.partialorder %v3503_v9, 8.507059e+37  ;;  %vm3469_vm9 = vweird.f32 %v8464_v60  ;;  %6532 = vrcp.f32 %v8530_v8 }
 0x38a   :  { %v3502_v25 = vsel %vm3501_vm6, %v6519_v24, %v3498_v22  ;;  %v8538_v27 = vadd.f32 1.0, %v6525_v12  ;;  %v2222_v0 = vadd.f32 %v2221_v5, %v8226_v41  ;;  %vm3471_vm10 = vmor %vm3469_vm9, %vm3470_vm7  ;;  %v3476_v33 = vor.u32 1.1754944e-38, %v3475_v37 }
 0x38b   :  { %v6527_v63 = vpop.eup %6526  ;;  %v3507_v11 = vsel %vm3504_vm8, %v3506_v20, %v3502_v25  ;;  %v3468_v10 = vadd.f32 %v6521_v45, %v3467_v4  ;;  %6534 = vpow2.f32 %v6098_v21  ;;  %v6099_v60 = vmul.f32 -1.442695, %v2320_v17  ;;  %v2371_v43 = vpop.f32.mrf.mxu2 }
 0x38c   :  { %5050 = vst [vmem:[%s10640_s10 + $0xd0] sm:$0xff] %v3507_v11  ;;  %v8544_v16 = vadd.f32 1.0, %v6527_v63  ;;  %vm3474_vm11 = vcmp.eq.f32.partialorder %v3473_v13, 8.507059e+37  ;;  %6536 = vrcp.f32 %v8538_v27  ;;  %v2369_v36 = vadd.f32 %v2368_v48, %v8230_v49 }
 0x38d   :  { %v3472_v6 = vsel %vm3471_vm10, %v6521_v45, %v3468_v10  ;;  %v6529_v52 = vpop.eup %6528  ;;  %v3518_v23 = vand.u32 2147483647, %v8530_v8  ;;  %v3520_v32 = vand.u32 2147483648, %v8530_v8  ;;  %v6097_v34 = vmul.f32 -1.442695, %v2222_v0  ;;  %v2273_v10 = vpop.f32.mrf.mxu0 }
 0x38e   :  { %v3477_v40 = vsel %vm3474_vm11, %v3476_v33, %v3472_v6  ;;  %6538 = vrcp.f32 %v8544_v16  ;;  %v6531_v19 = vpop.eup %6530  ;;  %v8554_v46 = vadd.f32 1.0, %v6529_v52  ;;  %v3608_v38 = vand.u32 2147483647, %v8538_v27 }
 0x38f   :  { %5048 = vst [vmem:[%s10640_s10 + $0xc0] sm:$0xff] %v3477_v40  ;;  %v6533_v62 = vpop.eup %6532  ;;  %v3610_v35 = vand.u32 2147483648, %v8538_v27  ;;  %v8560_v24 = vadd.f32 1.0, %v6531_v19  ;;  %6540 = vpow2.f32 %v6099_v60  ;;  %vm3514_vm12 = vweird.f32 %v8530_v8 }
 0x390   :  { %2429 = vmatmul.bf16.gmra.mxu3 %v8193_v7  ;;  %2478 = vmatmul.bf16.gmra.mxu0 %v8193_v7  ;;  %v3510_v56 = vmul.f32 %v6533_v62, %v8530_v8  ;;  %v3623_v58 = vand.u32 2147483647, %v8544_v16  ;;  %v3625_v54 = vand.u32 2147483648, %v8544_v16  ;;  %vm8568_vm13 = vcmp.eq.f32.partialorder %v3518_v23, 8.507059e+37  ;;  %v2322_v23 = vpop.f32.mrf.mxu1 }
 0x391   :  { %2527 = vmatmul.bf16.gmra.mxu1 %v8193_v7  ;;  %2576 = vmatmul.bf16.gmra.mxu2 %v8193_v7  ;;  %v6535_v47 = vpop.eup %6534  ;;  %v3521_v9 = vor.u32 1.1754944e-38, %v3520_v32  ;;  %6542 = vrcp.f32 %v8554_v46  ;;  %v6100_v39 = vmul.f32 -1.442695, %v2369_v36  ;;  %vm3604_vm14 = vweird.f32 %v8538_v27 }
 0x392   :  { %v6537_v44 = vpop.eup %6536  ;;  %v3511_v15 = vsub.f32 1.0, %v3510_v56  ;;  %vm3619_vm15 = vweird.f32 %v8544_v16  ;;  %6544 = vrcp.f32 %v8560_v24  ;;  %vm3515_vm0 = vweird.f32 %v6533_v62 }
 0x393   :  { %v3600_v3 = vmul.f32 %v6537_v44, %v8538_v27  ;;  %vm8577_vm1 = vcmp.eq.f32.partialorder %v3608_v38, 8.507059e+37  ;;  %v3611_v55 = vor.u32 1.1754944e-38, %v3610_v35  ;;  %vm8582_vm2 = vcmp.eq.f32.partialorder %v3623_v58, 8.507059e+37  ;;  %vm3516_vm4 = vmor %vm3514_vm12, %vm3515_vm0 }
 0x394   :  { %v6539_v7 = vpop.eup %6538  ;;  %v3512_v2 = vmul.f32 %v6533_v62, %v3511_v15  ;;  %v3626_v31 = vor.u32 1.1754944e-38, %v3625_v54  ;;  %v3593_v61 = vand.u32 2147483647, %v8554_v46  ;;  %v8587_v50 = vadd.f32 1.0, %v6535_v47  ;;  %v2224_v15 = vpop.f32.mrf.mxu3 }
 0x395   :  { %v3615_v28 = vmul.f32 %v6539_v7, %v8544_v16  ;;  %v6541_v30 = vpop.eup %6540  ;;  %v3601_v1 = vsub.f32 1.0, %v3600_v3  ;;  %6546 = vpow2.f32 %v6097_v34  ;;  %vm3589_vm3 = vweird.f32 %v8554_v46 }
 0x396   :  { %v3513_v57 = vadd.f32 %v6533_v62, %v3512_v2  ;;  %v3595_v18 = vand.u32 2147483648, %v8554_v46  ;;  %6548 = vpow2.f32 %v6100_v39  ;;  %vm3605_vm5 = vweird.f32 %v6537_v44 }
 0x397   :  { %v3616_v14 = vsub.f32 1.0, %v3615_v28  ;;  %v8591_v20 = vpop.eup %6542  ;;  %v3602_v51 = vmul.f32 %v6537_v44, %v3601_v1  ;;  %vm3634_vm6 = vweird.f32 %v8560_v24  ;;  %6550 = vrcp.f32 %v8587_v50  ;;  %vm3606_vm8 = vmor %vm3604_vm14, %vm3605_vm5 }
 0x398   :  { %v8598_v37 = vadd.f32 1.0, %v6541_v30  ;;  %v6545_v17 = vpop.eup %6544  ;;  %v3517_v22 = vsel %vm3516_vm4, %v6533_v62, %v3513_v57  ;;  %vm3620_vm7 = vweird.f32 %v6539_v7  ;;  %v3585_v5 = vmul.f32 %v8591_v20, %v8554_v46  ;;  %v2275_v57 = vpop.f32.mrf.mxu0 }
 0x399   :  { %v3617_v21 = vmul.f32 %v6539_v7, %v3616_v14  ;;  %v3522_v12 = vsel %vm8568_vm13, %v3521_v9, %v3517_v22  ;;  %v3603_v8 = vadd.f32 %v6537_v44, %v3602_v51  ;;  %v3630_v4 = vmul.f32 %v6545_v17, %v8560_v24  ;;  %vm3621_vm10 = vmor %vm3619_vm15, %vm3620_vm7 }
 0x39a   :  { %v3638_v13 = vand.u32 2147483647, %v8560_v24  ;;  %5051 = vst [vmem:[%s10640_s10 + $0xd8] sm:$0xff] %v3522_v12  ;;  %v3586_v48 = vsub.f32 1.0, %v3585_v5  ;;  %vm8611_vm9 = vcmp.eq.f32.partialorder %v3593_v61, 8.507059e+37  ;;  %v3640_v11 = vand.u32 2147483648, %v8560_v24 }
 0x39b   :  { %v3618_v25 = vadd.f32 %v6539_v7, %v3617_v21  ;;  %v6547_v0 = vpop.eup %6546  ;;  %v3607_v33 = vsel %vm3606_vm8, %v6537_v44, %v3603_v8  ;;  %v3596_v60 = vor.u32 1.1754944e-38, %v3595_v18  ;;  %v3631_v6 = vsub.f32 1.0, %v3630_v4  ;;  %v2324_v21 = vpop.f32.mrf.mxu1 }
 0x39c   :  { %6552 = vrcp.f32 %v8598_v37  ;;  %v6549_v27 = vpop.eup %6548  ;;  %v3612_v36 = vsel %vm8577_vm1, %v3611_v55, %v3607_v33  ;;  %v3587_v40 = vmul.f32 %v8591_v20, %v3586_v48  ;;  %vm3590_vm11 = vweird.f32 %v8591_v20 }
 0x39d   :  { %v3622_v52 = vsel %vm3621_vm10, %v6539_v7, %v3618_v25  ;;  %v6551_v32 = vpop.eup %6550  ;;  %5057 = vst [vmem:[%s10640_s10 + $0x108] sm:$0xff] %v3612_v36  ;;  %v3632_v19 = vmul.f32 %v6545_v17, %v3631_v6  ;;  %vm3635_vm12 = vweird.f32 %v6545_v17  ;;  %vm8629_vm13 = vcmp.eq.f32.partialorder %v3638_v13, 8.507059e+37  ;;  %vm3591_vm14 = vmor %vm3589_vm3, %vm3590_vm11  ;;  %v2226_v36 = vpop.f32.mrf.mxu3 }
 0x39e   :  { %v3627_v16 = vsel %vm8582_vm2, %v3626_v31, %v3622_v52  ;;  %v3588_v62 = vadd.f32 %v8591_v20, %v3587_v40  ;;  %v3641_v38 = vor.u32 1.1754944e-38, %v3640_v11  ;;  %v3720_v35 = vmul.f32 %v6551_v32, %v8587_v50  ;;  %vm3636_vm15 = vmor %vm3634_vm6, %vm3635_vm12 }
 0x39f   :  { %5058 = vst [vmem:[%s10640_s10 + $0x110] sm:$0xff] %v3627_v16  ;;  %v3728_v56 = vand.u32 2147483647, %v8587_v50  ;;  %v3633_v58 = vadd.f32 %v6545_v17, %v3632_v19  ;;  %v3730_v54 = vand.u32 2147483648, %v8587_v50  ;;  %v8646_v47 = vadd.f32 1.0, %v6547_v0 }
 0x3a0   :  { %2434 = vmatmul.bf16.gmra.mxu3 %v8201_v29  ;;  %2483 = vmatmul.bf16.gmra.mxu0 %v8201_v29  ;;  %v8648_v42 = vadd.f32 1.0, %v6549_v27  ;;  %v3592_v9 = vsel %vm3591_vm14, %v8591_v20, %v3588_v62  ;;  %v3721_v39 = vsub.f32 1.0, %v3720_v35  ;;  %v3743_v46 = vand.u32 2147483647, %v8598_v37 }
 0x3a1   :  { %2532 = vmatmul.bf16.gmra.mxu1 %v8201_v29  ;;  %2581 = vmatmul.bf16.gmra.mxu2 %v8201_v29  ;;  %v3745_v44 = vand.u32 2147483648, %v8598_v37  ;;  %v3597_v3 = vsel %vm8611_vm9, %v3596_v60, %v3592_v9  ;;  %v3637_v45 = vsel %vm3636_vm15, %v6545_v17, %v3633_v58  ;;  %6554 = vrcp.f32 %v8646_v47 }
 0x3a2   :  { %v6553_v7 = vpop.eup %6552  ;;  %v2274_v29 = vadd.f32 %v2273_v10, %v8218_v59  ;;  %5056 = vst [vmem:[%s10640_s10 + $0x100] sm:$0xff] %v3597_v3  ;;  %v3642_v24 = vsel %vm8629_vm13, %v3641_v38, %v3637_v45  ;;  %v3722_v55 = vmul.f32 %v6551_v32, %v3721_v39  ;;  %vm3725_vm0 = vweird.f32 %v6551_v32  ;;  %v2373_v38 = vpop.f32.mrf.mxu2 }
 0x3a3   :  { %v3735_v2 = vmul.f32 %v6553_v7, %v8598_v37  ;;  %5059 = vst [vmem:[%s10640_s10 + $0x118] sm:$0xff] %v3642_v24  ;;  %vm3724_vm1 = vweird.f32 %v8587_v50  ;;  %vm8672_vm2 = vcmp.eq.f32.partialorder %v3728_v56, 8.507059e+37  ;;  %vm3739_vm3 = vweird.f32 %v8598_v37  ;;  %v2327_v3 = vpop.f32.mrf.mxu1 }
 0x3a4   :  { %6556 = vrcp.f32 %v8648_v42  ;;  %v3723_v31 = vadd.f32 %v6551_v32, %v3722_v55  ;;  %v3731_v30 = vor.u32 1.1754944e-38, %v3730_v54  ;;  %vm8678_vm4 = vcmp.eq.f32.partialorder %v3743_v46, 8.507059e+37  ;;  %vm3726_vm5 = vmor %vm3724_vm1, %vm3725_vm0  ;;  %v2278_v54 = vpop.f32.mrf.mxu0 }
 0x3a5   :  { %v3736_v1 = vsub.f32 1.0, %v3735_v2  ;;  %vm3740_vm6 = vweird.f32 %v6553_v7  ;;  %v3746_v50 = vor.u32 1.1754944e-38, %v3745_v44  ;;  %v6106_v14 = vmul.f32 -1.442695, %v2274_v29 }
 0x3a6   :  { %v2323_v18 = vadd.f32 %v2322_v23, %v8220_v26  ;;  %v3727_v20 = vsel %vm3726_vm5, %v6551_v32, %v3723_v31  ;;  %vm3709_vm7 = vweird.f32 %v8646_v47  ;;  %v3713_v17 = vand.u32 2147483647, %v8646_v47  ;;  %vm3741_vm9 = vmor %vm3739_vm3, %vm3740_vm6 }
 0x3a7   :  { %v3737_v51 = vmul.f32 %v6553_v7, %v3736_v1  ;;  %v3715_v22 = vand.u32 2147483648, %v8646_v47  ;;  %v6555_v5 = vpop.eup %6554  ;;  %v3732_v12 = vsel %vm8672_vm2, %v3731_v30, %v3727_v20  ;;  %6558 = vpow2.f32 %v6106_v14 }
 0x3a8   :  { %v6107_v8 = vmul.f32 -1.442695, %v2323_v18  ;;  %v2225_v4 = vadd.f32 %v2224_v15, %v8226_v41  ;;  %5065 = vst [vmem:[%s10640_s10 + $0x148] sm:$0xff] %v3732_v12  ;;  %v3705_v25 = vmul.f32 %v6555_v5, %v8646_v47  ;;  %vm3754_vm8 = vweird.f32 %v8648_v42 }
 0x3a9   :  { %v3738_v13 = vadd.f32 %v6553_v7, %v3737_v51  ;;  %v2372_v48 = vadd.f32 %v2371_v43, %v8230_v49  ;;  %v2276_v10 = vadd.f32 %v2275_v57, %v8218_v59  ;;  %v2325_v0 = vadd.f32 %v2324_v21, %v8220_v26 }
 0x3aa   :  { %v6557_v63 = vpop.eup %6556  ;;  %6560 = vpow2.f32 %v6107_v8  ;;  %v6105_v11 = vmul.f32 -1.442695, %v2225_v4  ;;  %v3706_v60 = vsub.f32 1.0, %v3705_v25  ;;  %v3760_v27 = vand.u32 2147483648, %v8648_v42 }
 0x3ab   :  { %v3742_v33 = vsel %vm3741_vm9, %v6553_v7, %v3738_v13  ;;  %v3750_v6 = vmul.f32 %v6557_v63, %v8648_v42  ;;  %v6108_v40 = vmul.f32 -1.442695, %v2372_v48  ;;  %v6114_v37 = vmul.f32 -1.442695, %v2276_v10 }
 0x3ac   :  { %v3747_v52 = vsel %vm8678_vm4, %v3746_v50, %v3742_v33  ;;  %6562 = vpow2.f32 %v6105_v11  ;;  %v3707_v23 = vmul.f32 %v6555_v5, %v3706_v60  ;;  %vm3710_vm10 = vweird.f32 %v6555_v5 }
 0x3ad   :  { %5066 = vst [vmem:[%s10640_s10 + $0x150] sm:$0xff] %v3747_v52  ;;  %v3751_v32 = vsub.f32 1.0, %v3750_v6  ;;  %v6115_v16 = vmul.f32 -1.442695, %v2325_v0  ;;  %v6559_v19 = vpop.eup %6558  ;;  %vm3755_vm11 = vweird.f32 %v6557_v63  ;;  %v3758_v34 = vand.u32 2147483647, %v8648_v42  ;;  %vm3711_vm12 = vmor %vm3709_vm7, %vm3710_vm10 }
 0x3ae   :  { %6564 = vpow2.f32 %v6108_v40  ;;  %v2227_v62 = vadd.f32 %v2226_v36, %v8226_v41  ;;  %v3708_v35 = vadd.f32 %v6555_v5, %v3707_v23  ;;  %v8709_v58 = vadd.f32 1.0, %v6559_v19  ;;  %vm3756_vm14 = vmor %vm3754_vm8, %vm3755_vm11 }
 0x3af   :  { %v3752_v56 = vmul.f32 %v6557_v63, %v3751_v32  ;;  %6566 = vpow2.f32 %v6114_v37  ;;  %vm3714_vm13 = vcmp.eq.f32.partialorder %v3713_v17, 8.507059e+37  ;;  %v3716_v39 = vor.u32 1.1754944e-38, %v3715_v22 }
 0x3b0   :  { %2439 = vmatmul.bf16.gmra.mxu3 %v8209_v53  ;;  %2488 = vmatmul.bf16.gmra.mxu0 %v8209_v53  ;;  %v6561_v9 = vpop.eup %6560  ;;  %v3761_v46 = vor.u32 1.1754944e-38, %v3760_v27  ;;  %6568 = vpow2.f32 %v6115_v16  ;;  %v3712_v44 = vsel %vm3711_vm12, %v6555_v5, %v3708_v35  ;;  %v2374_v7 = vadd.f32 %v2373_v38, %v8230_v49 }
 0x3b1   :  { %2537 = vmatmul.bf16.gmra.mxu1 %v8209_v53  ;;  %2586 = vmatmul.bf16.gmra.mxu2 %v8209_v53  ;;  %v3753_v15 = vadd.f32 %v6557_v63, %v3752_v56  ;;  %6570 = vrcp.f32 %v8709_v58  ;;  %v3717_v29 = vsel %vm3714_vm13, %v3716_v39, %v3712_v44  ;;  %v8723_v47 = vadd.f32 1.0, %v6561_v9 }
 0x3b2   :  { %v6563_v45 = vpop.eup %6562  ;;  %v6113_v24 = vmul.f32 -1.442695, %v2227_v62  ;;  %v2279_v55 = vadd.f32 %v2278_v54, %v8218_v59  ;;  %5064 = vst [vmem:[%s10640_s10 + $0x140] sm:$0xff] %v3717_v29  ;;  %vm3759_vm15 = vcmp.eq.f32.partialorder %v3758_v34, 8.507059e+37  ;;  %v3848_v31 = vand.u32 2147483647, %v8709_v58 }
 0x3b3   :  { %v3757_v53 = vsel %vm3756_vm14, %v6557_v63, %v3753_v15  ;;  %v8729_v2 = vadd.f32 1.0, %v6563_v45  ;;  %6572 = vrcp.f32 %v8723_v47  ;;  %v2328_v42 = vadd.f32 %v2327_v3, %v8220_v26 }
 0x3b4   :  { %v6565_v28 = vpop.eup %6564  ;;  %v3762_v43 = vsel %vm3759_vm15, %v3761_v46, %v3757_v53  ;;  %v3850_v1 = vand.u32 2147483648, %v8709_v58  ;;  %v6116_v50 = vmul.f32 -1.442695, %v2374_v7  ;;  %v8741_v14 = vmul.f32 -1.442695, %v2279_v55 }
 0x3b5   :  { %v6567_v30 = vpop.eup %6566  ;;  %5067 = vst [vmem:[%s10640_s10 + $0x158] sm:$0xff] %v3762_v43  ;;  %6574 = vrcp.f32 %v8729_v2  ;;  %v8739_v57 = vadd.f32 1.0, %v6565_v28  ;;  %vm3844_vm0 = vweird.f32 %v8709_v58  ;;  %v3863_v20 = vand.u32 2147483647, %v8723_v47 }
 0x3b6   :  { %v6569_v61 = vpop.eup %6568  ;;  %6576 = vpow2.f32 %v6113_v24  ;;  %v3865_v51 = vand.u32 2147483648, %v8723_v47  ;;  %v8746_v17 = vadd.f32 1.0, %v6567_v30  ;;  %vm8749_vm1 = vcmp.eq.f32.partialorder %v3848_v31, 8.507059e+37 }
 0x3b7   :  { %v6571_v18 = vpop.eup %6570  ;;  %v3833_v5 = vand.u32 2147483647, %v8729_v2  ;;  %v8754_v12 = vmul.f32 -1.442695, %v2328_v42  ;;  %v3851_v8 = vor.u32 1.1754944e-38, %v3850_v1  ;;  %v3835_v4 = vand.u32 2147483648, %v8729_v2 }
 0x3b8   :  { %v3840_v22 = vmul.f32 %v6571_v18, %v8709_v58  ;;  %6578 = vrcp.f32 %v8739_v57  ;;  %v8758_v13 = vadd.f32 1.0, %v6569_v61  ;;  %vm3859_vm2 = vweird.f32 %v8723_v47 }
 0x3b9   :  { %v6573_v25 = vpop.eup %6572  ;;  %vm3829_vm3 = vweird.f32 %v8729_v2  ;;  %6580 = vrcp.f32 %v8746_v17  ;;  %vm3845_vm4 = vweird.f32 %v6571_v18  ;;  %vm8764_vm5 = vcmp.eq.f32.partialorder %v3863_v20, 8.507059e+37 }
 0x3ba   :  { %v3841_v48 = vsub.f32 1.0, %v3840_v22  ;;  %v3855_v11 = vmul.f32 %v6573_v25, %v8723_v47  ;;  %v3866_v0 = vor.u32 1.1754944e-38, %v3865_v51  ;;  %vm8769_vm6 = vcmp.eq.f32.partialorder %v3833_v5, 8.507059e+37  ;;  %vm3846_vm8 = vmor %vm3844_vm0, %vm3845_vm4  ;;  %v2229_v47 = vpop.f32.mrf.mxu3 }
 0x3bb   :  { %v6575_v63 = vpop.eup %6574  ;;  %v3878_v36 = vand.u32 2147483647, %v8739_v57  ;;  %v3836_v40 = vor.u32 1.1754944e-38, %v3835_v4  ;;  %v3880_v37 = vand.u32 2147483648, %v8739_v57  ;;  %6582 = vrcp.f32 %v8758_v13 }
 0x3bc   :  { %v6577_v33 = vpop.eup %6576  ;;  %v3842_v60 = vmul.f32 %v6571_v18, %v3841_v48  ;;  %v3825_v6 = vmul.f32 %v6575_v63, %v8729_v2  ;;  %v3856_v52 = vsub.f32 1.0, %v3855_v11  ;;  %vm3874_vm7 = vweird.f32 %v8739_v57 }
 0x3bd   :  { %v3968_v16 = vand.u32 2147483647, %v8746_v17  ;;  %vm3860_vm9 = vweird.f32 %v6573_v25  ;;  %vm3964_vm10 = vweird.f32 %v8746_v17  ;;  %v8782_v62 = vadd.f32 1.0, %v6577_v33  ;;  %v2329_v33 = vpop.f32.mrf.mxu1 }
 0x3be   :  { %v3843_v23 = vadd.f32 %v6571_v18, %v3842_v60  ;;  %v3826_v32 = vsub.f32 1.0, %v3825_v6  ;;  %v6579_v19 = vpop.eup %6578  ;;  %v3857_v34 = vmul.f32 %v6573_v25, %v3856_v52  ;;  %6584 = vpow2.f32 %v6116_v50  ;;  %vm3861_vm13 = vmor %vm3859_vm2, %vm3860_vm9 }
 0x3bf   :  { %v6581_v38 = vpop.eup %6580  ;;  %vm3830_vm11 = vweird.f32 %v6575_v63  ;;  %v3870_v54 = vmul.f32 %v6579_v19, %v8739_v57  ;;  %vm8785_vm12 = vcmp.eq.f32.partialorder %v3878_v36, 8.507059e+37  ;;  %v3881_v46 = vor.u32 1.1754944e-38, %v3880_v37 }
 0x3c0   :  { %v3847_v35 = vsel %vm3846_vm8, %v6571_v18, %v3843_v23  ;;  %v3827_v56 = vmul.f32 %v6575_v63, %v3826_v32  ;;  %v3858_v39 = vadd.f32 %v6573_v25, %v3857_v34  ;;  %v3960_v44 = vmul.f32 %v6581_v38, %v8746_v17  ;;  %vm3831_vm15 = vmor %vm3829_vm3, %vm3830_vm11 }
 0x3c1   :  { %v3852_v58 = vsel %vm8749_vm1, %v3851_v8, %v3847_v35  ;;  %v3871_v7 = vsub.f32 1.0, %v3870_v54  ;;  %vm8798_vm14 = vcmp.eq.f32.partialorder %v3968_v16, 8.507059e+37  ;;  %v3970_v45 = vand.u32 2147483648, %v8746_v17  ;;  %v6583_v29 = vpop.eup %6582 }
 0x3c2   :  { %5073 = vst [vmem:[%s10640_s10 + $0x188] sm:$0xff] %v3852_v58  ;;  %v3828_v15 = vadd.f32 %v6575_v63, %v3827_v56  ;;  %v3862_v24 = vsel %vm3861_vm13, %v6573_v25, %v3858_v39  ;;  %vm3875_vm0 = vweird.f32 %v6579_v19  ;;  %v3961_v55 = vsub.f32 1.0, %v3960_v44  ;;  %v2231_v16 = vpop.f32.mrf.mxu3 }
 0x3c3   :  { %6586 = vrcp.f32 %v8782_v62  ;;  %v3867_v53 = vsel %vm8764_vm5, %v3866_v0, %v3862_v24  ;;  %v3872_v43 = vmul.f32 %v6579_v19, %v3871_v7  ;;  %v3975_v31 = vmul.f32 %v6583_v29, %v8758_v13  ;;  %vm3876_vm2 = vmor %vm3874_vm7, %vm3875_vm0 }
 0x3c4   :  { %v3832_v28 = vsel %vm3831_vm15, %v6575_v63, %v3828_v15  ;;  %v6585_v42 = vpop.eup %6584  ;;  %5074 = vst [vmem:[%s10640_s10 + $0x190] sm:$0xff] %v3867_v53  ;;  %v3962_v30 = vmul.f32 %v6581_v38, %v3961_v55  ;;  %vm3965_vm1 = vweird.f32 %v6581_v38  ;;  %v3983_v1 = vand.u32 2147483647, %v8758_v13  ;;  %v2280_v63 = vpop.f32.mrf.mxu0 }
 0x3c5   :  { %v3837_v2 = vsel %vm8769_vm6, %v3836_v40, %v3832_v28  ;;  %v3873_v61 = vadd.f32 %v6579_v19, %v3872_v43  ;;  %v3976_v50 = vsub.f32 1.0, %v3975_v31  ;;  %v3985_v18 = vand.u32 2147483648, %v8758_v13  ;;  %vm3966_vm3 = vmor %vm3964_vm10, %vm3965_vm1 }
 0x3c6   :  { %5072 = vst [vmem:[%s10640_s10 + $0x180] sm:$0xff] %v3837_v2  ;;  %v8820_v20 = vadd.f32 1.0, %v6585_v42  ;;  %v3963_v51 = vadd.f32 %v6581_v38, %v3962_v30  ;;  %v3971_v22 = vor.u32 1.1754944e-38, %v3970_v45  ;;  %6588 = vpow2.f32 %v8741_v14  ;;  %v2376_v14 = vpop.f32.mrf.mxu2 }
 0x3c7   :  { %v2230_v21 = vadd.f32 %v2229_v47, %v8226_v41  ;;  %v3877_v5 = vsel %vm3876_vm2, %v6579_v19, %v3873_v61  ;;  %v3977_v8 = vmul.f32 %v6583_v29, %v3976_v50  ;;  %vm3980_vm4 = vweird.f32 %v6583_v29 }
 0x3c8   :  { %6590 = vrcp.f32 %v8820_v20  ;;  %v3882_v25 = vsel %vm8785_vm12, %v3881_v46, %v3877_v5  ;;  %v3967_v57 = vsel %vm3966_vm3, %v6581_v38, %v3963_v51  ;;  %vm3979_vm5 = vweird.f32 %v8758_v13 }
 0x3c9   :  { %v6587_v4 = vpop.eup %6586  ;;  %vm8833_vm6 = vcmp.eq.f32.partialorder %v3983_v1, 8.507059e+37  ;;  %5075 = vst [vmem:[%s10640_s10 + $0x198] sm:$0xff] %v3882_v25  ;;  %v3972_v17 = vsel %vm8798_vm14, %v3971_v22, %v3967_v57  ;;  %v3978_v11 = vadd.f32 %v6583_v29, %v3977_v8  ;;  %v3986_v10 = vor.u32 1.1754944e-38, %v3985_v18  ;;  %vm3981_vm7 = vmor %vm3979_vm5, %vm3980_vm4 }
 0x3ca   :  { %v3945_v0 = vmul.f32 %v6587_v4, %v8782_v62  ;;  %5081 = vst [vmem:[%s10640_s10 + $0x1c8] sm:$0xff] %v3972_v17  ;;  %v3953_v13 = vand.u32 2147483647, %v8782_v62  ;;  %v3955_v60 = vand.u32 2147483648, %v8782_v62  ;;  %6592 = vpow2.f32 %v8754_v12  ;;  %v2332_v17 = vpop.f32.mrf.mxu1 }
 0x3cb   :  { %v6121_v6 = vmul.f32 -1.442695, %v2230_v21  ;;  %v3982_v27 = vsel %vm3981_vm7, %v6583_v29, %v3978_v11  ;;  %v2377_v52 = vadd.f32 %v2376_v14, %v8230_v49  ;;  %v2281_v40 = vadd.f32 %v2280_v63, %v8218_v59 }
 0x3cc   :  { %v3946_v36 = vsub.f32 1.0, %v3945_v0  ;;  %v6589_v37 = vpop.eup %6588  ;;  %v3987_v23 = vsel %vm8833_vm6, %v3986_v10, %v3982_v27  ;;  %vm3950_vm8 = vweird.f32 %v6587_v4  ;;  %v2330_v32 = vadd.f32 %v2329_v33, %v8220_v26  ;;  %v2283_v22 = vpop.f32.mrf.mxu0 }
 0x3cd   :  { %6594 = vpow2.f32 %v6121_v6  ;;  %5082 = vst [vmem:[%s10640_s10 + $0x1d0] sm:$0xff] %v3987_v23  ;;  %v8858_v34 = vadd.f32 1.0, %v6589_v37  ;;  %v6124_v38 = vmul.f32 -1.442695, %v2377_v52  ;;  %v6130_v35 = vmul.f32 -1.442695, %v2281_v40 }
 0x3ce   :  { %v6591_v19 = vpop.eup %6590  ;;  %v3947_v12 = vmul.f32 %v6587_v4, %v3946_v36  ;;  %vm3949_vm9 = vweird.f32 %v8782_v62  ;;  %vm8861_vm10 = vcmp.eq.f32.partialorder %v3953_v13, 8.507059e+37  ;;  %v6131_v9 = vmul.f32 -1.442695, %v2330_v32  ;;  %v2378_v42 = vpop.f32.mrf.mxu2 }
 0x3cf   :  { %v3990_v54 = vmul.f32 %v6591_v19, %v8820_v20  ;;  %v3956_v39 = vor.u32 1.1754944e-38, %v3955_v60  ;;  %6596 = vrcp.f32 %v8858_v34  ;;  %v2232_v46 = vadd.f32 %v2231_v16, %v8226_v41  ;;  %vm3951_vm11 = vmor %vm3949_vm9, %vm3950_vm8 }
 0x3d0   :  { %v3948_v58 = vadd.f32 %v6587_v4, %v3947_v12  ;;  %v6593_v44 = vpop.eup %6592  ;;  %v3998_v7 = vand.u32 2147483647, %v8820_v20  ;;  %v4000_v62 = vand.u32 2147483648, %v8820_v20  ;;  %6598 = vpow2.f32 %v6124_v38 }
 0x3d1   :  { %v3991_v15 = vsub.f32 1.0, %v3990_v54  ;;  %vm3995_vm12 = vweird.f32 %v6591_v19  ;;  %v8871_v45 = vadd.f32 1.0, %v6593_v44  ;;  %6600 = vpow2.f32 %v6130_v35 }
 0x3d2   :  { %v3952_v3 = vsel %vm3951_vm11, %v6587_v4, %v3948_v58  ;;  %v4088_v47 = vand.u32 2147483647, %v8858_v34  ;;  %6602 = vpow2.f32 %v6131_v9  ;;  %v4090_v53 = vand.u32 2147483648, %v8858_v34 }
 0x3d3   :  { %v6595_v29 = vpop.eup %6594  ;;  %v3957_v24 = vsel %vm8861_vm10, %v3956_v39, %v3952_v3  ;;  %v3992_v55 = vmul.f32 %v6591_v19, %v3991_v15  ;;  %6604 = vrcp.f32 %v8871_v45  ;;  %v6129_v28 = vmul.f32 -1.442695, %v2232_v46 }
 0x3d4   :  { %5080 = vst [vmem:[%s10640_s10 + $0x1c0] sm:$0xff] %v3957_v24  ;;  %vm3994_vm13 = vweird.f32 %v8820_v20  ;;  %v8882_v31 = vadd.f32 1.0, %v6595_v29  ;;  %vm3999_vm15 = vcmp.eq.f32.partialorder %v3998_v7, 8.507059e+37  ;;  %v4001_v30 = vor.u32 1.1754944e-38, %v4000_v62 }
 0x3d5   :  { %v3993_v43 = vadd.f32 %v6591_v19, %v3992_v55  ;;  %v6597_v2 = vpop.eup %6596  ;;  %vm3996_vm14 = vmor %vm3994_vm13, %vm3995_vm12  ;;  %vm4084_vm0 = vweird.f32 %v8858_v34  ;;  %v4105_v1 = vand.u32 2147483648, %v8871_v45  ;;  %vm8888_vm1 = vcmp.eq.f32.partialorder %v4088_v47, 8.507059e+37 }
 0x3d6   :  { %v6599_v61 = vpop.eup %6598  ;;  %v4080_v18 = vmul.f32 %v6597_v2, %v8858_v34  ;;  %v4103_v20 = vand.u32 2147483647, %v8871_v45  ;;  %6606 = vrcp.f32 %v8882_v31  ;;  %v4091_v8 = vor.u32 1.1754944e-38, %v4090_v53 }
 0x3d7   :  { %v3997_v50 = vsel %vm3996_vm14, %v6591_v19, %v3993_v43  ;;  %v6601_v21 = vpop.eup %6600  ;;  %6608 = vpow2.f32 %v6129_v28  ;;  %v2379_v4 = vadd.f32 %v2378_v42, %v8230_v49  ;;  %v4075_v48 = vand.u32 2147483648, %v8882_v31  ;;  %v2234_v43 = vpop.f32.mrf.mxu3 }
 0x3d8   :  { %v4002_v5 = vsel %vm3999_vm15, %v4001_v30, %v3997_v50  ;;  %v6603_v25 = vpop.eup %6602  ;;  %v4081_v57 = vsub.f32 1.0, %v4080_v18  ;;  %v8899_v14 = vadd.f32 1.0, %v6599_v61  ;;  %v8901_v63 = vadd.f32 1.0, %v6601_v21 }
 0x3d9   :  { %5083 = vst [vmem:[%s10640_s10 + $0x1d8] sm:$0xff] %v4002_v5  ;;  %v6605_v11 = vpop.eup %6604  ;;  %vm4099_vm2 = vweird.f32 %v8871_v45  ;;  %v4106_v10 = vor.u32 1.1754944e-38, %v4105_v1  ;;  %v4073_v0 = vand.u32 2147483647, %v8882_v31  ;;  %v2284_v33 = vadd.f32 %v2283_v22, %v8218_v59  ;;  %v2285_v5 = vpop.f32.mrf.mxu0 }
 0x3da   :  { %v4082_v13 = vmul.f32 %v6597_v2, %v4081_v57  ;;  %vm4085_vm3 = vweird.f32 %v6597_v2  ;;  %v4095_v60 = vmul.f32 %v6605_v11, %v8871_v45  ;;  %vm8907_vm4 = vcmp.eq.f32.partialorder %v4103_v20, 8.507059e+37 }
 0x3db   :  { %6610 = vrcp.f32 %v8899_v14  ;;  %vm4069_vm5 = vweird.f32 %v8882_v31  ;;  %v8914_v27 = vadd.f32 1.0, %v6603_v25  ;;  %v8917_v36 = vadd.f32 %v2332_v17, %v8220_v26  ;;  %vm4086_vm6 = vmor %vm4084_vm0, %vm4085_vm3 }
 0x3dc   :  { %6612 = vrcp.f32 %v8901_v63  ;;  %v6607_v52 = vpop.eup %6606  ;;  %v4083_v40 = vadd.f32 %v6597_v2, %v4082_v13  ;;  %v4096_v37 = vsub.f32 1.0, %v4095_v60  ;;  %v4076_v23 = vor.u32 1.1754944e-38, %v4075_v48 }
 0x3dd   :  { %v6132_v32 = vmul.f32 -1.442695, %v2379_v4  ;;  %v6609_v16 = vpop.eup %6608  ;;  %vm4100_vm7 = vweird.f32 %v6605_v11  ;;  %v4065_v19 = vmul.f32 %v6607_v52, %v8882_v31  ;;  %vm8922_vm8 = vcmp.eq.f32.partialorder %v4073_v0, 8.507059e+37  ;;  %v2381_v31 = vpop.f32.mrf.mxu2 }
 0x3de   :  { %v4118_v38 = vand.u32 2147483647, %v8899_v14  ;;  %v6138_v35 = vmul.f32 -1.442695, %v2284_v33  ;;  %v4087_v56 = vsel %vm4086_vm6, %v6597_v2, %v4083_v40  ;;  %v4097_v54 = vmul.f32 %v6605_v11, %v4096_v37  ;;  %vm4101_vm12 = vmor %vm4099_vm2, %vm4100_vm7 }
 0x3df   :  { %v4120_v9 = vand.u32 2147483648, %v8899_v14  ;;  %v4208_v58 = vand.u32 2147483647, %v8901_v63  ;;  %v4092_v34 = vsel %vm8888_vm1, %v4091_v8, %v4087_v56  ;;  %v4066_v39 = vsub.f32 1.0, %v4065_v19 }
 0x3e0   :  { %vm4114_vm9 = vweird.f32 %v8899_v14  ;;  %6614 = vrcp.f32 %v8914_v27  ;;  %5089 = vst [vmem:[%s10640_s10 + $0x208] sm:$0xff] %v4092_v34  ;;  %v4098_v44 = vadd.f32 %v6605_v11, %v4097_v54  ;;  %vm4070_vm10 = vweird.f32 %v6607_v52 }
 0x3e1   :  { %v6611_v46 = vpop.eup %6610  ;;  %vm4204_vm11 = vweird.f32 %v8901_v63  ;;  %v4210_v15 = vand.u32 2147483648, %v8901_v63  ;;  %v4067_v62 = vmul.f32 %v6607_v52, %v4066_v39  ;;  %vm8942_vm13 = vcmp.eq.f32.partialorder %v4118_v38, 8.507059e+37  ;;  %vm4071_vm15 = vmor %vm4069_vm5, %vm4070_vm10  ;;  %v2236_v38 = vpop.f32.mrf.mxu3 }
 0x3e2   :  { %v6613_v7 = vpop.eup %6612  ;;  %v4110_v3 = vmul.f32 %v6611_v46, %v8899_v14  ;;  %v8946_v24 = vadd.f32 1.0, %v6609_v16  ;;  %v4102_v55 = vsel %vm4101_vm12, %v6605_v11, %v4098_v44  ;;  %v4121_v47 = vor.u32 1.1754944e-38, %v4120_v9 }
 0x3e3   :  { %v4200_v53 = vmul.f32 %v6613_v7, %v8901_v63  ;;  %vm8949_vm14 = vcmp.eq.f32.partialorder %v4208_v58, 8.507059e+37  ;;  %v4107_v45 = vsel %vm8907_vm4, %v4106_v10, %v4102_v55  ;;  %v4068_v42 = vadd.f32 %v6607_v52, %v4067_v62 }
 0x3e4   :  { %v4111_v2 = vsub.f32 1.0, %v4110_v3  ;;  %v4223_v30 = vand.u32 2147483647, %v8914_v27  ;;  %5090 = vst [vmem:[%s10640_s10 + $0x210] sm:$0xff] %v4107_v45  ;;  %v4211_v61 = vor.u32 1.1754944e-38, %v4210_v15  ;;  %vm4219_vm0 = vweird.f32 %v8914_v27  ;;  %v2288_v45 = vpop.f32.mrf.mxu0 }
 0x3e5   :  { %v4201_v1 = vsub.f32 1.0, %v4200_v53  ;;  %6616 = vrcp.f32 %v8946_v24  ;;  %v4072_v18 = vsel %vm4071_vm15, %v6607_v52, %v4068_v42  ;;  %vm4115_vm1 = vweird.f32 %v6611_v46  ;;  %v2383_v29 = vpop.f32.mrf.mxu2 }
 0x3e6   :  { %v6615_v50 = vpop.eup %6614  ;;  %v4112_v51 = vmul.f32 %v6611_v46, %v4111_v2  ;;  %6618 = vpow2.f32 %v6132_v32  ;;  %v4077_v20 = vsel %vm8922_vm8, %v4076_v23, %v4072_v18  ;;  %vm4205_vm2 = vweird.f32 %v6613_v7  ;;  %vm4116_vm4 = vmor %vm4114_vm9, %vm4115_vm1 }
 0x3e7   :  { %v4202_v22 = vmul.f32 %v6613_v7, %v4201_v1  ;;  %v4215_v21 = vmul.f32 %v6615_v50, %v8914_v27  ;;  %5088 = vst [vmem:[%s10640_s10 + $0x200] sm:$0xff] %v4077_v20  ;;  %vm8970_vm3 = vcmp.eq.f32.partialorder %v4223_v30, 8.507059e+37  ;;  %v4225_v25 = vand.u32 2147483648, %v8914_v27  ;;  %vm4206_vm5 = vmor %vm4204_vm11, %vm4205_vm2 }
 0x3e8   :  { %v4113_v8 = vadd.f32 %v6611_v46, %v4112_v51  ;;  %6620 = vpow2.f32 %v6138_v35  ;;  %v6139_v17 = vmul.f32 -1.442695, %v8917_v36  ;;  %v2235_v11 = vadd.f32 %v2234_v43, %v8226_v41  ;;  %v2334_v36 = vpop.f32.mrf.mxu1 }
 0x3e9   :  { %v4203_v57 = vadd.f32 %v6613_v7, %v4202_v22  ;;  %v4216_v48 = vsub.f32 1.0, %v4215_v21  ;;  %vm4220_vm6 = vweird.f32 %v6615_v50  ;;  %v2382_v0 = vadd.f32 %v2381_v31, %v8230_v49 }
 0x3ea   :  { %v4117_v10 = vsel %vm4116_vm4, %v6611_v46, %v4113_v8  ;;  %v2286_v33 = vadd.f32 %v2285_v5, %v8218_v59  ;;  %6622 = vpow2.f32 %v6139_v17  ;;  %v4226_v40 = vor.u32 1.1754944e-38, %v4225_v25  ;;  %vm4221_vm7 = vmor %vm4219_vm0, %vm4220_vm6 }
 0x3eb   :  { %v6617_v13 = vpop.eup %6616  ;;  %v4122_v14 = vsel %vm8942_vm13, %v4121_v47, %v4117_v10  ;;  %v4207_v60 = vsel %vm4206_vm5, %v6613_v7, %v4203_v57  ;;  %v4217_v6 = vmul.f32 %v6615_v50, %v4216_v48  ;;  %v6137_v23 = vmul.f32 -1.442695, %v2235_v11 }
 0x3ec   :  { %v6619_v52 = vpop.eup %6618  ;;  %5091 = vst [vmem:[%s10640_s10 + $0x218] sm:$0xff] %v4122_v14  ;;  %v4212_v63 = vsel %vm8949_vm14, %v4211_v61, %v4207_v60  ;;  %v4185_v37 = vmul.f32 %v6617_v13, %v8946_v24  ;;  %v4193_v16 = vand.u32 2147483647, %v8946_v24  ;;  %v6140_v12 = vmul.f32 -1.442695, %v2382_v0 }
 0x3ed   :  { %5097 = vst [vmem:[%s10640_s10 + $0x248] sm:$0xff] %v4212_v63  ;;  %v4218_v32 = vadd.f32 %v6615_v50, %v4217_v6  ;;  %v8996_v19 = vadd.f32 1.0, %v6619_v52  ;;  %v4195_v54 = vand.u32 2147483648, %v8946_v24  ;;  %6624 = vpow2.f32 %v6137_v23 }
 0x3ee   :  { %v6621_v35 = vpop.eup %6620  ;;  %v4186_v56 = vsub.f32 1.0, %v4185_v37  ;;  %v2335_v9 = vadd.f32 %v2334_v36, %v8220_v26  ;;  %vm4190_vm8 = vweird.f32 %v6617_v13  ;;  %v6146_v34 = vmul.f32 -1.442695, %v2286_v33 }
 0x3ef   :  { %v4222_v58 = vsel %vm4221_vm7, %v6615_v50, %v4218_v32  ;;  %6626 = vrcp.f32 %v8996_v19  ;;  %v9006_v44 = vadd.f32 1.0, %v6621_v35  ;;  %v2237_v27 = vadd.f32 %v2236_v38, %v8226_v41 }
 0x3f0   :  { %v4227_v39 = vsel %vm8970_vm3, %v4226_v40, %v4222_v58  ;;  %v4187_v46 = vmul.f32 %v6617_v13, %v4186_v56  ;;  %v6623_v15 = vpop.eup %6622  ;;  %vm4189_vm9 = vweird.f32 %v8946_v24  ;;  %6628 = vpow2.f32 %v6140_v12 }
 0x3f1   :  { %5098 = vst [vmem:[%s10640_s10 + $0x250] sm:$0xff] %v4227_v39  ;;  %v4238_v62 = vand.u32 2147483647, %v8996_v19  ;;  %6630 = vrcp.f32 %v9006_v44  ;;  %v6147_v3 = vmul.f32 -1.442695, %v2335_v9  ;;  %vm4191_vm10 = vmor %vm4189_vm9, %vm4190_vm8  ;;  %v4196_v55 = vor.u32 1.1754944e-38, %v4195_v54 }
 0x3f2   :  { %v4188_v7 = vadd.f32 %v6617_v13, %v4187_v46  ;;  %v4240_v47 = vand.u32 2147483648, %v8996_v19  ;;  %v9017_v53 = vadd.f32 1.0, %v6623_v15  ;;  %vm4194_vm11 = vcmp.eq.f32.partialorder %v4193_v16, 8.507059e+37 }
 0x3f3   :  { %v6625_v28 = vpop.eup %6624  ;;  %6632 = vpow2.f32 %v6146_v34  ;;  %v6145_v24 = vmul.f32 -1.442695, %v2237_v27  ;;  %vm4234_vm12 = vweird.f32 %v8996_v19  ;;  %v2384_v30 = vadd.f32 %v2383_v29, %v8230_v49 }
 0x3f4   :  { %v4192_v43 = vsel %vm4191_vm10, %v6617_v13, %v4188_v7  ;;  %6634 = vrcp.f32 %v9017_v53  ;;  %vm9026_vm13 = vcmp.eq.f32.partialorder %v4238_v62, 8.507059e+37  ;;  %v4328_v50 = vand.u32 2147483647, %v9006_v44 }
 0x3f5   :  { %v6627_v42 = vpop.eup %6626  ;;  %v4197_v2 = vsel %vm4194_vm11, %v4196_v55, %v4192_v43  ;;  %6636 = vpow2.f32 %v6147_v3  ;;  %v4241_v51 = vor.u32 1.1754944e-38, %v4240_v47  ;;  %v4330_v20 = vand.u32 2147483648, %v9006_v44 }
 0x3f6   :  { %5096 = vst [vmem:[%s10640_s10 + $0x240] sm:$0xff] %v4197_v2  ;;  %v4230_v1 = vmul.f32 %v6627_v42, %v8996_v19  ;;  %v6629_v18 = vpop.eup %6628  ;;  %v9032_v22 = vadd.f32 1.0, %v6625_v28  ;;  %v2289_v21 = vadd.f32 %v2288_v45, %v8218_v59  ;;  %v4343_v8 = vand.u32 2147483647, %v9017_v53 }
 0x3f7   :  { %v6631_v31 = vpop.eup %6630  ;;  %v9036_v4 = vadd.f32 1.0, %v6629_v18  ;;  %6638 = vpow2.f32 %v6145_v24  ;;  %v4345_v57 = vand.u32 2147483648, %v9017_v53  ;;  %v6148_v48 = vmul.f32 -1.442695, %v2384_v30 }
 0x3f8   :  { %v4231_v5 = vsub.f32 1.0, %v4230_v1  ;;  %v4320_v25 = vmul.f32 %v6631_v31, %v9006_v44  ;;  %6640 = vrcp.f32 %v9032_v22  ;;  %vm4235_vm14 = vweird.f32 %v6627_v42 }
 0x3f9   :  { %v6633_v17 = vpop.eup %6632  ;;  %vm4324_vm15 = vweird.f32 %v9006_v44  ;;  %vm9042_vm0 = vcmp.eq.f32.partialorder %v4328_v50, 8.507059e+37  ;;  %v4331_v13 = vor.u32 1.1754944e-38, %v4330_v20  ;;  %vm4339_vm1 = vweird.f32 %v9017_v53  ;;  %vm4236_vm3 = vmor %vm4234_vm12, %vm4235_vm14 }
 0x3fa   :  { %v4232_v11 = vmul.f32 %v6627_v42, %v4231_v5  ;;  %v6635_v0 = vpop.eup %6634  ;;  %v4321_v33 = vsub.f32 1.0, %v4320_v25  ;;  %6642 = vrcp.f32 %v9036_v4  ;;  %vm9049_vm2 = vcmp.eq.f32.partialorder %v4343_v8, 8.507059e+37  ;;  %v2239_v25 = vpop.f32.mrf.mxu3 }
 0x3fb   :  { %v6637_v14 = vpop.eup %6636  ;;  %v4335_v6 = vmul.f32 %v6635_v0, %v9017_v53  ;;  %v9053_v52 = vmul.f32 -1.442695, %v2289_v21  ;;  %vm4325_vm4 = vweird.f32 %v6631_v31  ;;  %v4346_v40 = vor.u32 1.1754944e-38, %v4345_v57 }
 0x3fc   :  { %v4233_v60 = vadd.f32 %v6627_v42, %v4232_v11  ;;  %v4322_v63 = vmul.f32 %v6631_v31, %v4321_v33  ;;  %6644 = vpow2.f32 %v6148_v48  ;;  %vm4309_vm5 = vweird.f32 %v9032_v22  ;;  %vm4326_vm6 = vmor %vm4324_vm15, %vm4325_vm4  ;;  %v2386_v33 = vpop.f32.mrf.mxu2 }
 0x3fd   :  { %v6639_v37 = vpop.eup %6638  ;;  %v4336_v32 = vsub.f32 1.0, %v4335_v6  ;;  %v4313_v16 = vand.u32 2147483647, %v9032_v22  ;;  %v9059_v12 = vadd.f32 1.0, %v6633_v17  ;;  %v4315_v19 = vand.u32 2147483648, %v9032_v22 }
 0x3fe   :  { %v4237_v23 = vsel %vm4236_vm3, %v6627_v42, %v4233_v60  ;;  %v6641_v38 = vpop.eup %6640  ;;  %v4323_v56 = vadd.f32 %v6631_v31, %v4322_v63  ;;  %v9064_v54 = vadd.f32 1.0, %v6637_v14  ;;  %vm4340_vm7 = vweird.f32 %v6635_v0  ;;  %v2337_v42 = vpop.f32.mrf.mxu1 }
 0x3ff   :  { %v4242_v35 = vsel %vm9026_vm13, %v4241_v51, %v4237_v23  ;;  %v4337_v9 = vmul.f32 %v6635_v0, %v4336_v32  ;;  %v4305_v58 = vmul.f32 %v6641_v38, %v9032_v22  ;;  %vm4354_vm8 = vweird.f32 %v9036_v4  ;;  %vm4341_vm9 = vmor %vm4339_vm1, %vm4340_vm7 }
 0x400   :  { %5099 = vst [vmem:[%s10640_s10 + $0x258] sm:$0xff] %v4242_v35  ;;  %6646 = vrcp.f32 %v9059_v12  ;;  %v6643_v34 = vpop.eup %6642  ;;  %v4327_v39 = vsel %vm4326_vm6, %v6631_v31, %v4323_v56  ;;  %v4358_v46 = vand.u32 2147483647, %v9036_v4  ;;  %v4360_v27 = vand.u32 2147483648, %v9036_v4  ;;  %v2290_v35 = vpop.f32.mrf.mxu0 }
 0x401   :  { %v9077_v15 = vadd.f32 1.0, %v6639_v37  ;;  %v4332_v44 = vsel %vm9042_vm0, %v4331_v13, %v4327_v39  ;;  %v4338_v7 = vadd.f32 %v6635_v0, %v4337_v9  ;;  %v4306_v62 = vsub.f32 1.0, %v4305_v58 }
 0x402   :  { %v4350_v3 = vmul.f32 %v6643_v34, %v9036_v4  ;;  %v6645_v29 = vpop.eup %6644  ;;  %5105 = vst [vmem:[%s10640_s10 + $0x288] sm:$0xff] %v4332_v44  ;;  %vm9088_vm10 = vcmp.eq.f32.partialorder %v4313_v16, 8.507059e+37  ;;  %v4448_v47 = vand.u32 2147483647, %v9059_v12  ;;  %v4450_v28 = vand.u32 2147483648, %v9059_v12 }
 0x403   :  { %6648 = vrcp.f32 %v9064_v54  ;;  %v4342_v43 = vsel %vm4341_vm9, %v6635_v0, %v4338_v7  ;;  %v4307_v24 = vmul.f32 %v6641_v38, %v4306_v62  ;;  %vm4310_vm11 = vweird.f32 %v6641_v38 }
 0x404   :  { %v4351_v45 = vsub.f32 1.0, %v4350_v3  ;;  %v4347_v2 = vsel %vm9049_vm2, %v4346_v40, %v4342_v43  ;;  %v4316_v53 = vor.u32 1.1754944e-38, %v4315_v19  ;;  %vm9097_vm12 = vcmp.eq.f32.partialorder %v4358_v46, 8.507059e+37  ;;  %vm4311_vm14 = vmor %vm4309_vm5, %vm4310_vm11 }
 0x405   :  { %6650 = vrcp.f32 %v9077_v15  ;;  %5106 = vst [vmem:[%s10640_s10 + $0x290] sm:$0xff] %v4347_v2  ;;  %v4308_v61 = vadd.f32 %v6641_v38, %v4307_v24  ;;  %vm4355_vm13 = vweird.f32 %v6643_v34  ;;  %v4361_v18 = vor.u32 1.1754944e-38, %v4360_v27 }
 0x406   :  { %v6647_v1 = vpop.eup %6646  ;;  %v4352_v50 = vmul.f32 %v6643_v34, %v4351_v45  ;;  %vm4444_vm15 = vweird.f32 %v9059_v12  ;;  %vm9109_vm0 = vcmp.eq.f32.partialorder %v4448_v47, 8.507059e+37  ;;  %v4451_v21 = vor.u32 1.1754944e-38, %v4450_v28  ;;  %vm4356_vm2 = vmor %vm4354_vm8, %vm4355_vm13  ;;  %v2339_v56 = vpop.f32.mrf.mxu1 }
 0x407   :  { %v4440_v51 = vmul.f32 %v6647_v1, %v9059_v12  ;;  %v4312_v31 = vsel %vm4311_vm14, %v6641_v38, %v4308_v61  ;;  %vm4459_vm1 = vweird.f32 %v9064_v54  ;;  %v4463_v8 = vand.u32 2147483647, %v9064_v54  ;;  %v2241_v28 = vpop.f32.mrf.mxu3 }
 0x408   :  { %v4353_v5 = vadd.f32 %v6643_v34, %v4352_v50  ;;  %v4317_v22 = vsel %vm9088_vm10, %v4316_v53, %v4312_v31  ;;  %v9119_v17 = vadd.f32 1.0, %v6645_v29  ;;  %6652 = vpow2.f32 %v9053_v52  ;;  %v2388_v53 = vpop.f32.mrf.mxu2 }
 0x409   :  { %v6649_v57 = vpop.eup %6648  ;;  %v4441_v48 = vsub.f32 1.0, %v4440_v51  ;;  %5104 = vst [vmem:[%s10640_s10 + $0x280] sm:$0xff] %v4317_v22  ;;  %v4465_v0 = vand.u32 2147483648, %v9064_v54  ;;  %vm4429_vm3 = vweird.f32 %v9077_v15  ;;  %vm4445_vm4 = vweird.f32 %v6647_v1 }
 0x40a   :  { %v4357_v11 = vsel %vm4356_vm2, %v6643_v34, %v4353_v5  ;;  %v4455_v10 = vmul.f32 %v6649_v57, %v9064_v54  ;;  %6654 = vrcp.f32 %v9119_v17  ;;  %vm9134_vm5 = vcmp.eq.f32.partialorder %v4463_v8, 8.507059e+37  ;;  %vm4446_vm6 = vmor %vm4444_vm15, %vm4445_vm4  ;;  %v2293_v8 = vpop.f32.mrf.mxu0 }
 0x40b   :  { %v6651_v13 = vpop.eup %6650  ;;  %v4362_v4 = vsel %vm9097_vm12, %v4361_v18, %v4357_v11  ;;  %v4442_v14 = vmul.f32 %v6647_v1, %v4441_v48  ;;  %v4433_v52 = vand.u32 2147483647, %v9077_v15  ;;  %v4435_v40 = vand.u32 2147483648, %v9077_v15 }
 0x40c   :  { %5107 = vst [vmem:[%s10640_s10 + $0x298] sm:$0xff] %v4362_v4  ;;  %v4456_v60 = vsub.f32 1.0, %v4455_v10  ;;  %v4425_v36 = vmul.f32 %v6651_v13, %v9077_v15  ;;  %v2338_v37 = vadd.f32 %v2337_v42, %v8220_v26  ;;  %v2240_v23 = vadd.f32 %v2239_v25, %v8226_v41 }
 0x40d   :  { %v4443_v63 = vadd.f32 %v6647_v1, %v4442_v14  ;;  %vm4460_vm7 = vweird.f32 %v6649_v57  ;;  %v2387_v38 = vadd.f32 %v2386_v33, %v8230_v49  ;;  %vm4430_vm8 = vweird.f32 %v6651_v13 }
 0x40e   :  { %v4457_v32 = vmul.f32 %v6649_v57, %v4456_v60  ;;  %v4426_v16 = vsub.f32 1.0, %v4425_v36  ;;  %v6653_v19 = vpop.eup %6652  ;;  %v6155_v58 = vmul.f32 -1.442695, %v2338_v37  ;;  %v6153_v34 = vmul.f32 -1.442695, %v2240_v23  ;;  %vm4461_vm9 = vmor %vm4459_vm1, %vm4460_vm7  ;;  %v2342_v25 = vpop.f32.mrf.mxu1 }
 0x40f   :  { %v4447_v9 = vsel %vm4446_vm6, %v6647_v1, %v4443_v63  ;;  %v9148_v44 = vadd.f32 1.0, %v6653_v19  ;;  %v4466_v7 = vor.u32 1.1754944e-38, %v4465_v0  ;;  %v6156_v62 = vmul.f32 -1.442695, %v2387_v38  ;;  %vm4431_vm11 = vmor %vm4429_vm3, %vm4430_vm8  ;;  %v2244_v63 = vpop.f32.mrf.mxu3 }
 0x410   :  { %v4452_v39 = vsel %vm9109_vm0, %v4451_v21, %v4447_v9  ;;  %v4458_v46 = vadd.f32 %v6649_v57, %v4457_v32  ;;  %v4427_v27 = vmul.f32 %v6651_v13, %v4426_v16  ;;  %v6655_v12 = vpop.eup %6654  ;;  %6656 = vpow2.f32 %v6155_v58 }
 0x411   :  { %5113 = vst [vmem:[%s10640_s10 + $0x2c8] sm:$0xff] %v4452_v39  ;;  %v2291_v3 = vadd.f32 %v2290_v35, %v8218_v59  ;;  %vm4434_vm10 = vcmp.eq.f32.partialorder %v4433_v52, 8.507059e+37  ;;  %v4470_v47 = vmul.f32 %v6655_v12, %v9119_v17  ;;  %v4436_v54 = vor.u32 1.1754944e-38, %v4435_v40 }
 0x412   :  { %v4462_v29 = vsel %vm4461_vm9, %v6649_v57, %v4458_v46  ;;  %v4428_v55 = vadd.f32 %v6651_v13, %v4427_v27  ;;  %6658 = vrcp.f32 %v9148_v44  ;;  %v2340_v24 = vadd.f32 %v2339_v56, %v8220_v26 }
 0x413   :  { %v4467_v43 = vsel %vm9134_vm5, %v4466_v7, %v4462_v29  ;;  %v4471_v42 = vsub.f32 1.0, %v4470_v47  ;;  %v4478_v2 = vand.u32 2147483647, %v9119_v17  ;;  %6660 = vpow2.f32 %v6153_v34 }
 0x414   :  { %5114 = vst [vmem:[%s10640_s10 + $0x2d0] sm:$0xff] %v4467_v43  ;;  %v4432_v45 = vsel %vm4431_vm11, %v6651_v13, %v4428_v55  ;;  %v4480_v1 = vand.u32 2147483648, %v9119_v17  ;;  %6662 = vpow2.f32 %v6156_v62  ;;  %v6162_v15 = vmul.f32 -1.442695, %v2291_v3 }
 0x415   :  { %v4437_v30 = vsel %vm4434_vm10, %v4436_v54, %v4432_v45  ;;  %v4472_v61 = vmul.f32 %v6655_v12, %v4471_v42  ;;  %vm4475_vm12 = vweird.f32 %v6655_v12  ;;  %v2242_v50 = vadd.f32 %v2241_v28, %v8226_v41 }
 0x416   :  { %5112 = vst [vmem:[%s10640_s10 + $0x2c0] sm:$0xff] %v4437_v30  ;;  %v6657_v18 = vpop.eup %6656  ;;  %6664 = vpow2.f32 %v6162_v15  ;;  %v6163_v51 = vmul.f32 -1.442695, %v2340_v24  ;;  %v2389_v20 = vadd.f32 %v2388_v53, %v8230_v49  ;;  %vm4474_vm13 = vweird.f32 %v9119_v17 }
 0x417   :  { %v4473_v21 = vadd.f32 %v6655_v12, %v4472_v61  ;;  %v9176_v31 = vadd.f32 1.0, %v6657_v18  ;;  %v6161_v5 = vmul.f32 -1.442695, %v2242_v50  ;;  %vm4476_vm14 = vmor %vm4474_vm13, %vm4475_vm12  ;;  %vm4479_vm15 = vcmp.eq.f32.partialorder %v4478_v2, 8.507059e+37  ;;  %v2246_v50 = vpop.f32.mrf.mxu3 }
 0x418   :  { %v6659_v57 = vpop.eup %6658  ;;  %v4481_v22 = vor.u32 1.1754944e-38, %v4480_v1  ;;  %v4568_v48 = vand.u32 2147483647, %v9148_v44  ;;  %v6164_v11 = vmul.f32 -1.442695, %v2389_v20  ;;  %v4570_v13 = vand.u32 2147483648, %v9148_v44 }
 0x419   :  { %v6661_v10 = vpop.eup %6660  ;;  %v4477_v0 = vsel %vm4476_vm14, %v6655_v12, %v4473_v21  ;;  %v4560_v33 = vmul.f32 %v6659_v57, %v9148_v44  ;;  %6666 = vrcp.f32 %v9176_v31  ;;  %v2294_v14 = vadd.f32 %v2293_v8, %v8218_v59 }
 0x41a   :  { %v6663_v17 = vpop.eup %6662  ;;  %v4482_v4 = vsel %vm4479_vm15, %v4481_v22, %v4477_v0  ;;  %6668 = vpow2.f32 %v6163_v51  ;;  %v2343_v60 = vadd.f32 %v2342_v25, %v8220_v26  ;;  %v9187_v36 = vadd.f32 1.0, %v6661_v10 }
 0x41b   :  { %5115 = vst [vmem:[%s10640_s10 + $0x2d8] sm:$0xff] %v4482_v4  ;;  %v4561_v6 = vsub.f32 1.0, %v4560_v33  ;;  %v9189_v52 = vadd.f32 1.0, %v6663_v17  ;;  %6670 = vpow2.f32 %v6161_v5  ;;  %vm4564_vm0 = vweird.f32 %v9148_v44 }
 0x41c   :  { %v6665_v40 = vpop.eup %6664  ;;  %vm9192_vm1 = vcmp.eq.f32.partialorder %v4568_v48, 8.507059e+37  ;;  %v4583_v23 = vand.u32 2147483647, %v9176_v31  ;;  %6672 = vpow2.f32 %v6164_v11  ;;  %vm4565_vm2 = vweird.f32 %v6659_v57 }
 0x41d   :  { %v4562_v32 = vmul.f32 %v6659_v57, %v4561_v6  ;;  %v4571_v16 = vor.u32 1.1754944e-38, %v4570_v13  ;;  %6674 = vrcp.f32 %v9187_v36  ;;  %v4585_v38 = vand.u32 2147483648, %v9176_v31  ;;  %vm4566_vm4 = vmor %vm4564_vm0, %vm4565_vm2 }
 0x41e   :  { %6676 = vrcp.f32 %v9189_v52  ;;  %v6170_v35 = vmul.f32 -1.442695, %v2294_v14  ;;  %v2245_v56 = vadd.f32 %v2244_v63, %v8226_v41  ;;  %vm4579_vm3 = vweird.f32 %v9176_v31 }
 0x41f   :  { %v6667_v19 = vpop.eup %6666  ;;  %v4563_v9 = vadd.f32 %v6659_v57, %v4562_v32  ;;  %v9202_v58 = vadd.f32 1.0, %v6665_v40  ;;  %v9204_v34 = vmul.f32 -1.442695, %v2343_v60  ;;  %vm9209_vm5 = vcmp.eq.f32.partialorder %v4583_v23, 8.507059e+37 }
 0x420   :  { %v6669_v39 = vpop.eup %6668  ;;  %v4575_v46 = vmul.f32 %v6667_v19, %v9176_v31  ;;  %v4553_v12 = vand.u32 2147483647, %v9187_v36  ;;  %v4555_v7 = vand.u32 2147483648, %v9187_v36  ;;  %v4598_v29 = vand.u32 2147483647, %v9189_v52 }
 0x421   :  { %v6671_v62 = vpop.eup %6670  ;;  %v4567_v3 = vsel %vm4566_vm4, %v6659_v57, %v4563_v9  ;;  %v4600_v55 = vand.u32 2147483648, %v9189_v52  ;;  %6678 = vrcp.f32 %v9202_v58  ;;  %v4586_v43 = vor.u32 1.1754944e-38, %v4585_v38 }
 0x422   :  { %v6673_v44 = vpop.eup %6672  ;;  %v4572_v47 = vsel %vm9192_vm1, %v4571_v16, %v4567_v3  ;;  %v4576_v28 = vsub.f32 1.0, %v4575_v46  ;;  %v9220_v54 = vmul.f32 -1.442695, %v2245_v56  ;;  %vm4549_vm6 = vweird.f32 %v9187_v36 }
 0x423   :  { %v6675_v24 = vpop.eup %6674  ;;  %5121 = vst [vmem:[%s10640_s10 + $0x308] sm:$0xff] %v4572_v47  ;;  %vm4594_vm7 = vweird.f32 %v9189_v52  ;;  %v9227_v45 = vadd.f32 1.0, %v6669_v39  ;;  %v9229_v42 = vadd.f32 1.0, %v6671_v62  ;;  %vm4580_vm8 = vweird.f32 %v6667_v19  ;;  %v2391_v62 = vpop.f32.mrf.mxu2 }
 0x424   :  { %v6677_v2 = vpop.eup %6676  ;;  %v4577_v53 = vmul.f32 %v6667_v19, %v4576_v28  ;;  %v4545_v30 = vmul.f32 %v6675_v24, %v9187_v36  ;;  %vm9232_vm9 = vcmp.eq.f32.partialorder %v4553_v12, 8.507059e+37  ;;  %v4556_v15 = vor.u32 1.1754944e-38, %v4555_v7  ;;  %vm4581_vm11 = vmor %vm4579_vm3, %vm4580_vm8 }
 0x425   :  { %v4590_v61 = vmul.f32 %v6677_v2, %v9189_v52  ;;  %vm9237_vm10 = vcmp.eq.f32.partialorder %v4598_v29, 8.507059e+37  ;;  %v4601_v18 = vor.u32 1.1754944e-38, %v4600_v55  ;;  %v4688_v51 = vand.u32 2147483647, %v9202_v58 }
 0x426   :  { %6680 = vrcp.f32 %v9227_v45  ;;  %v4578_v20 = vadd.f32 %v6667_v19, %v4577_v53  ;;  %v4546_v21 = vsub.f32 1.0, %v4545_v30  ;;  %v4690_v5 = vand.u32 2147483648, %v9202_v58  ;;  %v2344_v53 = vpop.f32.mrf.mxu1 }
 0x427   :  { %6682 = vpow2.f32 %v6170_v35  ;;  %v6679_v8 = vpop.eup %6678  ;;  %v4591_v25 = vsub.f32 1.0, %v4590_v61  ;;  %vm4684_vm12 = vweird.f32 %v9202_v58  ;;  %v9248_v57 = vadd.f32 1.0, %v6673_v44  ;;  %v2295_v44 = vpop.f32.mrf.mxu0 }
 0x428   :  { %6684 = vrcp.f32 %v9229_v42  ;;  %v4582_v22 = vsel %vm4581_vm11, %v6667_v19, %v4578_v20  ;;  %v4547_v48 = vmul.f32 %v6675_v24, %v4546_v21  ;;  %vm4550_vm13 = vweird.f32 %v6675_v24 }
 0x429   :  { %v4680_v11 = vmul.f32 %v6679_v8, %v9202_v58  ;;  %v4587_v10 = vsel %vm9209_vm5, %v4586_v43, %v4582_v22  ;;  %v4592_v0 = vmul.f32 %v6677_v2, %v4591_v25  ;;  %vm4595_vm14 = vweird.f32 %v6677_v2  ;;  %vm4551_vm0 = vmor %vm4549_vm6, %vm4550_vm13 }
 0x42a   :  { %v4703_v31 = vand.u32 2147483647, %v9227_v45  ;;  %5122 = vst [vmem:[%s10640_s10 + $0x310] sm:$0xff] %v4587_v10  ;;  %v4548_v33 = vadd.f32 %v6675_v24, %v4547_v48  ;;  %vm9257_vm15 = vcmp.eq.f32.partialorder %v4688_v51, 8.507059e+37  ;;  %v4691_v4 = vor.u32 1.1754944e-38, %v4690_v5  ;;  %vm4596_vm2 = vmor %vm4594_vm7, %vm4595_vm14 }
 0x42b   :  { %v4681_v13 = vsub.f32 1.0, %v4680_v11  ;;  %v4593_v60 = vadd.f32 %v6677_v2, %v4592_v0  ;;  %vm4699_vm1 = vweird.f32 %v9227_v45  ;;  %v4705_v6 = vand.u32 2147483648, %v9227_v45  ;;  %v2393_v17 = vpop.f32.mrf.mxu2 }
 0x42c   :  { %v6681_v14 = vpop.eup %6680  ;;  %6686 = vrcp.f32 %v9248_v57  ;;  %v4552_v40 = vsel %vm4551_vm0, %v6675_v24, %v4548_v33  ;;  %vm4685_vm3 = vweird.f32 %v6679_v8  ;;  %vm9272_vm4 = vcmp.eq.f32.partialorder %v4703_v31, 8.507059e+37 }
 0x42d   :  { %v6683_v63 = vpop.eup %6682  ;;  %v4682_v37 = vmul.f32 %v6679_v8, %v4681_v13  ;;  %v4695_v23 = vmul.f32 %v6681_v14, %v9227_v45  ;;  %v4557_v36 = vsel %vm9232_vm9, %v4556_v15, %v4552_v40  ;;  %v4597_v16 = vsel %vm4596_vm2, %v6677_v2, %v4593_v60  ;;  %vm4686_vm6 = vmor %vm4684_vm12, %vm4685_vm3 }
 0x42e   :  { %v6685_v32 = vpop.eup %6684  ;;  %vm4669_vm5 = vweird.f32 %v9229_v42  ;;  %5120 = vst [vmem:[%s10640_s10 + $0x300] sm:$0xff] %v4557_v36  ;;  %v4602_v52 = vsel %vm9237_vm10, %v4601_v18, %v4597_v16  ;;  %vm4700_vm7 = vweird.f32 %v6681_v14  ;;  %v4673_v9 = vand.u32 2147483647, %v9229_v42 }
 0x42f   :  { %v4683_v35 = vadd.f32 %v6679_v8, %v4682_v37  ;;  %v4696_v56 = vsub.f32 1.0, %v4695_v23  ;;  %v4665_v19 = vmul.f32 %v6685_v32, %v9229_v42  ;;  %5123 = vst [vmem:[%s10640_s10 + $0x318] sm:$0xff] %v4602_v52  ;;  %v4675_v39 = vand.u32 2147483648, %v9229_v42  ;;  %vm4701_vm9 = vmor %vm4699_vm1, %vm4700_vm7 }
 0x430   :  { %v9290_v46 = vadd.f32 1.0, %v6683_v63  ;;  %6688 = vpow2.f32 %v9204_v34  ;;  %v4706_v55 = vor.u32 1.1754944e-38, %v4705_v6  ;;  %v4718_v58 = vand.u32 2147483647, %v9248_v57 }
 0x431   :  { %v4687_v27 = vsel %vm4686_vm6, %v6679_v8, %v4683_v35  ;;  %v4697_v12 = vmul.f32 %v6681_v14, %v4696_v56  ;;  %v4666_v7 = vsub.f32 1.0, %v4665_v19  ;;  %vm4670_vm8 = vweird.f32 %v6685_v32 }
 0x432   :  { %v6687_v3 = vpop.eup %6686  ;;  %v4692_v29 = vsel %vm9257_vm15, %v4691_v4, %v4687_v27  ;;  %6690 = vrcp.f32 %v9290_v46  ;;  %vm9304_vm10 = vcmp.eq.f32.partialorder %v4673_v9, 8.507059e+37  ;;  %v4676_v24 = vor.u32 1.1754944e-38, %v4675_v39  ;;  %vm4671_vm11 = vmor %vm4669_vm5, %vm4670_vm8 }
 0x433   :  { %5129 = vst [vmem:[%s10640_s10 + $0x348] sm:$0xff] %v4692_v29  ;;  %v4698_v47 = vadd.f32 %v6681_v14, %v4697_v12  ;;  %v4667_v28 = vmul.f32 %v6685_v32, %v4666_v7  ;;  %v4710_v34 = vmul.f32 %v6687_v3, %v9248_v57  ;;  %6692 = vpow2.f32 %v9220_v54 }
 0x434   :  { %v2392_v2 = vadd.f32 %v2391_v62, %v8230_v49  ;;  %v2296_v61 = vadd.f32 %v2295_v44, %v8218_v59  ;;  %vm4715_vm12 = vweird.f32 %v6687_v3  ;;  %v4720_v18 = vand.u32 2147483648, %v9248_v57 }
 0x435   :  { %v4702_v30 = vsel %vm4701_vm9, %v6681_v14, %v4698_v47  ;;  %v4668_v1 = vadd.f32 %v6685_v32, %v4667_v28  ;;  %v4711_v15 = vsub.f32 1.0, %v4710_v34  ;;  %v2345_v59 = vadd.f32 %v2344_v53, %v8220_v26 }
 0x436   :  { %v4707_v45 = vsel %vm9272_vm4, %v4706_v55, %v4702_v30  ;;  %v6172_v51 = vmul.f32 -1.442695, %v2392_v2  ;;  %v6689_v54 = vpop.eup %6688  ;;  %v6178_v5 = vmul.f32 -1.442695, %v2296_v61  ;;  %v2247_v22 = vadd.f32 %v2246_v50, %v8226_v41 }
 0x437   :  { %5130 = vst [vmem:[%s10640_s10 + $0x350] sm:$0xff] %v4707_v45  ;;  %v4672_v20 = vsel %vm4671_vm11, %v6685_v32, %v4668_v1  ;;  %v4712_v21 = vmul.f32 %v6687_v3, %v4711_v15  ;;  %v9322_v42 = vadd.f32 1.0, %v6689_v54  ;;  %vm4714_vm13 = vweird.f32 %v9248_v57  ;;  %v9385_v15 = vpop.f32.mrf.mxu1 }
 0x438   :  { %v6691_v8 = vpop.eup %6690  ;;  %v4677_v25 = vsel %vm9304_vm10, %v4676_v24, %v4672_v20  ;;  %6694 = vpow2.f32 %v6172_v51  ;;  %vm4716_vm14 = vmor %vm4714_vm13, %vm4715_vm12  ;;  %vm4719_vm15 = vcmp.eq.f32.partialorder %v4718_v58, 8.507059e+37  ;;  %v4721_v10 = vor.u32 1.1754944e-38, %v4720_v18 }
 0x439   :  { %5128 = vst [vmem:[%s10640_s10 + $0x340] sm:$0xff] %v4677_v25  ;;  %v4713_v48 = vadd.f32 %v6687_v3, %v4712_v21  ;;  %v4800_v11 = vmul.f32 %v6691_v8, %v9290_v46  ;;  %6696 = vpow2.f32 %v6178_v5  ;;  %v6693_v26 = vpop.eup %6692  ;;  %v4810_v0 = vand.u32 2147483648, %v9290_v46  ;;  %v9399_v25 = vpop.f32.mrf.mxu3 }
 0x43a   :  { %6698 = vrcp.f32 %v9322_v42  ;;  %v9333_v33 = vadd.f32 1.0, %v6693_v26  ;;  %v6179_v13 = vmul.f32 -1.442695, %v2345_v59  ;;  %vm4804_vm0 = vweird.f32 %v9290_v46 }
 0x43b   :  { %v4717_v41 = vsel %vm4716_vm14, %v6687_v3, %v4713_v48  ;;  %v4801_v31 = vsub.f32 1.0, %v4800_v11  ;;  %v6177_v57 = vmul.f32 -1.442695, %v2247_v22  ;;  %vm4805_vm1 = vweird.f32 %v6691_v8 }
 0x43c   :  { %v4722_v4 = vsel %vm4719_vm15, %v4721_v10, %v4717_v41  ;;  %v4808_v60 = vand.u32 2147483647, %v9290_v46  ;;  %6700 = vrcp.f32 %v9333_v33  ;;  %v4811_v63 = vor.u32 1.1754944e-38, %v4810_v0  ;;  %vm4806_vm2 = vmor %vm4804_vm0, %vm4805_vm1  ;;  %v2454_v46 = vpop.f32.mrf.mxu0 }
 0x43d   :  { %5131 = vst [vmem:[%s10640_s10 + $0x358] sm:$0xff] %v4722_v4  ;;  %v4802_v14 = vmul.f32 %v6691_v8, %v4801_v31  ;;  %v4823_v40 = vand.u32 2147483647, %v9322_v42  ;;  %6702 = vpow2.f32 %v6179_v13  ;;  %v2394_v37 = vadd.f32 %v2393_v17, %v8230_v49  ;;  %v9355_v49 = vld [vmem:[%s10639_s9] sm:$0xff] }
 0x43e   :  { %v6695_v6 = vpop.eup %6694  ;;  %v4825_v36 = vand.u32 2147483648, %v9322_v42  ;;  %6704 = vpow2.f32 %v6177_v57  ;;  %v4793_v52 = vand.u32 2147483647, %v9333_v33  ;;  %v4795_v35 = vand.u32 2147483648, %v9333_v33 }
 0x43f   :  { %v6697_v23 = vpop.eup %6696  ;;  %v4803_v32 = vadd.f32 %v6691_v8, %v4802_v14  ;;  %v9344_v16 = vadd.f32 1.0, %v6695_v6  ;;  %v9358_v19 = vperm.slane %v9355_v49, 5  ;;  %vm4809_vm3 = vcmp.eq.f32.partialorder %v4808_v60, 8.507059e+37 }
 0x440   :  { %v6699_v38 = vpop.eup %6698  ;;  %v9350_v56 = vadd.f32 1.0, %v6697_v23  ;;  %vm4819_vm4 = vweird.f32 %v9322_v42  ;;  %vm9363_vm5 = vcmp.eq.f32.partialorder %v4823_v40, 8.507059e+37  ;;  %v6180_v7 = vmul.f32 -1.442695, %v2394_v37  ;;  %v2552_v40 = vpop.f32.mrf.mxu2 }
 0x441   :  { %v4807_v9 = vsel %vm4806_vm2, %v6691_v8, %v4803_v32  ;;  %v4815_v39 = vmul.f32 %v6699_v38, %v9322_v42  ;;  %6706 = vrcp.f32 %v9344_v16  ;;  %v4826_v29 = vor.u32 1.1754944e-38, %v4825_v36  ;;  %v2407_v44 = vpop.f32.mrf.mxu3 }
 0x442   :  { %v4812_v27 = vsel %vm4809_vm3, %v4811_v63, %v4807_v9  ;;  %v6701_v62 = vpop.eup %6700  ;;  %vm4789_vm6 = vweird.f32 %v9333_v33  ;;  %6708 = vrcp.f32 %v9350_v56  ;;  %vm9373_vm7 = vcmp.eq.f32.partialorder %v4793_v52, 8.507059e+37 }
 0x443   :  { %5137 = vst [vmem:[%s10640_s10 + $0x388] sm:$0xff] %v4812_v27  ;;  %v4816_v3 = vsub.f32 1.0, %v4815_v39  ;;  %v6703_v55 = vpop.eup %6702  ;;  %v4785_v58 = vmul.f32 %v6701_v62, %v9333_v33  ;;  %v4796_v47 = vor.u32 1.1754944e-38, %v4795_v35  ;;  %v4838_v28 = vand.u32 2147483647, %v9344_v16  ;;  %v2505_v39 = vpop.f32.mrf.mxu1 }
 0x444   :  { %v2455_v34 = vadd.f32 %v2454_v46, %v9358_v19  ;;  %v6705_v43 = vpop.eup %6704  ;;  %vm4820_vm8 = vweird.f32 %v6699_v38  ;;  %v4840_v2 = vand.u32 2147483648, %v9344_v16  ;;  %v9380_v53 = vadd.f32 1.0, %v6703_v55  ;;  %v2456_v9 = vpop.f32.mrf.mxu0 }
 0x445   :  { %v4817_v24 = vmul.f32 %v6699_v38, %v4816_v3  ;;  %v4786_v30 = vsub.f32 1.0, %v4785_v58  ;;  %vm4834_vm9 = vweird.f32 %v9344_v16  ;;  %v9383_v1 = vadd.f32 1.0, %v6705_v43  ;;  %vm4821_vm10 = vmor %vm4819_vm4, %vm4820_vm8 }
 0x446   :  { %6710 = vpow2.f32 %v6180_v7  ;;  %v4928_v45 = vand.u32 2147483647, %v9350_v56  ;;  %v4930_v18 = vand.u32 2147483648, %v9350_v56  ;;  %vm4790_vm11 = vweird.f32 %v6701_v62 }
 0x447   :  { %v6707_v61 = vpop.eup %6706  ;;  %v4818_v50 = vadd.f32 %v6699_v38, %v4817_v24  ;;  %6712 = vrcp.f32 %v9380_v53  ;;  %v4787_v51 = vmul.f32 %v6701_v62, %v4786_v30  ;;  %vm9393_vm12 = vcmp.eq.f32.partialorder %v4838_v28, 8.507059e+37  ;;  %vm4791_vm14 = vmor %vm4789_vm6, %vm4790_vm11 }
 0x448   :  { %v4830_v54 = vmul.f32 %v6707_v61, %v9344_v16  ;;  %vm4924_vm13 = vweird.f32 %v9350_v56  ;;  %v6709_v21 = vpop.eup %6708  ;;  %v4841_v59 = vor.u32 1.1754944e-38, %v4840_v2  ;;  %6714 = vrcp.f32 %v9383_v1 }
 0x449   :  { %v4822_v5 = vsel %vm4821_vm10, %v6699_v38, %v4818_v50  ;;  %v6062_v8 = vmul.f32 -1.442695, %v2455_v34  ;;  %v4788_v22 = vadd.f32 %v6701_v62, %v4787_v51  ;;  %v4920_v11 = vmul.f32 %v6709_v21, %v9350_v56 }
 0x44a   :  { %v4827_v42 = vsel %vm9363_vm5, %v4826_v29, %v4822_v5  ;;  %v4831_v48 = vsub.f32 1.0, %v4830_v54  ;;  %vm9410_vm15 = vcmp.eq.f32.partialorder %v4928_v45, 8.507059e+37  ;;  %v4931_v10 = vor.u32 1.1754944e-38, %v4930_v18 }
 0x44b   :  { %5138 = vst [vmem:[%s10640_s10 + $0x390] sm:$0xff] %v4827_v42  ;;  %v4943_v0 = vand.u32 2147483647, %v9380_v53  ;;  %v4945_v41 = vand.u32 2147483648, %v9380_v53  ;;  %v4792_v13 = vsel %vm4791_vm14, %v6701_v62, %v4788_v22  ;;  %vm4835_vm0 = vweird.f32 %v6707_v61  ;;  %v2508_v26 = vpop.f32.mrf.mxu1 }
 0x44c   :  { %v6711_v31 = vpop.eup %6710  ;;  %v4832_v17 = vmul.f32 %v6707_v61, %v4831_v48  ;;  %v4921_v4 = vsub.f32 1.0, %v4920_v11  ;;  %v4797_v14 = vsel %vm9373_vm7, %v4796_v47, %v4792_v13  ;;  %vm4939_vm1 = vweird.f32 %v9380_v53  ;;  %vm4836_vm3 = vmor %vm4834_vm9, %vm4835_vm0  ;;  %v2459_v11 = vpop.f32.mrf.mxu0 }
 0x44d   :  { %v6713_v57 = vpop.eup %6712  ;;  %v9419_v33 = vadd.f32 1.0, %v6711_v31  ;;  %6716 = vpow2.f32 %v6062_v8  ;;  %5136 = vst [vmem:[%s10640_s10 + $0x380] sm:$0xff] %v4797_v14  ;;  %vm4925_vm2 = vweird.f32 %v6709_v21  ;;  %vm9427_vm4 = vcmp.eq.f32.partialorder %v4943_v0, 8.507059e+37  ;;  %v2554_v8 = vpop.f32.mrf.mxu2 }
 0x44e   :  { %v4833_v60 = vadd.f32 %v6707_v61, %v4832_v17  ;;  %v4922_v6 = vmul.f32 %v6709_v21, %v4921_v4  ;;  %v4935_v63 = vmul.f32 %v6713_v57, %v9380_v53  ;;  %v6715_v37 = vpop.eup %6714  ;;  %v4946_v32 = vor.u32 1.1754944e-38, %v4945_v41  ;;  %vm4926_vm6 = vmor %vm4924_vm13, %vm4925_vm2 }
 0x44f   :  { %vm4909_vm5 = vweird.f32 %v9383_v1  ;;  %6718 = vrcp.f32 %v9419_v33  ;;  %v4905_v35 = vmul.f32 %v6715_v37, %v9383_v1  ;;  %vm4940_vm7 = vweird.f32 %v6713_v57 }
 0x450   :  { %v4837_v36 = vsel %vm4836_vm3, %v6707_v61, %v4833_v60  ;;  %v4923_v38 = vadd.f32 %v6709_v21, %v4922_v6  ;;  %v4936_v52 = vsub.f32 1.0, %v4935_v63  ;;  %v4913_v46 = vand.u32 2147483647, %v9383_v1  ;;  %vm4941_vm9 = vmor %vm4939_vm1, %vm4940_vm7  ;;  %v2410_v60 = vpop.f32.mrf.mxu3 }
 0x451   :  { %v4842_v16 = vsel %vm9393_vm12, %v4841_v59, %v4837_v36  ;;  %v4915_v27 = vand.u32 2147483648, %v9383_v1  ;;  %v4906_v62 = vsub.f32 1.0, %v4905_v35  ;;  %v9445_v3 = vperm.slane %v9355_v49, 6 }
 0x452   :  { %5139 = vst [vmem:[%s10640_s10 + $0x398] sm:$0xff] %v4842_v16  ;;  %v4927_v12 = vsel %vm4926_vm6, %v6709_v21, %v4923_v38  ;;  %v4937_v7 = vmul.f32 %v6713_v57, %v4936_v52  ;;  %vm4910_vm8 = vweird.f32 %v6715_v37  ;;  %v9450_v55 = vperm.slane %v9355_v49, 4 }
 0x453   :  { %v6717_v29 = vpop.eup %6716  ;;  %v4932_v56 = vsel %vm9410_vm15, %v4931_v10, %v4927_v12  ;;  %v9453_v58 = vperm.slane %v9355_v49, 7  ;;  %v4907_v28 = vmul.f32 %v6715_v37, %v4906_v62  ;;  %v2504_v43 = vadd.f32 %v9385_v15, %v9445_v3  ;;  %vm4911_vm11 = vmor %vm4909_vm5, %vm4910_vm8 }
 0x454   :  { %5145 = vst [vmem:[%s10640_s10 + $0x3c8] sm:$0xff] %v4932_v56  ;;  %v4938_v47 = vadd.f32 %v6713_v57, %v4937_v7  ;;  %v9458_v34 = vadd.f32 1.0, %v6717_v29  ;;  %vm9465_vm10 = vcmp.eq.f32.partialorder %v4913_v46, 8.507059e+37  ;;  %v4916_v2 = vor.u32 1.1754944e-38, %v4915_v27  ;;  %v2461_v49 = vpop.f32.mrf.mxu0 }
 0x455   :  { %v6719_v24 = vpop.eup %6718  ;;  %v2406_v30 = vadd.f32 %v9399_v25, %v9450_v55  ;;  %v2553_v61 = vadd.f32 %v2552_v40, %v9453_v58  ;;  %v4908_v45 = vadd.f32 %v6715_v37, %v4907_v28  ;;  %v2457_v15 = vadd.f32 %v2456_v9, %v9358_v19 }
 0x456   :  { %v4942_v50 = vsel %vm4941_vm9, %v6713_v57, %v4938_v47  ;;  %v4950_v18 = vmul.f32 %v6719_v24, %v9419_v33  ;;  %v4958_v51 = vand.u32 2147483647, %v9419_v33  ;;  %6720 = vrcp.f32 %v9458_v34  ;;  %v2557_v47 = vpop.f32.mrf.mxu2 }
 0x457   :  { %v4947_v53 = vsel %vm9427_vm4, %v4946_v32, %v4942_v50  ;;  %v2506_v54 = vadd.f32 %v2505_v39, %v9445_v3  ;;  %v4912_v20 = vsel %vm4911_vm11, %v6715_v37, %v4908_v45  ;;  %v4960_v5 = vand.u32 2147483648, %v9419_v33 }
 0x458   :  { %5146 = vst [vmem:[%s10640_s10 + $0x3d0] sm:$0xff] %v4947_v53  ;;  %v4951_v21 = vsub.f32 1.0, %v4950_v18  ;;  %v6063_v59 = vmul.f32 -1.442695, %v2504_v43  ;;  %v4917_v1 = vsel %vm9465_vm10, %v4916_v2, %v4912_v20  ;;  %vm4954_vm12 = vweird.f32 %v9419_v33 }
 0x459   :  { %v6061_v25 = vmul.f32 -1.442695, %v2406_v30  ;;  %v6064_v42 = vmul.f32 -1.442695, %v2553_v61  ;;  %5144 = vst [vmem:[%s10640_s10 + $0x3c0] sm:$0xff] %v4917_v1  ;;  %vm4955_vm13 = vweird.f32 %v6719_v24  ;;  %v2408_v0 = vadd.f32 %v2407_v44, %v9450_v55 }
 0x45a   :  { %v4952_v22 = vmul.f32 %v6719_v24, %v4951_v21  ;;  %6722 = vpow2.f32 %v6063_v59  ;;  %v6070_v48 = vmul.f32 -1.442695, %v2457_v15  ;;  %v6071_v10 = vmul.f32 -1.442695, %v2506_v54  ;;  %vm4956_vm15 = vmor %vm4954_vm12, %vm4955_vm13 }
 0x45b   :  { %6724 = vpow2.f32 %v6061_v25  ;;  %v2555_v41 = vadd.f32 %v2554_v8, %v9453_v58  ;;  %vm4959_vm14 = vcmp.eq.f32.partialorder %v4958_v51, 8.507059e+37  ;;  %v4961_v13 = vor.u32 1.1754944e-38, %v4960_v5 }
 0x45c   :  { %v4953_v31 = vadd.f32 %v6719_v24, %v4952_v22  ;;  %6726 = vpow2.f32 %v6064_v42  ;;  %v6721_v17 = vpop.eup %6720  ;;  %v6069_v4 = vmul.f32 -1.442695, %v2408_v0  ;;  %v2460_v57 = vadd.f32 %v2459_v11, %v9358_v19 }
 0x45d   :  { %6728 = vpow2.f32 %v6070_v48  ;;  %v2509_v14 = vadd.f32 %v2508_v26, %v9445_v3  ;;  %v3180_v63 = vmul.f32 %v6721_v17, %v9458_v34  ;;  %v6072_v40 = vmul.f32 -1.442695, %v2555_v41 }
 0x45e   :  { %v4957_v6 = vsel %vm4956_vm15, %v6719_v24, %v4953_v31  ;;  %6730 = vpow2.f32 %v6071_v10  ;;  %v3188_v32 = vand.u32 2147483647, %v9458_v34  ;;  %v3190_v36 = vand.u32 2147483648, %v9458_v34 }
 0x45f   :  { %v4962_v37 = vsel %vm4959_vm14, %v4961_v13, %v4957_v6  ;;  %v3181_v33 = vsub.f32 1.0, %v3180_v63  ;;  %v2411_v38 = vadd.f32 %v2410_v60, %v9450_v55  ;;  %vm3185_vm0 = vweird.f32 %v6721_v17 }
 0x460   :  { %v6723_v23 = vpop.eup %6722  ;;  %5147 = vst [vmem:[%s10640_s10 + $0x3d8] sm:$0xff] %v4962_v37  ;;  %6732 = vpow2.f32 %v6069_v4  ;;  %v6078_v9 = vmul.f32 -1.442695, %v2460_v57  ;;  %v6079_v27 = vmul.f32 -1.442695, %v2509_v14  ;;  %vm3184_vm1 = vweird.f32 %v9458_v34  ;;  %v2510_v34 = vpop.f32.mrf.mxu1 }
 0x461   :  { %v6725_v52 = vpop.eup %6724  ;;  %v9505_v35 = vadd.f32 1.0, %v6723_v23  ;;  %v3182_v16 = vmul.f32 %v6721_v17, %v3181_v33  ;;  %6734 = vpow2.f32 %v6072_v40  ;;  %vm3189_vm2 = vcmp.eq.f32.partialorder %v3188_v32, 8.507059e+37  ;;  %vm3186_vm3 = vmor %vm3184_vm1, %vm3185_vm0 }
 0x462   :  { %v6727_v39 = vpop.eup %6726  ;;  %v9507_v46 = vadd.f32 1.0, %v6725_v52  ;;  %v3191_v29 = vor.u32 1.1754944e-38, %v3190_v36  ;;  %v9515_v44 = vmul.f32 -1.442695, %v2411_v38  ;;  %v9531_v53 = vadd.f32 %v2557_v47, %v9453_v58 }
 0x463   :  { %v6729_v12 = vpop.eup %6728  ;;  %6736 = vrcp.f32 %v9505_v35  ;;  %v3183_v62 = vadd.f32 %v6721_v17, %v3182_v16  ;;  %v9513_v56 = vadd.f32 1.0, %v6727_v39  ;;  %v3203_v61 = vand.u32 2147483647, %v9505_v35 }
 0x464   :  { %v6731_v7 = vpop.eup %6730  ;;  %6738 = vrcp.f32 %v9507_v46  ;;  %v9517_v43 = vadd.f32 1.0, %v6729_v12  ;;  %v3205_v50 = vand.u32 2147483648, %v9505_v35  ;;  %v3173_v18 = vand.u32 2147483647, %v9507_v46 }
 0x465   :  { %6740 = vpow2.f32 %v6078_v9  ;;  %v3187_v28 = vsel %vm3186_vm3, %v6721_v17, %v3183_v62  ;;  %v9519_v24 = vadd.f32 1.0, %v6731_v7  ;;  %v3175_v15 = vand.u32 2147483648, %v9507_v46 }
 0x466   :  { %6742 = vpow2.f32 %v6079_v27  ;;  %v6733_v2 = vpop.eup %6732  ;;  %v3192_v30 = vsel %vm3189_vm2, %v3191_v29, %v3187_v28  ;;  %vm3199_vm4 = vweird.f32 %v9505_v35  ;;  %v9536_v54 = vadd.f32 %v2461_v49, %v9358_v19 }
 0x467   :  { %6744 = vrcp.f32 %v9513_v56  ;;  %v6735_v45 = vpop.eup %6734  ;;  %5029 = vst [vmem:[%s10640_s10 + $0x28] sm:$0xff] %v3192_v30  ;;  %v9539_v20 = vadd.f32 %v2510_v34, %v9445_v3  ;;  %vm3169_vm5 = vweird.f32 %v9507_v46  ;;  %v3218_v59 = vand.u32 2147483647, %v9513_v56 }
 0x468   :  { %6746 = vrcp.f32 %v9517_v43  ;;  %v3220_v8 = vand.u32 2147483648, %v9513_v56  ;;  %vm9545_vm6 = vcmp.eq.f32.partialorder %v3203_v61, 8.507059e+37  ;;  %v3206_v42 = vor.u32 1.1754944e-38, %v3205_v50 }
 0x469   :  { %v6737_v51 = vpop.eup %6736  ;;  %6748 = vrcp.f32 %v9519_v24  ;;  %v3308_v48 = vand.u32 2147483647, %v9517_v43  ;;  %vm9551_vm7 = vcmp.eq.f32.partialorder %v3173_v18, 8.507059e+37  ;;  %v3176_v0 = vor.u32 1.1754944e-38, %v3175_v15 }
 0x46a   :  { %v6739_v21 = vpop.eup %6738  ;;  %v3195_v5 = vmul.f32 %v6737_v51, %v9505_v35  ;;  %vm3214_vm8 = vweird.f32 %v9513_v56  ;;  %vm3200_vm9 = vweird.f32 %v6737_v51  ;;  %vm3304_vm10 = vweird.f32 %v9517_v43 }
 0x46b   :  { %v6741_v1 = vpop.eup %6740  ;;  %v3165_v22 = vmul.f32 %v6739_v21, %v9507_v46  ;;  %v3310_v13 = vand.u32 2147483648, %v9517_v43  ;;  %v9558_v17 = vadd.f32 1.0, %v6733_v2  ;;  %vm3170_vm11 = vweird.f32 %v6739_v21  ;;  %vm3201_vm15 = vmor %vm3199_vm4, %vm3200_vm9 }
 0x46c   :  { %v6743_v11 = vpop.eup %6742  ;;  %v3196_v26 = vsub.f32 1.0, %v3195_v5  ;;  %vm9561_vm12 = vcmp.eq.f32.partialorder %v3218_v59, 8.507059e+37  ;;  %v3221_v6 = vor.u32 1.1754944e-38, %v3220_v8  ;;  %vm3319_vm13 = vweird.f32 %v9519_v24  ;;  %vm3171_vm0 = vmor %vm3169_vm5, %vm3170_vm11 }
 0x46d   :  { %v6745_v41 = vpop.eup %6744  ;;  %v3166_v31 = vsub.f32 1.0, %v3165_v22  ;;  %vm9567_vm14 = vcmp.eq.f32.partialorder %v3308_v48, 8.507059e+37  ;;  %v3323_v33 = vand.u32 2147483647, %v9519_v24  ;;  %v3325_v32 = vand.u32 2147483648, %v9519_v24 }
 0x46e   :  { %v6747_v4 = vpop.eup %6746  ;;  %v3197_v57 = vmul.f32 %v6737_v51, %v3196_v26  ;;  %v3210_v14 = vmul.f32 %v6745_v41, %v9513_v56  ;;  %v9574_v9 = vadd.f32 1.0, %v6735_v45  ;;  %6750 = vrcp.f32 %v9558_v17 }
 0x46f   :  { %v6749_v63 = vpop.eup %6748  ;;  %v3167_v40 = vmul.f32 %v6739_v21, %v3166_v31  ;;  %v3300_v37 = vmul.f32 %v6747_v4, %v9517_v43  ;;  %v9580_v27 = vadd.f32 1.0, %v6741_v1  ;;  %vm3215_vm1 = vweird.f32 %v6745_v41 }
 0x470   :  { %v3198_v36 = vadd.f32 %v6737_v51, %v3197_v57  ;;  %v3211_v38 = vsub.f32 1.0, %v3210_v14  ;;  %v3315_v52 = vmul.f32 %v6749_v63, %v9519_v24  ;;  %vm3305_vm2 = vweird.f32 %v6747_v4  ;;  %vm3216_vm4 = vmor %vm3214_vm8, %vm3215_vm1 }
 0x471   :  { %v3168_v39 = vadd.f32 %v6739_v21, %v3167_v40  ;;  %v3301_v16 = vsub.f32 1.0, %v3300_v37  ;;  %vm3320_vm3 = vweird.f32 %v6749_v63  ;;  %v3311_v2 = vor.u32 1.1754944e-38, %v3310_v13  ;;  %vm3306_vm5 = vmor %vm3304_vm10, %vm3305_vm2 }
 0x472   :  { %v3202_v12 = vsel %vm3201_vm15, %v6737_v51, %v3198_v36  ;;  %v3212_v7 = vmul.f32 %v6745_v41, %v3211_v38  ;;  %v3316_v62 = vsub.f32 1.0, %v3315_v52  ;;  %6752 = vrcp.f32 %v9574_v9  ;;  %v2559_v38 = vpop.f32.mrf.mxu2 }
 0x473   :  { %v3207_v29 = vsel %vm9545_vm6, %v3206_v42, %v3202_v12  ;;  %v3172_v47 = vsel %vm3171_vm0, %v6739_v21, %v3168_v39  ;;  %v3302_v35 = vmul.f32 %v6747_v4, %v3301_v16  ;;  %v9598_v30 = vadd.f32 1.0, %v6743_v11  ;;  %vm3321_vm6 = vmor %vm3319_vm13, %vm3320_vm3  ;;  %v2464_v12 = vpop.f32.mrf.mxu0 }
 0x474   :  { %5030 = vst [vmem:[%s10640_s10 + $0x30] sm:$0xff] %v3207_v29  ;;  %v3177_v28 = vsel %vm9551_vm7, %v3176_v0, %v3172_v47  ;;  %v3213_v49 = vadd.f32 %v6745_v41, %v3212_v7  ;;  %v3317_v34 = vmul.f32 %v6749_v63, %v3316_v62  ;;  %v3326_v45 = vor.u32 1.1754944e-38, %v3325_v32  ;;  %v6751_v15 = vpop.eup %6750  ;;  %v2412_v0 = vpop.f32.mrf.mxu3 }
 0x475   :  { %5028 = vst [vmem:[%s10640_s10 + $0x20] sm:$0xff] %v3177_v28  ;;  %v3303_v46 = vadd.f32 %v6747_v4, %v3302_v35  ;;  %v3293_v18 = vand.u32 2147483647, %v9558_v17  ;;  %v3295_v21 = vand.u32 2147483648, %v9558_v17  ;;  %6754 = vrcp.f32 %v9580_v27 }
 0x476   :  { %v3217_v61 = vsel %vm3216_vm4, %v6745_v41, %v3213_v49  ;;  %v3318_v50 = vadd.f32 %v6749_v63, %v3317_v34  ;;  %vm3324_vm7 = vcmp.eq.f32.partialorder %v3323_v33, 8.507059e+37  ;;  %v3285_v59 = vmul.f32 %v6751_v15, %v9558_v17 }
 0x477   :  { %v3222_v51 = vsel %vm9561_vm12, %v3221_v6, %v3217_v61  ;;  %v3307_v56 = vsel %vm3306_vm5, %v6747_v4, %v3303_v46  ;;  %v3338_v8 = vand.u32 2147483647, %v9574_v9  ;;  %v3340_v1 = vand.u32 2147483648, %v9574_v9 }
 0x478   :  { %5031 = vst [vmem:[%s10640_s10 + $0x38] sm:$0xff] %v3222_v51  ;;  %v3312_v43 = vsel %vm9567_vm14, %v3311_v2, %v3307_v56  ;;  %v3322_v5 = vsel %vm3321_vm6, %v6749_v63, %v3318_v50  ;;  %v6080_v25 = vmul.f32 -1.442695, %v9531_v53  ;;  %v3286_v42 = vsub.f32 1.0, %v3285_v59  ;;  %v6753_v48 = vpop.eup %6752  ;;  %v2513_v56 = vpop.f32.mrf.mxu1 }
 0x479   :  { %5037 = vst [vmem:[%s10640_s10 + $0x68] sm:$0xff] %v3312_v43  ;;  %v3327_v24 = vsel %vm3324_vm7, %v3326_v45, %v3322_v5  ;;  %vm3289_vm8 = vweird.f32 %v9558_v17  ;;  %vm9626_vm9 = vcmp.eq.f32.partialorder %v3293_v18, 8.507059e+37  ;;  %6756 = vrcp.f32 %v9598_v30 }
 0x47a   :  { %5038 = vst [vmem:[%s10640_s10 + $0x70] sm:$0xff] %v3327_v24  ;;  %v3296_v11 = vor.u32 1.1754944e-38, %v3295_v21  ;;  %vm3334_vm10 = vweird.f32 %v9574_v9  ;;  %v3428_v26 = vand.u32 2147483647, %v9580_v27  ;;  %6758 = vpow2.f32 %v9515_v44 }
 0x47b   :  { %v3287_v53 = vmul.f32 %v6751_v15, %v3286_v42  ;;  %vm3290_vm11 = vweird.f32 %v6751_v15  ;;  %v3330_v10 = vmul.f32 %v6753_v48, %v9574_v9  ;;  %vm3424_vm12 = vweird.f32 %v9580_v27  ;;  %v6755_v41 = vpop.eup %6754 }
 0x47c   :  { %vm9636_vm13 = vcmp.eq.f32.partialorder %v3338_v8, 8.507059e+37  ;;  %v3341_v13 = vor.u32 1.1754944e-38, %v3340_v1  ;;  %6760 = vpow2.f32 %v6080_v25  ;;  %v6086_v4 = vmul.f32 -1.442695, %v9536_v54  ;;  %vm3291_vm14 = vmor %vm3289_vm8, %vm3290_vm11 }
 0x47d   :  { %v3288_v57 = vadd.f32 %v6751_v15, %v3287_v53  ;;  %v3331_v14 = vsub.f32 1.0, %v3330_v10  ;;  %v3420_v44 = vmul.f32 %v6755_v41, %v9580_v27  ;;  %v3430_v60 = vand.u32 2147483648, %v9580_v27 }
 0x47e   :  { %vm9645_vm15 = vcmp.eq.f32.partialorder %v3428_v26, 8.507059e+37  ;;  %6762 = vpow2.f32 %v6086_v4  ;;  %v6087_v63 = vmul.f32 -1.442695, %v9539_v20  ;;  %v2413_v40 = vadd.f32 %v2412_v0, %v9450_v55 }
 0x47f   :  { %v6757_v37 = vpop.eup %6756  ;;  %v3292_v54 = vsel %vm3291_vm14, %v6751_v15, %v3288_v57  ;;  %v3332_v23 = vmul.f32 %v6753_v48, %v3331_v14  ;;  %vm3335_vm0 = vweird.f32 %v6753_v48  ;;  %v3421_v33 = vsub.f32 1.0, %v3420_v44  ;;  %v2415_v14 = vpop.f32.mrf.mxu3 }
 0x480   :  { %v6759_v32 = vpop.eup %6758  ;;  %v3297_v36 = vsel %vm9626_vm9, %v3296_v11, %v3292_v54  ;;  %vm3425_vm1 = vweird.f32 %v6755_v41  ;;  %v3435_v17 = vmul.f32 %v6757_v37, %v9598_v30  ;;  %6764 = vpow2.f32 %v6087_v63  ;;  %vm3336_vm2 = vmor %vm3334_vm10, %vm3335_vm0 }
 0x481   :  { %5036 = vst [vmem:[%s10640_s10 + $0x60] sm:$0xff] %v3297_v36  ;;  %v3333_v20 = vadd.f32 %v6753_v48, %v3332_v23  ;;  %v3422_v52 = vmul.f32 %v6755_v41, %v3421_v33  ;;  %v9657_v39 = vadd.f32 1.0, %v6759_v32  ;;  %v6085_v16 = vmul.f32 -1.442695, %v2413_v40  ;;  %vm3426_vm3 = vmor %vm3424_vm12, %vm3425_vm1 }
 0x482   :  { %v6761_v7 = vpop.eup %6760  ;;  %v3431_v62 = vor.u32 1.1754944e-38, %v3430_v60  ;;  %v3436_v29 = vsub.f32 1.0, %v3435_v17  ;;  %v3443_v47 = vand.u32 2147483647, %v9598_v30  ;;  %v3445_v35 = vand.u32 2147483648, %v9598_v30 }
 0x483   :  { %v3337_v28 = vsel %vm3336_vm2, %v6753_v48, %v3333_v20  ;;  %v3423_v49 = vadd.f32 %v6755_v41, %v3422_v52  ;;  %6766 = vrcp.f32 %v9657_v39  ;;  %v2560_v34 = vadd.f32 %v2559_v38, %v9453_v58 }
 0x484   :  { %v6763_v46 = vpop.eup %6762  ;;  %v3342_v2 = vsel %vm9636_vm13, %v3341_v13, %v3337_v28  ;;  %v3437_v9 = vmul.f32 %v6757_v37, %v3436_v29  ;;  %vm3440_vm4 = vweird.f32 %v6757_v37  ;;  %v2465_v61 = vadd.f32 %v2464_v12, %v9358_v19  ;;  %v2562_v28 = vpop.f32.mrf.mxu2 }
 0x485   :  { %5039 = vst [vmem:[%s10640_s10 + $0x78] sm:$0xff] %v3342_v2  ;;  %v3427_v50 = vsel %vm3426_vm3, %v6755_v41, %v3423_v49  ;;  %v9675_v45 = vadd.f32 1.0, %v6761_v7  ;;  %v9677_v18 = vadd.f32 1.0, %v6763_v46  ;;  %6768 = vpow2.f32 %v6085_v16 }
 0x486   :  { %v6765_v15 = vpop.eup %6764  ;;  %v3432_v51 = vsel %vm9645_vm15, %v3431_v62, %v3427_v50  ;;  %v3438_v27 = vadd.f32 %v6757_v37, %v3437_v9  ;;  %vm3439_vm5 = vweird.f32 %v9598_v30  ;;  %v3446_v21 = vor.u32 1.1754944e-38, %v3445_v35 }
 0x487   :  { %5045 = vst [vmem:[%s10640_s10 + $0xa8] sm:$0xff] %v3432_v51  ;;  %vm3441_vm6 = vmor %vm3439_vm5, %vm3440_vm4  ;;  %v3413_v43 = vand.u32 2147483647, %v9657_v39  ;;  %6770 = vrcp.f32 %v9675_v45  ;;  %v6088_v5 = vmul.f32 -1.442695, %v2560_v34  ;;  %vm3444_vm7 = vcmp.eq.f32.partialorder %v3443_v47, 8.507059e+37  ;;  %v2417_v54 = vpop.f32.mrf.mxu3 }
 0x488   :  { %v3442_v59 = vsel %vm3441_vm6, %v6757_v37, %v3438_v27  ;;  %v3415_v24 = vand.u32 2147483648, %v9657_v39  ;;  %6772 = vrcp.f32 %v9677_v18  ;;  %vm3409_vm8 = vweird.f32 %v9657_v39 }
 0x489   :  { %v6767_v8 = vpop.eup %6766  ;;  %v3447_v30 = vsel %vm3444_vm7, %v3446_v21, %v3442_v59  ;;  %v6094_v1 = vmul.f32 -1.442695, %v2465_v61  ;;  %v2514_v25 = vadd.f32 %v2513_v56, %v9445_v3  ;;  %v3458_v22 = vand.u32 2147483647, %v9675_v45 }
 0x48a   :  { %5046 = vst [vmem:[%s10640_s10 + $0xb0] sm:$0xff] %v3447_v30  ;;  %v3405_v42 = vmul.f32 %v6767_v8, %v9657_v39  ;;  %v3460_v48 = vand.u32 2147483648, %v9675_v45  ;;  %v9697_v11 = vadd.f32 1.0, %v6765_v15  ;;  %vm9699_vm9 = vcmp.eq.f32.partialorder %v3413_v43, 8.507059e+37 }
 0x48b   :  { %v6769_v26 = vpop.eup %6768  ;;  %v3548_v10 = vand.u32 2147483647, %v9677_v18  ;;  %v3550_v0 = vand.u32 2147483648, %v9677_v18  ;;  %6774 = vpow2.f32 %v6088_v5  ;;  %v3416_v31 = vor.u32 1.1754944e-38, %v3415_v24 }
 0x48c   :  { %v3406_v41 = vsub.f32 1.0, %v3405_v42  ;;  %vm3454_vm10 = vweird.f32 %v9675_v45  ;;  %6776 = vrcp.f32 %v9697_v11  ;;  %vm3544_vm11 = vweird.f32 %v9677_v18 }
 0x48d   :  { %v6771_v13 = vpop.eup %6770  ;;  %v9708_v4 = vadd.f32 1.0, %v6769_v26  ;;  %6778 = vpow2.f32 %v6094_v1  ;;  %v6095_v57 = vmul.f32 -1.442695, %v2514_v25  ;;  %vm3410_vm12 = vweird.f32 %v6767_v8  ;;  %v2466_v25 = vpop.f32.mrf.mxu0 }
 0x48e   :  { %v6773_v44 = vpop.eup %6772  ;;  %v3407_v60 = vmul.f32 %v6767_v8, %v3406_v41  ;;  %v3450_v6 = vmul.f32 %v6771_v13, %v9675_v45  ;;  %vm9711_vm13 = vcmp.eq.f32.partialorder %v3458_v22, 8.507059e+37  ;;  %v3461_v40 = vor.u32 1.1754944e-38, %v3460_v48  ;;  %vm3411_vm15 = vmor %vm3409_vm8, %vm3410_vm12 }
 0x48f   :  { %v3540_v37 = vmul.f32 %v6773_v44, %v9677_v18  ;;  %vm9716_vm14 = vcmp.eq.f32.partialorder %v3548_v10, 8.507059e+37  ;;  %v3551_v23 = vor.u32 1.1754944e-38, %v3550_v0  ;;  %6780 = vrcp.f32 %v9708_v4 }
 0x490   :  { %v3408_v33 = vadd.f32 %v6767_v8, %v3407_v60  ;;  %v3451_v32 = vsub.f32 1.0, %v3450_v6  ;;  %v3563_v36 = vand.u32 2147483647, %v9697_v11  ;;  %v2416_v17 = vadd.f32 %v2415_v14, %v9450_v55 }
 0x491   :  { %v6775_v38 = vpop.eup %6774  ;;  %v3541_v20 = vsub.f32 1.0, %v3540_v37  ;;  %vm3559_vm0 = vweird.f32 %v9697_v11  ;;  %v3565_v52 = vand.u32 2147483648, %v9697_v11  ;;  %6782 = vpow2.f32 %v6095_v57 }
 0x492   :  { %v6777_v16 = vpop.eup %6776  ;;  %v3412_v12 = vsel %vm3411_vm15, %v6767_v8, %v3408_v33  ;;  %v3452_v7 = vmul.f32 %v6771_v13, %v3451_v32  ;;  %vm3455_vm1 = vweird.f32 %v6771_v13  ;;  %v9727_v62 = vadd.f32 1.0, %v6775_v38  ;;  %v2564_v32 = vpop.f32.mrf.mxu2 }
 0x493   :  { %v6779_v29 = vpop.eup %6778  ;;  %v3417_v47 = vsel %vm9699_vm9, %v3416_v31, %v3412_v12  ;;  %v3542_v35 = vmul.f32 %v6773_v44, %v3541_v20  ;;  %vm3545_vm2 = vweird.f32 %v6773_v44  ;;  %v3555_v39 = vmul.f32 %v6777_v16, %v9697_v11  ;;  %vm3456_vm4 = vmor %vm3454_vm10, %vm3455_vm1  ;;  %v2515_v31 = vpop.f32.mrf.mxu1 }
 0x494   :  { %5044 = vst [vmem:[%s10640_s10 + $0xa0] sm:$0xff] %v3417_v47  ;;  %v3453_v49 = vadd.f32 %v6771_v13, %v3452_v7  ;;  %vm9735_vm3 = vcmp.eq.f32.partialorder %v3563_v36, 8.507059e+37  ;;  %6784 = vrcp.f32 %v9727_v62  ;;  %v6093_v46 = vmul.f32 -1.442695, %v2416_v17  ;;  %vm3546_vm5 = vmor %vm3544_vm11, %vm3545_vm2 }
 0x495   :  { %v6781_v2 = vpop.eup %6780  ;;  %v3543_v9 = vadd.f32 %v6773_v44, %v3542_v35  ;;  %v3556_v61 = vsub.f32 1.0, %v3555_v39  ;;  %v3533_v50 = vand.u32 2147483647, %v9708_v4  ;;  %v3535_v15 = vand.u32 2147483648, %v9708_v4 }
 0x496   :  { %v3457_v51 = vsel %vm3456_vm4, %v6771_v13, %v3453_v49  ;;  %v3525_v27 = vmul.f32 %v6781_v2, %v9708_v4  ;;  %v9748_v56 = vadd.f32 1.0, %v6779_v29  ;;  %v2563_v21 = vadd.f32 %v2562_v28, %v9453_v58 }
 0x497   :  { %v6783_v43 = vpop.eup %6782  ;;  %v3462_v45 = vsel %vm9711_vm13, %v3461_v40, %v3457_v51  ;;  %v3547_v5 = vsel %vm3546_vm5, %v6773_v44, %v3543_v9  ;;  %v3557_v59 = vmul.f32 %v6777_v16, %v3556_v61  ;;  %vm3560_vm6 = vweird.f32 %v6777_v16 }
 0x498   :  { %5047 = vst [vmem:[%s10640_s10 + $0xb8] sm:$0xff] %v3462_v45  ;;  %v3552_v18 = vsel %vm9716_vm14, %v3551_v23, %v3547_v5  ;;  %v3566_v24 = vor.u32 1.1754944e-38, %v3565_v52  ;;  %v3526_v8 = vsub.f32 1.0, %v3525_v27  ;;  %6786 = vrcp.f32 %v9748_v56  ;;  %vm3561_vm9 = vmor %vm3559_vm0, %vm3560_vm6 }
 0x499   :  { %5053 = vst [vmem:[%s10640_s10 + $0xe8] sm:$0xff] %v3552_v18  ;;  %v3558_v30 = vadd.f32 %v6777_v16, %v3557_v59  ;;  %vm3529_vm7 = vweird.f32 %v9708_v4  ;;  %vm3530_vm8 = vweird.f32 %v6781_v2  ;;  %v3578_v1 = vand.u32 2147483647, %v9727_v62 }
 0x49a   :  { %v6785_v42 = vpop.eup %6784  ;;  %v3527_v22 = vmul.f32 %v6781_v2, %v3526_v8  ;;  %v9766_v48 = vadd.f32 1.0, %v6783_v43  ;;  %6788 = vpow2.f32 %v6093_v46  ;;  %v6096_v26 = vmul.f32 -1.442695, %v2563_v21  ;;  %vm3531_vm11 = vmor %vm3529_vm7, %vm3530_vm8  ;;  %v2469_v46 = vpop.f32.mrf.mxu0 }
 0x49b   :  { %v3562_v53 = vsel %vm3561_vm9, %v6777_v16, %v3558_v30  ;;  %vm9768_vm10 = vcmp.eq.f32.partialorder %v3533_v50, 8.507059e+37  ;;  %v3536_v0 = vor.u32 1.1754944e-38, %v3535_v15  ;;  %v3570_v41 = vmul.f32 %v6785_v42, %v9727_v62  ;;  %v2518_v5 = vpop.f32.mrf.mxu1 }
 0x49c   :  { %v3567_v13 = vsel %vm9735_vm3, %v3566_v24, %v3562_v53  ;;  %v3528_v57 = vadd.f32 %v6781_v2, %v3527_v22  ;;  %v3580_v11 = vand.u32 2147483648, %v9727_v62  ;;  %6790 = vrcp.f32 %v9766_v48 }
 0x49d   :  { %5054 = vst [vmem:[%s10640_s10 + $0xf0] sm:$0xff] %v3567_v13  ;;  %v3571_v14 = vsub.f32 1.0, %v3570_v41  ;;  %vm3574_vm12 = vweird.f32 %v9727_v62  ;;  %vm9784_vm13 = vcmp.eq.f32.partialorder %v3578_v1, 8.507059e+37  ;;  %v3668_v60 = vand.u32 2147483647, %v9748_v56 }
 0x49e   :  { %v6787_v6 = vpop.eup %6786  ;;  %v3532_v63 = vsel %vm3531_vm11, %v6781_v2, %v3528_v57  ;;  %6792 = vpow2.f32 %v6096_v26  ;;  %v2467_v40 = vadd.f32 %v2466_v25, %v9358_v19  ;;  %v2516_v37 = vadd.f32 %v2515_v31, %v9445_v3 }
 0x49f   :  { %v3537_v4 = vsel %vm9768_vm10, %v3536_v0, %v3532_v63  ;;  %v3572_v23 = vmul.f32 %v6785_v42, %v3571_v14  ;;  %vm3575_vm14 = vweird.f32 %v6785_v42  ;;  %v3660_v33 = vmul.f32 %v6787_v6, %v9748_v56 }
 0x4a0   :  { %v6789_v36 = vpop.eup %6788  ;;  %5052 = vst [vmem:[%s10640_s10 + $0xe0] sm:$0xff] %v3537_v4  ;;  %v3581_v17 = vor.u32 1.1754944e-38, %v3580_v11  ;;  %vm3664_vm15 = vweird.f32 %v9748_v56  ;;  %v3670_v38 = vand.u32 2147483648, %v9748_v56  ;;  %v6102_v20 = vmul.f32 -1.442695, %v2467_v40  ;;  %vm3576_vm0 = vmor %vm3574_vm12, %vm3575_vm14  ;;  %v2567_v56 = vpop.f32.mrf.mxu2 }
 0x4a1   :  { %v3573_v52 = vadd.f32 %v6785_v42, %v3572_v23  ;;  %v3661_v16 = vsub.f32 1.0, %v3660_v33  ;;  %v9799_v12 = vadd.f32 1.0, %v6789_v36  ;;  %v2418_v7 = vadd.f32 %v2417_v54, %v9450_v55 }
 0x4a2   :  { %v6791_v29 = vpop.eup %6790  ;;  %vm9804_vm1 = vcmp.eq.f32.partialorder %v3668_v60, 8.507059e+37  ;;  %6794 = vpow2.f32 %v6102_v20  ;;  %v6103_v35 = vmul.f32 -1.442695, %v2516_v37  ;;  %v2565_v39 = vadd.f32 %v2564_v32, %v9453_v58  ;;  %v2420_v37 = vpop.f32.mrf.mxu3 }
 0x4a3   :  { %v3577_v28 = vsel %vm3576_vm0, %v6785_v42, %v3573_v52  ;;  %v3662_v49 = vmul.f32 %v6787_v6, %v3661_v16  ;;  %vm3665_vm2 = vweird.f32 %v6787_v6  ;;  %v3675_v34 = vmul.f32 %v6791_v29, %v9766_v48 }
 0x4a4   :  { %v6793_v2 = vpop.eup %6792  ;;  %v3582_v9 = vsel %vm9784_vm13, %v3581_v17, %v3577_v28  ;;  %v3671_v62 = vor.u32 1.1754944e-38, %v3670_v38  ;;  %v3683_v61 = vand.u32 2147483647, %v9766_v48  ;;  %6796 = vrcp.f32 %v9799_v12  ;;  %vm3666_vm3 = vmor %vm3664_vm15, %vm3665_vm2 }
 0x4a5   :  { %5055 = vst [vmem:[%s10640_s10 + $0xf8] sm:$0xff] %v3582_v9  ;;  %v3663_v50 = vadd.f32 %v6787_v6, %v3662_v49  ;;  %v3676_v15 = vsub.f32 1.0, %v3675_v34  ;;  %v9817_v51 = vadd.f32 1.0, %v6793_v2  ;;  %v6101_v27 = vmul.f32 -1.442695, %v2418_v7 }
 0x4a6   :  { %v3685_v21 = vand.u32 2147483648, %v9766_v48  ;;  %6798 = vpow2.f32 %v6103_v35  ;;  %v6104_v43 = vmul.f32 -1.442695, %v2565_v39  ;;  %v2470_v45 = vadd.f32 %v2469_v46, %v9358_v19 }
 0x4a7   :  { %v3667_v59 = vsel %vm3666_vm3, %v6787_v6, %v3663_v50  ;;  %v3677_v18 = vmul.f32 %v6791_v29, %v3676_v15  ;;  %vm3680_vm4 = vweird.f32 %v6791_v29  ;;  %6800 = vrcp.f32 %v9817_v51 }
 0x4a8   :  { %v6795_v24 = vpop.eup %6794  ;;  %v3672_v8 = vsel %vm9804_vm1, %v3671_v62, %v3667_v59  ;;  %vm3679_vm5 = vweird.f32 %v9766_v48  ;;  %vm9827_vm6 = vcmp.eq.f32.partialorder %v3683_v61, 8.507059e+37  ;;  %v3653_v30 = vand.u32 2147483647, %v9799_v12 }
 0x4a9   :  { %5061 = vst [vmem:[%s10640_s10 + $0x128] sm:$0xff] %v3672_v8  ;;  %v3678_v1 = vadd.f32 %v6791_v29, %v3677_v18  ;;  %v9835_v25 = vadd.f32 1.0, %v6795_v24  ;;  %6802 = vpow2.f32 %v6101_v27  ;;  %v2519_v42 = vadd.f32 %v2518_v5, %v9445_v3  ;;  %vm3681_vm7 = vmor %vm3679_vm5, %vm3680_vm4 }
 0x4aa   :  { %v6797_v22 = vpop.eup %6796  ;;  %v3686_v26 = vor.u32 1.1754944e-38, %v3685_v21  ;;  %v3655_v48 = vand.u32 2147483648, %v9799_v12  ;;  %6804 = vpow2.f32 %v6104_v43  ;;  %v6110_v53 = vmul.f32 -1.442695, %v2470_v45 }
 0x4ab   :  { %v3682_v10 = vsel %vm3681_vm7, %v6791_v29, %v3678_v1  ;;  %v3645_v0 = vmul.f32 %v6797_v22, %v9799_v12  ;;  %v3698_v41 = vand.u32 2147483647, %v9817_v51  ;;  %6806 = vrcp.f32 %v9835_v25 }
 0x4ac   :  { %v6799_v31 = vpop.eup %6798  ;;  %v3687_v13 = vsel %vm9827_vm6, %v3686_v26, %v3682_v10  ;;  %vm3649_vm8 = vweird.f32 %v9799_v12  ;;  %v3700_v57 = vand.u32 2147483648, %v9817_v51  ;;  %vm9849_vm9 = vcmp.eq.f32.partialorder %v3653_v30, 8.507059e+37  ;;  %v2471_v10 = vpop.f32.mrf.mxu0 }
 0x4ad   :  { %v6801_v11 = vpop.eup %6800  ;;  %5062 = vst [vmem:[%s10640_s10 + $0x130] sm:$0xff] %v3687_v13  ;;  %v3646_v14 = vsub.f32 1.0, %v3645_v0  ;;  %v9853_v60 = vadd.f32 1.0, %v6799_v31  ;;  %v6111_v6 = vmul.f32 -1.442695, %v2519_v42  ;;  %v3656_v63 = vor.u32 1.1754944e-38, %v3655_v48 }
 0x4ae   :  { %v3690_v40 = vmul.f32 %v6801_v11, %v9817_v51  ;;  %vm3694_vm10 = vweird.f32 %v9817_v51  ;;  %6808 = vpow2.f32 %v6110_v53  ;;  %vm3650_vm11 = vweird.f32 %v6797_v22 }
 0x4af   :  { %v6803_v54 = vpop.eup %6802  ;;  %v3647_v4 = vmul.f32 %v6797_v22, %v3646_v14  ;;  %vm9857_vm12 = vcmp.eq.f32.partialorder %v3698_v41, 8.507059e+37  ;;  %6810 = vrcp.f32 %v9853_v60  ;;  %v3701_v36 = vor.u32 1.1754944e-38, %v3700_v57  ;;  %vm3651_vm13 = vmor %vm3649_vm8, %vm3650_vm11 }
 0x4b0   :  { %v6805_v33 = vpop.eup %6804  ;;  %v3691_v32 = vsub.f32 1.0, %v3690_v40  ;;  %v9862_v17 = vadd.f32 1.0, %v6803_v54  ;;  %6812 = vpow2.f32 %v6111_v6  ;;  %v3788_v52 = vand.u32 2147483647, %v9835_v25  ;;  %v2520_v54 = vpop.f32.mrf.mxu1 }
 0x4b1   :  { %v6807_v38 = vpop.eup %6806  ;;  %v3648_v20 = vadd.f32 %v6797_v22, %v3647_v4  ;;  %v9865_v16 = vadd.f32 1.0, %v6805_v33  ;;  %v2421_v7 = vadd.f32 %v2420_v37, %v9450_v55  ;;  %vm3695_vm14 = vweird.f32 %v6801_v11 }
 0x4b2   :  { %v3692_v29 = vmul.f32 %v6801_v11, %v3691_v32  ;;  %v3780_v47 = vmul.f32 %v6807_v38, %v9835_v25  ;;  %vm3784_vm15 = vweird.f32 %v9835_v25  ;;  %v3790_v39 = vand.u32 2147483648, %v9835_v25  ;;  %vm3696_vm0 = vmor %vm3694_vm10, %vm3695_vm14 }
 0x4b3   :  { %v3652_v35 = vsel %vm3651_vm13, %v6797_v22, %v3648_v20  ;;  %v3803_v28 = vand.u32 2147483647, %v9853_v60  ;;  %6814 = vrcp.f32 %v9862_v17  ;;  %v3805_v2 = vand.u32 2147483648, %v9853_v60 }
 0x4b4   :  { %v6809_v49 = vpop.eup %6808  ;;  %v3657_v34 = vsel %vm9849_vm9, %v3656_v63, %v3652_v35  ;;  %v3693_v46 = vadd.f32 %v6801_v11, %v3692_v29  ;;  %v3781_v12 = vsub.f32 1.0, %v3780_v47  ;;  %vm3785_vm1 = vweird.f32 %v6807_v38 }
 0x4b5   :  { %v6811_v9 = vpop.eup %6810  ;;  %5060 = vst [vmem:[%s10640_s10 + $0x120] sm:$0xff] %v3657_v34  ;;  %vm9883_vm2 = vcmp.eq.f32.partialorder %v3788_v52, 8.507059e+37  ;;  %6816 = vrcp.f32 %v9865_v16  ;;  %v6109_v61 = vmul.f32 -1.442695, %v2421_v7  ;;  %v3773_v43 = vand.u32 2147483647, %v9862_v17  ;;  %vm3786_vm5 = vmor %vm3784_vm15, %vm3785_vm1  ;;  %v2422_v52 = vpop.f32.mrf.mxu3 }
 0x4b6   :  { %v6813_v50 = vpop.eup %6812  ;;  %v3697_v15 = vsel %vm3696_vm0, %v6801_v11, %v3693_v46  ;;  %v3782_v27 = vmul.f32 %v6807_v38, %v3781_v12  ;;  %v3795_v21 = vmul.f32 %v6811_v9, %v9853_v60  ;;  %v3791_v51 = vor.u32 1.1754944e-38, %v3790_v39 }
 0x4b7   :  { %v3702_v45 = vsel %vm9857_vm12, %v3701_v36, %v3697_v15  ;;  %vm3799_vm3 = vweird.f32 %v9853_v60  ;;  %vm9893_vm4 = vcmp.eq.f32.partialorder %v3803_v28, 8.507059e+37  ;;  %v3806_v24 = vor.u32 1.1754944e-38, %v3805_v2  ;;  %v2569_v2 = vpop.f32.mrf.mxu2  ;;  %v2474_v15 = vpop.f32.mrf.mxu0 }
 0x4b8   :  { %5063 = vst [vmem:[%s10640_s10 + $0x138] sm:$0xff] %v3702_v45  ;;  %v3783_v59 = vadd.f32 %v6807_v38, %v3782_v27  ;;  %v3796_v18 = vsub.f32 1.0, %v3795_v21  ;;  %v9900_v8 = vadd.f32 1.0, %v6809_v49  ;;  %vm3769_vm6 = vweird.f32 %v9862_v17 }
 0x4b9   :  { %v6815_v30 = vpop.eup %6814  ;;  %v3775_v1 = vand.u32 2147483648, %v9862_v17  ;;  %v9907_v42 = vadd.f32 1.0, %v6813_v50  ;;  %6818 = vpow2.f32 %v6109_v61  ;;  %vm3800_vm7 = vweird.f32 %v6811_v9 }
 0x4ba   :  { %v3787_v22 = vsel %vm3786_vm5, %v6807_v38, %v3783_v59  ;;  %v3797_v26 = vmul.f32 %v6811_v9, %v3796_v18  ;;  %v3765_v48 = vmul.f32 %v6815_v30, %v9862_v17  ;;  %vm9910_vm8 = vcmp.eq.f32.partialorder %v3773_v43, 8.507059e+37  ;;  %vm3801_vm10 = vmor %vm3799_vm3, %vm3800_vm7 }
 0x4bb   :  { %v6817_v0 = vpop.eup %6816  ;;  %v3792_v25 = vsel %vm9883_vm2, %v3791_v51, %v3787_v22  ;;  %v3818_v41 = vand.u32 2147483647, %v9865_v16  ;;  %6820 = vrcp.f32 %v9900_v8  ;;  %v2568_v31 = vadd.f32 %v2567_v56, %v9453_v58  ;;  %v2523_v22 = vpop.f32.mrf.mxu1 }
 0x4bc   :  { %5069 = vst [vmem:[%s10640_s10 + $0x168] sm:$0xff] %v3792_v25  ;;  %v3798_v13 = vadd.f32 %v6811_v9, %v3797_v26  ;;  %v3766_v57 = vsub.f32 1.0, %v3765_v48  ;;  %v3810_v11 = vmul.f32 %v6817_v0, %v9865_v16  ;;  %vm3814_vm9 = vweird.f32 %v9865_v16 }
 0x4bd   :  { %vm3770_vm11 = vweird.f32 %v6815_v30  ;;  %v3820_v14 = vand.u32 2147483648, %v9865_v16  ;;  %6822 = vrcp.f32 %v9907_v42  ;;  %v2472_v44 = vadd.f32 %v2471_v10, %v9358_v19 }
 0x4be   :  { %v3802_v6 = vsel %vm3801_vm10, %v6811_v9, %v3798_v13  ;;  %v3767_v63 = vmul.f32 %v6815_v30, %v3766_v57  ;;  %v3811_v40 = vsub.f32 1.0, %v3810_v11  ;;  %v3908_v37 = vand.u32 2147483647, %v9900_v8  ;;  %vm3771_vm14 = vmor %vm3769_vm6, %vm3770_vm11  ;;  %v2425_v13 = vpop.f32.mrf.mxu3 }
 0x4bf   :  { %v6819_v4 = vpop.eup %6818  ;;  %v3807_v23 = vsel %vm9893_vm4, %v3806_v24, %v3802_v6  ;;  %v3776_v33 = vor.u32 1.1754944e-38, %v3775_v1  ;;  %vm9932_vm12 = vcmp.eq.f32.partialorder %v3818_v41, 8.507059e+37  ;;  %v6112_v32 = vmul.f32 -1.442695, %v2568_v31 }
 0x4c0   :  { %5070 = vst [vmem:[%s10640_s10 + $0x170] sm:$0xff] %v3807_v23  ;;  %v3768_v36 = vadd.f32 %v6815_v30, %v3767_v63  ;;  %v3812_v38 = vmul.f32 %v6817_v0, %v3811_v40  ;;  %vm3815_vm13 = vweird.f32 %v6817_v0  ;;  %v9939_v20 = vadd.f32 1.0, %v6819_v4  ;;  %v2572_v4 = vpop.f32.mrf.mxu2 }
 0x4c1   :  { %v6821_v7 = vpop.eup %6820  ;;  %v3821_v29 = vor.u32 1.1754944e-38, %v3820_v14  ;;  %vm3904_vm15 = vweird.f32 %v9900_v8  ;;  %6824 = vpow2.f32 %v6112_v32  ;;  %v6118_v47 = vmul.f32 -1.442695, %v2472_v44  ;;  %vm3816_vm1 = vmor %vm3814_vm9, %vm3815_vm13 }
 0x4c2   :  { %v3772_v35 = vsel %vm3771_vm14, %v6815_v30, %v3768_v36  ;;  %v3813_v39 = vadd.f32 %v6817_v0, %v3812_v38  ;;  %v3900_v28 = vmul.f32 %v6821_v7, %v9900_v8  ;;  %vm9946_vm0 = vcmp.eq.f32.partialorder %v3908_v37, 8.507059e+37 }
 0x4c3   :  { %v2521_v34 = vadd.f32 %v2520_v54, %v9445_v3  ;;  %v6823_v46 = vpop.eup %6822  ;;  %v3777_v17 = vsel %vm9910_vm8, %v3776_v33, %v3772_v35  ;;  %v3910_v12 = vand.u32 2147483648, %v9900_v8  ;;  %vm3919_vm2 = vweird.f32 %v9907_v42 }
 0x4c4   :  { %6826 = vrcp.f32 %v9939_v20  ;;  %5068 = vst [vmem:[%s10640_s10 + $0x160] sm:$0xff] %v3777_v17  ;;  %v3817_v9 = vsel %vm3816_vm1, %v6817_v0, %v3813_v39  ;;  %v3901_v62 = vsub.f32 1.0, %v3900_v28  ;;  %v3915_v61 = vmul.f32 %v6823_v46, %v9907_v42 }
 0x4c5   :  { %v3923_v50 = vand.u32 2147483647, %v9907_v42  ;;  %v3822_v16 = vsel %vm9932_vm12, %v3821_v29, %v3817_v9  ;;  %vm3905_vm3 = vweird.f32 %v6821_v7  ;;  %v3925_v27 = vand.u32 2147483648, %v9907_v42 }
 0x4c6   :  { %6828 = vpow2.f32 %v6118_v47  ;;  %5071 = vst [vmem:[%s10640_s10 + $0x178] sm:$0xff] %v3822_v16  ;;  %v3902_v21 = vmul.f32 %v6821_v7, %v3901_v62  ;;  %v3916_v43 = vsub.f32 1.0, %v3915_v61  ;;  %v6119_v45 = vmul.f32 -1.442695, %v2521_v34  ;;  %vm3906_vm5 = vmor %vm3904_vm15, %vm3905_vm3 }
 0x4c7   :  { %v2423_v51 = vadd.f32 %v2422_v52, %v9450_v55  ;;  %v6825_v5 = vpop.eup %6824  ;;  %v3911_v59 = vor.u32 1.1754944e-38, %v3910_v12  ;;  %vm3920_vm4 = vweird.f32 %v6823_v46  ;;  %v2570_v18 = vadd.f32 %v2569_v2, %v9453_v58 }
 0x4c8   :  { %v2475_v24 = vadd.f32 %v2474_v15, %v9358_v19  ;;  %v3903_v56 = vadd.f32 %v6821_v7, %v3902_v21  ;;  %v3917_v30 = vmul.f32 %v6823_v46, %v3916_v43  ;;  %v9973_v1 = vadd.f32 1.0, %v6825_v5  ;;  %vm3921_vm8 = vmor %vm3919_vm2, %vm3920_vm4 }
 0x4c9   :  { %6830 = vpow2.f32 %v6119_v45  ;;  %vm9978_vm6 = vcmp.eq.f32.partialorder %v3923_v50, 8.507059e+37  ;;  %v3926_v53 = vor.u32 1.1754944e-38, %v3925_v27  ;;  %vm3889_vm7 = vweird.f32 %v9939_v20  ;;  %v2427_v27 = vpop.f32.mrf.mxu3 }
 0x4ca   :  { %v6827_v26 = vpop.eup %6826  ;;  %v6117_v10 = vmul.f32 -1.442695, %v2423_v51  ;;  %v3907_v0 = vsel %vm3906_vm5, %v6821_v7, %v3903_v56  ;;  %v3918_v25 = vadd.f32 %v6823_v46, %v3917_v30  ;;  %v3893_v31 = vand.u32 2147483647, %v9939_v20 }
 0x4cb   :  { %v3885_v41 = vmul.f32 %v6827_v26, %v9939_v20  ;;  %v3912_v8 = vsel %vm9946_vm0, %v3911_v59, %v3907_v0  ;;  %6832 = vrcp.f32 %v9973_v1  ;;  %v6120_v11 = vmul.f32 -1.442695, %v2570_v18 }
 0x4cc   :  { %v6829_v57 = vpop.eup %6828  ;;  %v2524_v14 = vadd.f32 %v2523_v22, %v9445_v3  ;;  %5077 = vst [vmem:[%s10640_s10 + $0x1a8] sm:$0xff] %v3912_v8  ;;  %v3922_v44 = vsel %vm3921_vm8, %v6823_v46, %v3918_v25  ;;  %v6126_v40 = vmul.f32 -1.442695, %v2475_v24  ;;  %v3895_v42 = vand.u32 2147483648, %v9939_v20 }
 0x4cd   :  { %v3886_v6 = vsub.f32 1.0, %v3885_v41  ;;  %v9995_v63 = vadd.f32 1.0, %v6829_v57  ;;  %v3927_v37 = vsel %vm9978_vm6, %v3926_v53, %v3922_v44  ;;  %6834 = vpow2.f32 %v6117_v10 }
 0x4ce   :  { %v2426_v54 = vadd.f32 %v2425_v13, %v9450_v55  ;;  %5078 = vst [vmem:[%s10640_s10 + $0x1b0] sm:$0xff] %v3927_v37  ;;  %vm3890_vm9 = vweird.f32 %v6827_v26  ;;  %v3938_v60 = vand.u32 2147483647, %v9973_v1  ;;  %vm10006_vm10 = vcmp.eq.f32.partialorder %v3893_v31, 8.507059e+37 }
 0x4cf   :  { %v6831_v23 = vpop.eup %6830  ;;  %v3887_v33 = vmul.f32 %v6827_v26, %v3886_v6  ;;  %6836 = vrcp.f32 %v9995_v63  ;;  %v3940_v36 = vand.u32 2147483648, %v9973_v1  ;;  %v6127_v7 = vmul.f32 -1.442695, %v2524_v14  ;;  %vm3891_vm11 = vmor %vm3889_vm7, %vm3890_vm9 }
 0x4d0   :  { %v10011_v38 = vadd.f32 1.0, %v6831_v23  ;;  %6838 = vpow2.f32 %v6120_v11  ;;  %v2573_v29 = vadd.f32 %v2572_v4, %v9453_v58  ;;  %v3896_v35 = vor.u32 1.1754944e-38, %v3895_v42 }
 0x4d1   :  { %v3888_v52 = vadd.f32 %v6827_v26, %v3887_v33  ;;  %6840 = vpow2.f32 %v6126_v40  ;;  %v6833_v47 = vpop.eup %6832  ;;  %v4028_v39 = vand.u32 2147483647, %v9995_v63  ;;  %v6125_v28 = vmul.f32 -1.442695, %v2426_v54 }
 0x4d2   :  { %6842 = vrcp.f32 %v10011_v38  ;;  %v3930_v34 = vmul.f32 %v6833_v47, %v9973_v1  ;;  %vm3934_vm12 = vweird.f32 %v9973_v1  ;;  %vm10020_vm13 = vcmp.eq.f32.partialorder %v3938_v60, 8.507059e+37 }
 0x4d3   :  { %v3892_v49 = vsel %vm3891_vm11, %v6827_v26, %v3888_v52  ;;  %v6835_v17 = vpop.eup %6834  ;;  %v3941_v12 = vor.u32 1.1754944e-38, %v3940_v36  ;;  %vm4024_vm14 = vweird.f32 %v9995_v63  ;;  %v4030_v2 = vand.u32 2147483648, %v9995_v63 }
 0x4d4   :  { %v3897_v20 = vsel %vm10006_vm10, %v3896_v35, %v3892_v49  ;;  %v3931_v62 = vsub.f32 1.0, %v3930_v34  ;;  %v10031_v61 = vadd.f32 1.0, %v6835_v17  ;;  %6844 = vpow2.f32 %v6127_v7 }
 0x4d5   :  { %v6837_v9 = vpop.eup %6836  ;;  %5076 = vst [vmem:[%s10640_s10 + $0x1a0] sm:$0xff] %v3897_v20  ;;  %v6128_v50 = vmul.f32 -1.442695, %v2573_v29  ;;  %vm3935_vm15 = vweird.f32 %v6833_v47  ;;  %vm10034_vm0 = vcmp.eq.f32.partialorder %v4028_v39, 8.507059e+37  ;;  %6846 = vpow2.f32 %v6125_v28  ;;  %v2430_v29 = vpop.f32.mrf.mxu3 }
 0x4d6   :  { %v6839_v15 = vpop.eup %6838  ;;  %v4020_v16 = vmul.f32 %v6837_v9, %v9995_v63  ;;  %v3932_v43 = vmul.f32 %v6833_v47, %v3931_v62  ;;  %v4043_v45 = vand.u32 2147483647, %v10011_v38  ;;  %v4045_v51 = vand.u32 2147483648, %v10011_v38  ;;  %vm3936_vm2 = vmor %vm3934_vm12, %vm3935_vm15 }
 0x4d7   :  { %v6841_v21 = vpop.eup %6840  ;;  %6848 = vrcp.f32 %v10031_v61  ;;  %v4031_v18 = vor.u32 1.1754944e-38, %v4030_v2  ;;  %v10041_v24 = vadd.f32 1.0, %v6839_v15  ;;  %vm4039_vm1 = vweird.f32 %v10011_v38 }
 0x4d8   :  { %v6843_v5 = vpop.eup %6842  ;;  %v4021_v59 = vsub.f32 1.0, %v4020_v16  ;;  %v10043_v56 = vadd.f32 1.0, %v6841_v21  ;;  %v3933_v30 = vadd.f32 %v6833_v47, %v3932_v43  ;;  %6850 = vpow2.f32 %v6128_v50  ;;  %v2574_v21 = vpop.f32.mrf.mxu2 }
 0x4d9   :  { %v4035_v22 = vmul.f32 %v6843_v5, %v10011_v38  ;;  %vm4025_vm3 = vweird.f32 %v6837_v9  ;;  %v4013_v48 = vand.u32 2147483647, %v10031_v61  ;;  %6852 = vrcp.f32 %v10041_v24  ;;  %v2476_v38 = vpop.f32.mrf.mxu0 }
 0x4da   :  { %v4022_v26 = vmul.f32 %v6837_v9, %v4021_v59  ;;  %v6845_v53 = vpop.eup %6844  ;;  %v3937_v10 = vsel %vm3936_vm2, %v6833_v47, %v3933_v30  ;;  %vm10052_vm4 = vcmp.eq.f32.partialorder %v4043_v45, 8.507059e+37  ;;  %v4046_v41 = vor.u32 1.1754944e-38, %v4045_v51  ;;  %vm4026_vm5 = vmor %vm4024_vm14, %vm4025_vm3 }
 0x4db   :  { %v4036_v0 = vsub.f32 1.0, %v4035_v22  ;;  %v6847_v31 = vpop.eup %6846  ;;  %v3942_v13 = vsel %vm10020_vm13, %v3941_v12, %v3937_v10  ;;  %v4015_v57 = vand.u32 2147483648, %v10031_v61  ;;  %6854 = vrcp.f32 %v10043_v56  ;;  %v2525_v12 = vpop.f32.mrf.mxu1 }
 0x4dc   :  { %v4023_v1 = vadd.f32 %v6837_v9, %v4022_v26  ;;  %5079 = vst [vmem:[%s10640_s10 + $0x1b8] sm:$0xff] %v3942_v13  ;;  %vm4040_vm6 = vweird.f32 %v6843_v5  ;;  %vm4009_vm7 = vweird.f32 %v10031_v61  ;;  %v4058_v14 = vand.u32 2147483647, %v10041_v24 }
 0x4dd   :  { %v6849_v8 = vpop.eup %6848  ;;  %v4037_v11 = vmul.f32 %v6843_v5, %v4036_v0  ;;  %vm10069_vm8 = vcmp.eq.f32.partialorder %v4013_v48, 8.507059e+37  ;;  %v4060_v37 = vand.u32 2147483648, %v10041_v24  ;;  %v4148_v4 = vand.u32 2147483647, %v10043_v56  ;;  %vm4041_vm9 = vmor %vm4039_vm1, %vm4040_vm6 }
 0x4de   :  { %v4027_v44 = vsel %vm4026_vm5, %v6837_v9, %v4023_v1  ;;  %v4005_v6 = vmul.f32 %v6849_v8, %v10031_v61  ;;  %v6851_v42 = vpop.eup %6850  ;;  %v10077_v23 = vadd.f32 1.0, %v6845_v53  ;;  %v4016_v32 = vor.u32 1.1754944e-38, %v4015_v57 }
 0x4df   :  { %v4032_v63 = vsel %vm10034_vm0, %v4031_v18, %v4027_v44  ;;  %v4038_v54 = vadd.f32 %v6843_v5, %v4037_v11  ;;  %v6853_v33 = vpop.eup %6852  ;;  %vm4054_vm10 = vweird.f32 %v10041_v24  ;;  %v10085_v36 = vadd.f32 1.0, %v6847_v31 }
 0x4e0   :  { %5085 = vst [vmem:[%s10640_s10 + $0x1e8] sm:$0xff] %v4032_v63  ;;  %v4006_v60 = vsub.f32 1.0, %v4005_v6  ;;  %v4050_v7 = vmul.f32 %v6853_v33, %v10041_v24  ;;  %vm10088_vm11 = vcmp.eq.f32.partialorder %v4058_v14, 8.507059e+37  ;;  %vm4144_vm12 = vweird.f32 %v10043_v56 }
 0x4e1   :  { %v4042_v52 = vsel %vm4041_vm9, %v6843_v5, %v4038_v54  ;;  %v4150_v47 = vand.u32 2147483648, %v10043_v56  ;;  %6856 = vrcp.f32 %v10077_v23  ;;  %v6855_v35 = vpop.eup %6854  ;;  %vm4010_vm13 = vweird.f32 %v6849_v8  ;;  %v2479_v11 = vpop.f32.mrf.mxu0 }
 0x4e2   :  { %v4047_v39 = vsel %vm10052_vm4, %v4046_v41, %v4042_v52  ;;  %v4007_v28 = vmul.f32 %v6849_v8, %v4006_v60  ;;  %v10097_v49 = vadd.f32 1.0, %v6851_v42  ;;  %v4051_v34 = vsub.f32 1.0, %v4050_v7  ;;  %vm4011_vm15 = vmor %vm4009_vm7, %vm4010_vm13 }
 0x4e3   :  { %5086 = vst [vmem:[%s10640_s10 + $0x1f0] sm:$0xff] %v4047_v39  ;;  %v4061_v46 = vor.u32 1.1754944e-38, %v4060_v37  ;;  %v4140_v17 = vmul.f32 %v6855_v35, %v10043_v56  ;;  %vm10103_vm14 = vcmp.eq.f32.partialorder %v4148_v4, 8.507059e+37  ;;  %v4163_v9 = vand.u32 2147483647, %v10077_v23  ;;  %v2528_v54 = vpop.f32.mrf.mxu1 }
 0x4e4   :  { %v4008_v2 = vadd.f32 %v6849_v8, %v4007_v28  ;;  %v4165_v62 = vand.u32 2147483648, %v10077_v23  ;;  %6858 = vrcp.f32 %v10085_v36  ;;  %v4052_v50 = vmul.f32 %v6853_v33, %v4051_v34 }
 0x4e5   :  { %vm4055_vm0 = vweird.f32 %v6853_v33  ;;  %v4141_v15 = vsub.f32 1.0, %v4140_v17  ;;  %v4151_v16 = vor.u32 1.1754944e-38, %v4150_v47  ;;  %vm4159_vm1 = vweird.f32 %v10077_v23  ;;  %v2577_v47 = vpop.f32.mrf.mxu2 }
 0x4e6   :  { %v4012_v43 = vsel %vm4011_vm15, %v6849_v8, %v4008_v2  ;;  %v4135_v45 = vand.u32 2147483648, %v10085_v36  ;;  %6860 = vrcp.f32 %v10097_v49  ;;  %v4053_v59 = vadd.f32 %v6853_v33, %v4052_v50  ;;  %vm4056_vm3 = vmor %vm4054_vm10, %vm4055_vm0 }
 0x4e7   :  { %v6857_v51 = vpop.eup %6856  ;;  %v4017_v5 = vsel %vm10069_vm8, %v4016_v32, %v4012_v43  ;;  %v4142_v61 = vmul.f32 %v6855_v35, %v4141_v15  ;;  %vm4145_vm2 = vweird.f32 %v6855_v35  ;;  %vm10124_vm5 = vcmp.eq.f32.partialorder %v4163_v9, 8.507059e+37 }
 0x4e8   :  { %5084 = vst [vmem:[%s10640_s10 + $0x1e0] sm:$0xff] %v4017_v5  ;;  %v4155_v18 = vmul.f32 %v6857_v51, %v10077_v23  ;;  %vm4160_vm4 = vweird.f32 %v6857_v51  ;;  %v4166_v22 = vor.u32 1.1754944e-38, %v4165_v62  ;;  %v4133_v26 = vand.u32 2147483647, %v10085_v36  ;;  %vm4146_vm7 = vmor %vm4144_vm12, %vm4145_vm2 }
 0x4e9   :  { %v4057_v48 = vsel %vm4056_vm3, %v6853_v33, %v4053_v59  ;;  %v4143_v53 = vadd.f32 %v6855_v35, %v4142_v61  ;;  %vm4129_vm6 = vweird.f32 %v10085_v36  ;;  %v4136_v10 = vor.u32 1.1754944e-38, %v4135_v45  ;;  %v2481_v43 = vpop.f32.mrf.mxu0 }
 0x4ea   :  { %v2477_v0 = vadd.f32 %v2476_v38, %v9358_v19  ;;  %v6859_v25 = vpop.eup %6858  ;;  %v4062_v24 = vsel %vm10088_vm11, %v4061_v46, %v4057_v48  ;;  %v4156_v41 = vsub.f32 1.0, %v4155_v18  ;;  %v4178_v31 = vand.u32 2147483647, %v10097_v49  ;;  %vm4161_vm11 = vmor %vm4159_vm1, %vm4160_vm4  ;;  %v2432_v48 = vpop.f32.mrf.mxu3 }
 0x4eb   :  { %v2526_v13 = vadd.f32 %v2525_v12, %v9445_v3  ;;  %5087 = vst [vmem:[%s10640_s10 + $0x1f8] sm:$0xff] %v4062_v24  ;;  %v4147_v1 = vsel %vm4146_vm7, %v6855_v35, %v4143_v53  ;;  %v4125_v57 = vmul.f32 %v6859_v25, %v10085_v36  ;;  %vm4130_vm8 = vweird.f32 %v6859_v25 }
 0x4ec   :  { %vm4174_vm9 = vweird.f32 %v10097_v49  ;;  %v4180_v8 = vand.u32 2147483648, %v10097_v49  ;;  %v6861_v56 = vpop.eup %6860  ;;  %v4152_v14 = vsel %vm10103_vm14, %v4151_v16, %v4147_v1  ;;  %v4157_v44 = vmul.f32 %v6857_v51, %v4156_v41  ;;  %vm4131_vm12 = vmor %vm4129_vm6, %vm4130_vm8 }
 0x4ed   :  { %v6134_v6 = vmul.f32 -1.442695, %v2477_v0  ;;  %v6135_v40 = vmul.f32 -1.442695, %v2526_v13  ;;  %5093 = vst [vmem:[%s10640_s10 + $0x228] sm:$0xff] %v4152_v14  ;;  %v4126_v37 = vsub.f32 1.0, %v4125_v57  ;;  %v4170_v42 = vmul.f32 %v6861_v56, %v10097_v49 }
 0x4ee   :  { %vm4175_vm10 = vweird.f32 %v6861_v56  ;;  %v2428_v63 = vadd.f32 %v2427_v27, %v9450_v55  ;;  %v4158_v4 = vadd.f32 %v6857_v51, %v4157_v44  ;;  %v2575_v33 = vadd.f32 %v2574_v21, %v9453_v58 }
 0x4ef   :  { %6862 = vpow2.f32 %v6134_v6  ;;  %v2480_v60 = vadd.f32 %v2479_v11, %v9358_v19  ;;  %v4127_v32 = vmul.f32 %v6859_v25, %v4126_v37  ;;  %v4171_v52 = vsub.f32 1.0, %v4170_v42  ;;  %vm4176_vm14 = vmor %vm4174_vm9, %vm4175_vm10 }
 0x4f0   :  { %6864 = vpow2.f32 %v6135_v40  ;;  %v6133_v7 = vmul.f32 -1.442695, %v2428_v63  ;;  %v4162_v38 = vsel %vm4161_vm11, %v6857_v51, %v4158_v4  ;;  %v6136_v35 = vmul.f32 -1.442695, %v2575_v33 }
 0x4f1   :  { %v6142_v39 = vmul.f32 -1.442695, %v2480_v60  ;;  %v2529_v28 = vadd.f32 %v2528_v54, %v9445_v3  ;;  %v4167_v34 = vsel %vm10124_vm5, %v4166_v22, %v4162_v38  ;;  %v4128_v46 = vadd.f32 %v6859_v25, %v4127_v32 }
 0x4f2   :  { %v4172_v17 = vmul.f32 %v6861_v56, %v4171_v52  ;;  %6866 = vpow2.f32 %v6133_v7  ;;  %5094 = vst [vmem:[%s10640_s10 + $0x230] sm:$0xff] %v4167_v34  ;;  %v2431_v20 = vadd.f32 %v2430_v29, %v9450_v55  ;;  %v2578_v12 = vadd.f32 %v2577_v47, %v9453_v58 }
 0x4f3   :  { %6868 = vpow2.f32 %v6136_v35  ;;  %v6143_v23 = vmul.f32 -1.442695, %v2529_v28  ;;  %v4132_v2 = vsel %vm4131_vm12, %v6859_v25, %v4128_v46  ;;  %vm4134_vm13 = vcmp.eq.f32.partialorder %v4133_v26, 8.507059e+37  ;;  %v2530_v26 = vpop.f32.mrf.mxu1 }
 0x4f4   :  { %v4173_v9 = vadd.f32 %v6861_v56, %v4172_v17  ;;  %6870 = vpow2.f32 %v6142_v39  ;;  %v4137_v50 = vsel %vm4134_vm13, %v4136_v10, %v4132_v2  ;;  %v4181_v15 = vor.u32 1.1754944e-38, %v4180_v8 }
 0x4f5   :  { %v6863_v62 = vpop.eup %6862  ;;  %5092 = vst [vmem:[%s10640_s10 + $0x220] sm:$0xff] %v4137_v50  ;;  %vm4179_vm15 = vcmp.eq.f32.partialorder %v4178_v31, 8.507059e+37  ;;  %v6141_v21 = vmul.f32 -1.442695, %v2431_v20  ;;  %6872 = vpow2.f32 %v6143_v23  ;;  %v6144_v5 = vmul.f32 -1.442695, %v2578_v12 }
 0x4f6   :  { %v6865_v16 = vpop.eup %6864  ;;  %v4177_v36 = vsel %vm4176_vm14, %v6861_v56, %v4173_v9  ;;  %v10173_v27 = vadd.f32 1.0, %v6863_v62  ;;  %v2482_v61 = vadd.f32 %v2481_v43, %v9358_v19  ;;  %v10196_v13 = vadd.f32 %v2530_v26, %v9445_v3 }
 0x4f7   :  { %v4182_v45 = vsel %vm4179_vm15, %v4181_v15, %v4177_v36  ;;  %v10175_v51 = vadd.f32 1.0, %v6865_v16  ;;  %v10199_v1 = vadd.f32 %v2432_v48, %v9450_v55 }
 0x4f8   :  { %v6867_v59 = vpop.eup %6866  ;;  %5095 = vst [vmem:[%s10640_s10 + $0x238] sm:$0xff] %v4182_v45  ;;  %6874 = vrcp.f32 %v10173_v27  ;;  %v4268_v53 = vand.u32 2147483647, %v10173_v27  ;;  %v4270_v10 = vand.u32 2147483648, %v10173_v27  ;;  %v6150_v31 = vmul.f32 -1.442695, %v2482_v61 }
 0x4f9   :  { %v6869_v49 = vpop.eup %6868  ;;  %6876 = vrcp.f32 %v10175_v51  ;;  %v10183_v30 = vadd.f32 1.0, %v6867_v59  ;;  %v4283_v25 = vand.u32 2147483647, %v10175_v51  ;;  %v4285_v24 = vand.u32 2147483648, %v10175_v51 }
 0x4fa   :  { %v6871_v18 = vpop.eup %6870  ;;  %v10185_v22 = vadd.f32 1.0, %v6869_v49  ;;  %6878 = vpow2.f32 %v6141_v21  ;;  %vm4264_vm0 = vweird.f32 %v10173_v27  ;;  %vm4279_vm1 = vweird.f32 %v10175_v51 }
 0x4fb   :  { %v10189_v0 = vadd.f32 1.0, %v6871_v18  ;;  %6880 = vpow2.f32 %v6144_v5  ;;  %v6873_v41 = vpop.eup %6872  ;;  %v4255_v8 = vand.u32 2147483648, %v10183_v30  ;;  %vm10206_vm2 = vcmp.eq.f32.partialorder %v4268_v53, 8.507059e+37 }
 0x4fc   :  { %6882 = vrcp.f32 %v10183_v30  ;;  %v4271_v44 = vor.u32 1.1754944e-38, %v4270_v10  ;;  %v4253_v6 = vand.u32 2147483647, %v10183_v30  ;;  %vm10212_vm3 = vcmp.eq.f32.partialorder %v4283_v25, 8.507059e+37 }
 0x4fd   :  { %6884 = vrcp.f32 %v10185_v22  ;;  %v4286_v63 = vor.u32 1.1754944e-38, %v4285_v24  ;;  %v4298_v54 = vand.u32 2147483647, %v10185_v22  ;;  %vm4249_vm4 = vweird.f32 %v10183_v30 }
 0x4fe   :  { %v6875_v57 = vpop.eup %6874  ;;  %6886 = vrcp.f32 %v10189_v0  ;;  %v4300_v60 = vand.u32 2147483648, %v10185_v22  ;;  %v10219_v32 = vadd.f32 1.0, %v6873_v41  ;;  %v4256_v29 = vor.u32 1.1754944e-38, %v4255_v8 }
 0x4ff   :  { %v6877_v11 = vpop.eup %6876  ;;  %v4260_v56 = vmul.f32 %v6875_v57, %v10173_v27  ;;  %vm4265_vm5 = vweird.f32 %v6875_v57  ;;  %vm4294_vm7 = vweird.f32 %v10185_v22  ;;  %vm10223_vm8 = vcmp.eq.f32.partialorder %v4253_v6, 8.507059e+37 }
 0x500   :  { %v6879_v40 = vpop.eup %6878  ;;  %v4275_v37 = vmul.f32 %v6877_v11, %v10175_v51  ;;  %vm4280_vm6 = vweird.f32 %v6877_v11  ;;  %vm4384_vm9 = vweird.f32 %v10189_v0  ;;  %6888 = vrcp.f32 %v10219_v32  ;;  %vm4266_vm11 = vmor %vm4264_vm0, %vm4265_vm5 }
 0x501   :  { %v6881_v4 = vpop.eup %6880  ;;  %v4261_v33 = vsub.f32 1.0, %v4260_v56  ;;  %v10229_v28 = vadd.f32 1.0, %v6879_v40  ;;  %vm10232_vm10 = vcmp.eq.f32.partialorder %v4298_v54, 8.507059e+37  ;;  %v4388_v20 = vand.u32 2147483647, %v10189_v0  ;;  %vm4281_vm13 = vmor %vm4279_vm1, %vm4280_vm6 }
 0x502   :  { %v6883_v52 = vpop.eup %6882  ;;  %v4276_v7 = vsub.f32 1.0, %v4275_v37  ;;  %v4390_v12 = vand.u32 2147483648, %v10189_v0  ;;  %6890 = vpow2.f32 %v6150_v31  ;;  %v10242_v16 = vadd.f32 1.0, %v6881_v4 }
 0x503   :  { %v6885_v47 = vpop.eup %6884  ;;  %v4262_v38 = vmul.f32 %v6875_v57, %v4261_v33  ;;  %v4245_v35 = vmul.f32 %v6883_v52, %v10183_v30  ;;  %vm4250_vm12 = vweird.f32 %v6883_v52  ;;  %6892 = vrcp.f32 %v10229_v28  ;;  %v2579_v30 = vpop.f32.mrf.mxu2 }
 0x504   :  { %v6887_v34 = vpop.eup %6886  ;;  %v4277_v46 = vmul.f32 %v6877_v11, %v4276_v7  ;;  %v4290_v17 = vmul.f32 %v6885_v47, %v10185_v22  ;;  %vm4295_vm14 = vweird.f32 %v6885_v47  ;;  %vm4251_vm0 = vmor %vm4249_vm4, %vm4250_vm12  ;;  %v4301_v26 = vor.u32 1.1754944e-38, %v4300_v60  ;;  %v2484_v7 = vpop.f32.mrf.mxu0 }
 0x505   :  { %v4263_v2 = vadd.f32 %v6875_v57, %v4262_v38  ;;  %v4246_v9 = vsub.f32 1.0, %v4245_v35  ;;  %v4380_v62 = vmul.f32 %v6887_v34, %v10189_v0  ;;  %vm4385_vm15 = vweird.f32 %v6887_v34 }
 0x506   :  { %v4278_v50 = vadd.f32 %v6877_v11, %v4277_v46  ;;  %v4291_v15 = vsub.f32 1.0, %v4290_v17  ;;  %v6889_v59 = vpop.eup %6888  ;;  %vm10261_vm1 = vcmp.eq.f32.partialorder %v4388_v20, 8.507059e+37  ;;  %v4391_v41 = vor.u32 1.1754944e-38, %v4390_v12  ;;  %v2435_v17 = vpop.f32.mrf.mxu3 }
 0x507   :  { %v4267_v36 = vsel %vm4266_vm11, %v6875_v57, %v4263_v2  ;;  %v4247_v21 = vmul.f32 %v6883_v52, %v4246_v9  ;;  %v4381_v43 = vsub.f32 1.0, %v4380_v62  ;;  %v4395_v53 = vmul.f32 %v6889_v59, %v10219_v32 }
 0x508   :  { %v4272_v45 = vsel %vm10206_vm2, %v4271_v44, %v4267_v36  ;;  %v4282_v5 = vsel %vm4281_vm13, %v6877_v11, %v4278_v50  ;;  %v4292_v27 = vmul.f32 %v6885_v47, %v4291_v15  ;;  %v6891_v10 = vpop.eup %6890  ;;  %vm4296_vm2 = vmor %vm4294_vm7, %vm4295_vm14  ;;  %v4403_v31 = vand.u32 2147483647, %v10219_v32 }
 0x509   :  { %5101 = vst [vmem:[%s10640_s10 + $0x268] sm:$0xff] %v4272_v45  ;;  %v4287_v49 = vsel %vm10212_vm3, %v4286_v63, %v4282_v5  ;;  %v4248_v51 = vadd.f32 %v6883_v52, %v4247_v21  ;;  %v4382_v61 = vmul.f32 %v6887_v34, %v4381_v43  ;;  %vm4386_vm3 = vmor %vm4384_vm9, %vm4385_vm15  ;;  %v4396_v11 = vsub.f32 1.0, %v4395_v53  ;;  %v6893_v56 = vpop.eup %6892 }
 0x50a   :  { %5102 = vst [vmem:[%s10640_s10 + $0x270] sm:$0xff] %v4287_v49  ;;  %v4293_v18 = vadd.f32 %v6885_v47, %v4292_v27  ;;  %6894 = vrcp.f32 %v10242_v16  ;;  %v4405_v44 = vand.u32 2147483648, %v10219_v32  ;;  %v4373_v6 = vand.u32 2147483647, %v10229_v28 }
 0x50b   :  { %v4252_v25 = vsel %vm4251_vm0, %v6883_v52, %v4248_v51  ;;  %v4383_v24 = vadd.f32 %v6887_v34, %v4382_v61  ;;  %v4397_v40 = vmul.f32 %v6889_v59, %v4396_v11  ;;  %vm4400_vm4 = vweird.f32 %v6889_v59  ;;  %v2582_v50 = vpop.f32.mrf.mxu2 }
 0x50c   :  { %v4257_v57 = vsel %vm10223_vm8, %v4256_v29, %v4252_v25  ;;  %v4297_v8 = vsel %vm4296_vm2, %v6885_v47, %v4293_v18  ;;  %v4365_v37 = vmul.f32 %v6893_v56, %v10229_v28  ;;  %vm4399_vm5 = vweird.f32 %v10219_v32 }
 0x50d   :  { %5100 = vst [vmem:[%s10640_s10 + $0x260] sm:$0xff] %v4257_v57  ;;  %v4302_v22 = vsel %vm10232_vm10, %v4301_v26, %v4297_v8  ;;  %v4387_v14 = vsel %vm4386_vm3, %v6887_v34, %v4383_v24  ;;  %vm10293_vm6 = vcmp.eq.f32.partialorder %v4403_v31, 8.507059e+37  ;;  %v4375_v63 = vand.u32 2147483648, %v10229_v28  ;;  %vm4401_vm7 = vmor %vm4399_vm5, %vm4400_vm4  ;;  %v2486_v31 = vpop.f32.mrf.mxu0 }
 0x50e   :  { %5103 = vst [vmem:[%s10640_s10 + $0x278] sm:$0xff] %v4302_v22  ;;  %v4392_v0 = vsel %vm10261_vm1, %v4391_v41, %v4387_v14  ;;  %v10298_v54 = vadd.f32 1.0, %v6891_v10  ;;  %v4398_v4 = vadd.f32 %v6889_v59, %v4397_v40  ;;  %v4366_v33 = vsub.f32 1.0, %v4365_v37  ;;  %v2437_v42 = vpop.f32.mrf.mxu3 }
 0x50f   :  { %5109 = vst [vmem:[%s10640_s10 + $0x2a8] sm:$0xff] %v4392_v0  ;;  %v6151_v60 = vmul.f32 -1.442695, %v10196_v13  ;;  %v6149_v52 = vmul.f32 -1.442695, %v10199_v1  ;;  %v4406_v29 = vor.u32 1.1754944e-38, %v4405_v44  ;;  %vm4369_vm8 = vweird.f32 %v10229_v28  ;;  %v2533_v13 = vpop.f32.mrf.mxu1 }
 0x510   :  { %vm10303_vm9 = vcmp.eq.f32.partialorder %v4373_v6, 8.507059e+37  ;;  %6896 = vrcp.f32 %v10298_v54  ;;  %v6895_v47 = vpop.eup %6894  ;;  %v4402_v38 = vsel %vm4401_vm7, %v6889_v59, %v4398_v4  ;;  %v4367_v35 = vmul.f32 %v6893_v56, %v4366_v33 }
 0x511   :  { %vm4370_vm10 = vweird.f32 %v6893_v56  ;;  %v4418_v39 = vand.u32 2147483647, %v10242_v16  ;;  %v4407_v1 = vsel %vm10293_vm6, %v4406_v29, %v4402_v38  ;;  %v4376_v34 = vor.u32 1.1754944e-38, %v4375_v63 }
 0x512   :  { %v4410_v46 = vmul.f32 %v6895_v47, %v10242_v16  ;;  %6898 = vpow2.f32 %v6151_v60  ;;  %5110 = vst [vmem:[%s10640_s10 + $0x2b0] sm:$0xff] %v4407_v1  ;;  %v4368_v23 = vadd.f32 %v6893_v56, %v4367_v35  ;;  %vm4414_vm11 = vweird.f32 %v10242_v16  ;;  %vm4371_vm12 = vmor %vm4369_vm8, %vm4370_vm10 }
 0x513   :  { %v4420_v20 = vand.u32 2147483648, %v10242_v16  ;;  %6900 = vpow2.f32 %v6149_v52  ;;  %v2580_v2 = vadd.f32 %v2579_v30, %v9453_v58  ;;  %v2485_v9 = vadd.f32 %v2484_v7, %v9358_v19 }
 0x514   :  { %v4411_v12 = vsub.f32 1.0, %v4410_v46  ;;  %v2534_v62 = vadd.f32 %v2533_v13, %v9445_v3  ;;  %v4372_v15 = vsel %vm4371_vm12, %v6893_v56, %v4368_v23  ;;  %vm4415_vm13 = vweird.f32 %v6895_v47 }
 0x515   :  { %vm10322_vm14 = vcmp.eq.f32.partialorder %v4418_v39, 8.507059e+37  ;;  %v2436_v21 = vadd.f32 %v2435_v17, %v9450_v55  ;;  %v4377_v28 = vsel %vm10303_vm9, %v4376_v34, %v4372_v15  ;;  %v6152_v5 = vmul.f32 -1.442695, %v2580_v2  ;;  %vm4416_vm15 = vmor %vm4414_vm11, %vm4415_vm13 }
 0x516   :  { %v6897_v43 = vpop.eup %6896  ;;  %v4412_v45 = vmul.f32 %v6895_v47, %v4411_v12  ;;  %v6158_v27 = vmul.f32 -1.442695, %v2485_v9  ;;  %5108 = vst [vmem:[%s10640_s10 + $0x2a0] sm:$0xff] %v4377_v28  ;;  %v4421_v59 = vor.u32 1.1754944e-38, %v4420_v20  ;;  %v6159_v51 = vmul.f32 -1.442695, %v2534_v62 }
 0x517   :  { %v4500_v49 = vmul.f32 %v6897_v43, %v10298_v54  ;;  %v2583_v61 = vadd.f32 %v2582_v50, %v9453_v58  ;;  %v4508_v48 = vand.u32 2147483647, %v10298_v54  ;;  %v4510_v53 = vand.u32 2147483648, %v10298_v54  ;;  %v2535_v16 = vpop.f32.mrf.mxu1 }
 0x518   :  { %v6899_v18 = vpop.eup %6898  ;;  %v4413_v26 = vadd.f32 %v6895_v47, %v4412_v45  ;;  %6902 = vpow2.f32 %v6152_v5  ;;  %v6157_v41 = vmul.f32 -1.442695, %v2436_v21  ;;  %vm4505_vm0 = vweird.f32 %v6897_v43 }
 0x519   :  { %v6901_v10 = vpop.eup %6900  ;;  %v4501_v25 = vsub.f32 1.0, %v4500_v49  ;;  %v10339_v24 = vadd.f32 1.0, %v6899_v18  ;;  %6904 = vpow2.f32 %v6158_v27  ;;  %v6160_v56 = vmul.f32 -1.442695, %v2583_v61 }
 0x51a   :  { %v4417_v30 = vsel %vm4416_vm15, %v6895_v47, %v4413_v26  ;;  %v10341_v57 = vadd.f32 1.0, %v6901_v10  ;;  %6906 = vpow2.f32 %v6159_v51  ;;  %v2487_v22 = vadd.f32 %v2486_v31, %v9358_v19 }
 0x51b   :  { %v4422_v8 = vsel %vm10322_vm14, %v4421_v59, %v4417_v30  ;;  %v4502_v11 = vmul.f32 %v6897_v43, %v4501_v25  ;;  %6908 = vrcp.f32 %v10339_v24  ;;  %vm4504_vm1 = vweird.f32 %v10298_v54 }
 0x51c   :  { %5111 = vst [vmem:[%s10640_s10 + $0x2b8] sm:$0xff] %v4422_v8  ;;  %6910 = vrcp.f32 %v10341_v57  ;;  %vm4509_vm2 = vcmp.eq.f32.partialorder %v4508_v48, 8.507059e+37  ;;  %vm4506_vm3 = vmor %vm4504_vm1, %vm4505_vm0  ;;  %v4511_v6 = vor.u32 1.1754944e-38, %v4510_v53  ;;  %v4523_v0 = vand.u32 2147483647, %v10339_v24 }
 0x51d   :  { %v4503_v14 = vadd.f32 %v6897_v43, %v4502_v11  ;;  %6912 = vpow2.f32 %v6157_v41  ;;  %v4525_v40 = vand.u32 2147483648, %v10339_v24  ;;  %v2536_v37 = vadd.f32 %v2535_v16, %v9445_v3 }
 0x51e   :  { %v6903_v44 = vpop.eup %6902  ;;  %v4493_v33 = vand.u32 2147483647, %v10341_v57  ;;  %6914 = vpow2.f32 %v6160_v56  ;;  %v4495_v7 = vand.u32 2147483648, %v10341_v57  ;;  %v6166_v32 = vmul.f32 -1.442695, %v2487_v22 }
 0x51f   :  { %v6905_v63 = vpop.eup %6904  ;;  %v4507_v4 = vsel %vm4506_vm3, %v6897_v43, %v4503_v14  ;;  %v10357_v60 = vadd.f32 1.0, %v6903_v44  ;;  %vm4519_vm4 = vweird.f32 %v10339_v24  ;;  %vm4489_vm5 = vweird.f32 %v10341_v57 }
 0x520   :  { %v6907_v54 = vpop.eup %6906  ;;  %v4512_v52 = vsel %vm4509_vm2, %v4511_v6, %v4507_v4  ;;  %v10360_v29 = vadd.f32 1.0, %v6905_v63  ;;  %v2438_v38 = vadd.f32 %v2437_v42, %v9450_v55  ;;  %vm10370_vm6 = vcmp.eq.f32.partialorder %v4523_v0, 8.507059e+37 }
 0x521   :  { %v6909_v47 = vpop.eup %6908  ;;  %5117 = vst [vmem:[%s10640_s10 + $0x2e8] sm:$0xff] %v4512_v52  ;;  %6916 = vrcp.f32 %v10357_v60  ;;  %v4526_v1 = vor.u32 1.1754944e-38, %v4525_v40  ;;  %vm10376_vm7 = vcmp.eq.f32.partialorder %v4493_v33, 8.507059e+37  ;;  %v4540_v23 = vand.u32 2147483648, %v10357_v60 }
 0x522   :  { %v6911_v35 = vpop.eup %6910  ;;  %v4515_v39 = vmul.f32 %v6909_v47, %v10339_v24  ;;  %6918 = vrcp.f32 %v10360_v29  ;;  %v6167_v20 = vmul.f32 -1.442695, %v2536_v37  ;;  %v4496_v2 = vor.u32 1.1754944e-38, %v4495_v7 }
 0x523   :  { %v6913_v34 = vpop.eup %6912  ;;  %v4485_v46 = vmul.f32 %v6911_v35, %v10341_v57  ;;  %v4538_v9 = vand.u32 2147483647, %v10357_v60  ;;  %v10382_v62 = vadd.f32 1.0, %v6907_v54  ;;  %6920 = vpow2.f32 %v6166_v32  ;;  %v2584_v54 = vpop.f32.mrf.mxu2 }
 0x524   :  { %v4516_v12 = vsub.f32 1.0, %v4515_v39  ;;  %v6915_v50 = vpop.eup %6914  ;;  %v10384_v36 = vadd.f32 1.0, %v6913_v34  ;;  %v10386_v21 = vmul.f32 -1.442695, %v2438_v38  ;;  %vm4520_vm8 = vweird.f32 %v6909_v47 }
 0x525   :  { %v4486_v15 = vsub.f32 1.0, %v4485_v46  ;;  %vm4534_vm9 = vweird.f32 %v10357_v60  ;;  %6922 = vrcp.f32 %v10382_v62  ;;  %vm4490_vm10 = vweird.f32 %v6911_v35  ;;  %vm4521_vm13 = vmor %vm4519_vm4, %vm4520_vm8 }
 0x526   :  { %v4517_v43 = vmul.f32 %v6909_v47, %v4516_v12  ;;  %v4541_v5 = vor.u32 1.1754944e-38, %v4540_v23  ;;  %vm4624_vm11 = vweird.f32 %v10360_v29  ;;  %vm10392_vm12 = vcmp.eq.f32.partialorder %v4538_v9, 8.507059e+37  ;;  %vm4491_vm14 = vmor %vm4489_vm5, %vm4490_vm10  ;;  %v2489_v23 = vpop.f32.mrf.mxu0 }
 0x527   :  { %v6917_v28 = vpop.eup %6916  ;;  %v4487_v45 = vmul.f32 %v6911_v35, %v4486_v15  ;;  %6924 = vrcp.f32 %v10384_v36  ;;  %v10397_v61 = vadd.f32 1.0, %v6915_v50  ;;  %v4628_v48 = vand.u32 2147483647, %v10360_v29 }
 0x528   :  { %v6919_v27 = vpop.eup %6918  ;;  %v4518_v59 = vadd.f32 %v6909_v47, %v4517_v43  ;;  %v4530_v49 = vmul.f32 %v6917_v28, %v10357_v60  ;;  %v4630_v53 = vand.u32 2147483648, %v10360_v29  ;;  %v4643_v41 = vand.u32 2147483647, %v10382_v62 }
 0x529   :  { %v4488_v18 = vadd.f32 %v6911_v35, %v4487_v45  ;;  %v4620_v26 = vmul.f32 %v6919_v27, %v10360_v29  ;;  %6926 = vpow2.f32 %v6167_v20  ;;  %v6921_v31 = vpop.eup %6920  ;;  %v4645_v11 = vand.u32 2147483648, %v10382_v62 }
 0x52a   :  { %v4522_v10 = vsel %vm4521_vm13, %v6909_v47, %v4518_v59  ;;  %v4531_v25 = vsub.f32 1.0, %v4530_v49  ;;  %vm4535_vm15 = vweird.f32 %v6917_v28  ;;  %6928 = vrcp.f32 %v10397_v61 }
 0x52b   :  { %v4527_v24 = vsel %vm10370_vm6, %v4526_v1, %v4522_v10  ;;  %v4492_v30 = vsel %vm4491_vm14, %v6911_v35, %v4488_v18  ;;  %v4621_v8 = vsub.f32 1.0, %v4620_v26  ;;  %v6923_v56 = vpop.eup %6922  ;;  %vm4625_vm0 = vweird.f32 %v6919_v27  ;;  %vm4536_vm4 = vmor %vm4534_vm9, %vm4535_vm15  ;;  %v2440_v18 = vpop.f32.mrf.mxu3 }
 0x52c   :  { %5118 = vst [vmem:[%s10640_s10 + $0x2f0] sm:$0xff] %v4527_v24  ;;  %v4497_v57 = vsel %vm10376_vm7, %v4496_v2, %v4492_v30  ;;  %v4532_v16 = vmul.f32 %v6917_v28, %v4531_v25  ;;  %vm10420_vm1 = vcmp.eq.f32.partialorder %v4628_v48, 8.507059e+37  ;;  %v4635_v44 = vmul.f32 %v6923_v56, %v10382_v62  ;;  %vm4626_vm5 = vmor %vm4624_vm11, %vm4625_vm0  ;;  %v2587_v25 = vpop.f32.mrf.mxu2 }
 0x52d   :  { %5116 = vst [vmem:[%s10640_s10 + $0x2e0] sm:$0xff] %v4497_v57  ;;  %v4622_v22 = vmul.f32 %v6919_v27, %v4621_v8  ;;  %v6925_v6 = vpop.eup %6924  ;;  %v4631_v40 = vor.u32 1.1754944e-38, %v4630_v53  ;;  %vm4639_vm2 = vweird.f32 %v10382_v62  ;;  %vm10426_vm3 = vcmp.eq.f32.partialorder %v4643_v41, 8.507059e+37 }
 0x52e   :  { %v4533_v0 = vadd.f32 %v6917_v28, %v4532_v16  ;;  %v4636_v63 = vsub.f32 1.0, %v4635_v44  ;;  %v4646_v4 = vor.u32 1.1754944e-38, %v4645_v11  ;;  %v4605_v33 = vmul.f32 %v6925_v6, %v10384_v36 }
 0x52f   :  { %v4623_v42 = vadd.f32 %v6919_v27, %v4622_v22  ;;  %v6927_v52 = vpop.eup %6926  ;;  %vm4640_vm6 = vweird.f32 %v6923_v56  ;;  %vm4609_vm7 = vweird.f32 %v10384_v36  ;;  %v10437_v32 = vadd.f32 1.0, %v6921_v31 }
 0x530   :  { %v4537_v7 = vsel %vm4536_vm4, %v6917_v28, %v4533_v0  ;;  %v4637_v38 = vmul.f32 %v6923_v56, %v4636_v63  ;;  %v4606_v35 = vsub.f32 1.0, %v4605_v33  ;;  %v6929_v39 = vpop.eup %6928  ;;  %v4613_v13 = vand.u32 2147483647, %v10384_v36  ;;  %vm4641_vm9 = vmor %vm4639_vm2, %vm4640_vm6  ;;  %v2491_v0 = vpop.f32.mrf.mxu0 }
 0x531   :  { %v4542_v60 = vsel %vm10392_vm12, %v4541_v5, %v4537_v7  ;;  %v4627_v47 = vsel %vm4626_vm5, %v6919_v27, %v4623_v42  ;;  %v4615_v1 = vand.u32 2147483648, %v10384_v36  ;;  %6930 = vrcp.f32 %v10437_v32  ;;  %v2538_v5 = vpop.f32.mrf.mxu1 }
 0x532   :  { %5119 = vst [vmem:[%s10640_s10 + $0x2f8] sm:$0xff] %v4542_v60  ;;  %v4632_v29 = vsel %vm10420_vm1, %v4631_v40, %v4627_v47  ;;  %v4638_v34 = vadd.f32 %v6923_v56, %v4637_v38  ;;  %v4607_v46 = vmul.f32 %v6925_v6, %v4606_v35  ;;  %vm4610_vm8 = vweird.f32 %v6925_v6 }
 0x533   :  { %5125 = vst [vmem:[%s10640_s10 + $0x328] sm:$0xff] %v4632_v29  ;;  %v4650_v17 = vmul.f32 %v6929_v39, %v10397_v61  ;;  %v4658_v20 = vand.u32 2147483647, %v10397_v61  ;;  %v4660_v12 = vand.u32 2147483648, %v10397_v61  ;;  %v10458_v2 = vadd.f32 1.0, %v6927_v52  ;;  %vm4611_vm10 = vmor %vm4609_vm7, %vm4610_vm8 }
 0x534   :  { %6932 = vpow2.f32 %v10386_v21  ;;  %v4642_v9 = vsel %vm4641_vm9, %v6923_v56, %v4638_v34  ;;  %v4608_v50 = vadd.f32 %v6925_v6, %v4607_v46  ;;  %v2585_v43 = vadd.f32 %v2584_v54, %v9453_v58 }
 0x535   :  { %v4651_v15 = vsub.f32 1.0, %v4650_v17  ;;  %v4647_v28 = vsel %vm10426_vm3, %v4646_v4, %v4642_v9  ;;  %vm4614_vm11 = vcmp.eq.f32.partialorder %v4613_v13, 8.507059e+37  ;;  %v4616_v62 = vor.u32 1.1754944e-38, %v4615_v1 }
 0x536   :  { %6934 = vrcp.f32 %v10458_v2  ;;  %5126 = vst [vmem:[%s10640_s10 + $0x330] sm:$0xff] %v4647_v28  ;;  %v4612_v21 = vsel %vm4611_vm10, %v6925_v6, %v4608_v50  ;;  %vm4654_vm12 = vweird.f32 %v10397_v61  ;;  %vm4655_vm13 = vweird.f32 %v6929_v39 }
 0x537   :  { %v4652_v45 = vmul.f32 %v6929_v39, %v4651_v15  ;;  %v6931_v27 = vpop.eup %6930  ;;  %v4617_v59 = vsel %vm4614_vm11, %v4616_v62, %v4612_v21  ;;  %vm10471_vm14 = vcmp.eq.f32.partialorder %v4658_v20, 8.507059e+37  ;;  %v6168_v36 = vmul.f32 -1.442695, %v2585_v43  ;;  %vm4656_vm15 = vmor %vm4654_vm12, %vm4655_vm13 }
 0x538   :  { %v2490_v51 = vadd.f32 %v2489_v23, %v9358_v19  ;;  %5124 = vst [vmem:[%s10640_s10 + $0x320] sm:$0xff] %v4617_v59  ;;  %v4661_v48 = vor.u32 1.1754944e-38, %v4660_v12  ;;  %v4740_v53 = vmul.f32 %v6931_v27, %v10437_v32  ;;  %v4748_v10 = vand.u32 2147483647, %v10437_v32 }
 0x539   :  { %v4653_v26 = vadd.f32 %v6929_v39, %v4652_v45  ;;  %v4750_v31 = vand.u32 2147483648, %v10437_v32  ;;  %6936 = vpow2.f32 %v6168_v36  ;;  %v2539_v30 = vadd.f32 %v2538_v5, %v9445_v3  ;;  %v2540_v13 = vpop.f32.mrf.mxu1 }
 0x53a   :  { %v6933_v41 = vpop.eup %6932  ;;  %v6174_v24 = vmul.f32 -1.442695, %v2490_v51  ;;  %v4741_v11 = vsub.f32 1.0, %v4740_v53  ;;  %v2441_v57 = vadd.f32 %v2440_v18, %v9450_v55  ;;  %v2588_v61 = vadd.f32 %v2587_v25, %v9453_v58 }
 0x53b   :  { %v4657_v8 = vsel %vm4656_vm15, %v6929_v39, %v4653_v26  ;;  %v10486_v56 = vadd.f32 1.0, %v6933_v41  ;;  %v6175_v14 = vmul.f32 -1.442695, %v2539_v30  ;;  %vm4745_vm0 = vweird.f32 %v6931_v27 }
 0x53c   :  { %v6935_v16 = vpop.eup %6934  ;;  %v4662_v22 = vsel %vm10471_vm14, %v4661_v48, %v4657_v8  ;;  %6938 = vpow2.f32 %v6174_v24  ;;  %v4742_v44 = vmul.f32 %v6931_v27, %v4741_v11  ;;  %vm4744_vm1 = vweird.f32 %v10437_v32 }
 0x53d   :  { %5127 = vst [vmem:[%s10640_s10 + $0x338] sm:$0xff] %v4662_v22  ;;  %v4755_v6 = vmul.f32 %v6935_v16, %v10458_v2  ;;  %6940 = vrcp.f32 %v10486_v56  ;;  %vm10498_vm2 = vcmp.eq.f32.partialorder %v4748_v10, 8.507059e+37  ;;  %v4763_v37 = vand.u32 2147483647, %v10458_v2  ;;  %vm4746_vm3 = vmor %vm4744_vm1, %vm4745_vm0 }
 0x53e   :  { %6942 = vpow2.f32 %v6175_v14  ;;  %v4743_v42 = vadd.f32 %v6931_v27, %v4742_v44  ;;  %v6173_v4 = vmul.f32 -1.442695, %v2441_v57  ;;  %v6176_v33 = vmul.f32 -1.442695, %v2588_v61 }
 0x53f   :  { %v4756_v63 = vsub.f32 1.0, %v4755_v6  ;;  %v6937_v54 = vpop.eup %6936  ;;  %v4751_v52 = vor.u32 1.1754944e-38, %v4750_v31  ;;  %vm4760_vm4 = vweird.f32 %v6935_v16  ;;  %v4765_v7 = vand.u32 2147483648, %v10458_v2 }
 0x540   :  { %v2492_v60 = vadd.f32 %v2491_v0, %v9358_v19  ;;  %v4747_v32 = vsel %vm4746_vm3, %v6931_v27, %v4743_v42  ;;  %v10505_v38 = vadd.f32 1.0, %v6937_v54  ;;  %6944 = vpow2.f32 %v6173_v4 }
 0x541   :  { %v4757_v47 = vmul.f32 %v6935_v16, %v4756_v63  ;;  %v4752_v39 = vsel %vm10498_vm2, %v4751_v52, %v4747_v32  ;;  %vm4759_vm5 = vweird.f32 %v10458_v2  ;;  %6946 = vpow2.f32 %v6176_v33 }
 0x542   :  { %v6939_v35 = vpop.eup %6938  ;;  %v6182_v29 = vmul.f32 -1.442695, %v2492_v60  ;;  %5133 = vst [vmem:[%s10640_s10 + $0x368] sm:$0xff] %v4752_v39  ;;  %vm4764_vm6 = vcmp.eq.f32.partialorder %v4763_v37, 8.507059e+37  ;;  %v4733_v34 = vand.u32 2147483647, %v10486_v56  ;;  %6948 = vrcp.f32 %v10505_v38  ;;  %vm4761_vm7 = vmor %vm4759_vm5, %vm4760_vm4  ;;  %v2442_v37 = vpop.f32.mrf.mxu3 }
 0x543   :  { %v6941_v1 = vpop.eup %6940  ;;  %v4758_v19 = vadd.f32 %v6935_v16, %v4757_v47  ;;  %v4766_v17 = vor.u32 1.1754944e-38, %v4765_v7  ;;  %v4735_v20 = vand.u32 2147483648, %v10486_v56  ;;  %v10518_v12 = vadd.f32 1.0, %v6939_v35 }
 0x544   :  { %v6943_v46 = vpop.eup %6942  ;;  %v4725_v23 = vmul.f32 %v6941_v1, %v10486_v56  ;;  %6950 = vpow2.f32 %v6182_v29  ;;  %v2541_v50 = vadd.f32 %v2540_v13, %v9445_v3  ;;  %v4778_v28 = vand.u32 2147483647, %v10505_v38 }
 0x545   :  { %v4762_v2 = vsel %vm4761_vm7, %v6935_v16, %v4758_v19  ;;  %v10520_v9 = vadd.f32 1.0, %v6943_v46  ;;  %6952 = vrcp.f32 %v10518_v12  ;;  %vm4729_vm8 = vweird.f32 %v10486_v56 }
 0x546   :  { %v4767_v15 = vsel %vm4764_vm6, %v4766_v17, %v4762_v2  ;;  %v4726_v43 = vsub.f32 1.0, %v4725_v23  ;;  %v6945_v62 = vpop.eup %6944  ;;  %vm10529_vm9 = vcmp.eq.f32.partialorder %v4733_v34, 8.507059e+37  ;;  %vm4730_vm10 = vweird.f32 %v6941_v1  ;;  %v2589_v17 = vpop.f32.mrf.mxu2 }
 0x547   :  { %5134 = vst [vmem:[%s10640_s10 + $0x370] sm:$0xff] %v4767_v15  ;;  %6954 = vrcp.f32 %v10520_v9  ;;  %v6947_v3 = vpop.eup %6946  ;;  %v4736_v5 = vor.u32 1.1754944e-38, %v4735_v20  ;;  %v4780_v27 = vand.u32 2147483648, %v10505_v38  ;;  %vm4774_vm11 = vweird.f32 %v10505_v38  ;;  %vm4731_vm13 = vmor %vm4729_vm8, %vm4730_vm10 }
 0x548   :  { %v4727_v45 = vmul.f32 %v6941_v1, %v4726_v43  ;;  %v6949_v59 = vpop.eup %6948  ;;  %v10536_v49 = vadd.f32 1.0, %v6945_v62  ;;  %v10538_v36 = vadd.f32 1.0, %v6947_v3  ;;  %v6183_v51 = vmul.f32 -1.442695, %v2541_v50 }
 0x549   :  { %v4770_v26 = vmul.f32 %v6949_v59, %v10505_v38  ;;  %vm10541_vm12 = vcmp.eq.f32.partialorder %v4778_v28, 8.507059e+37  ;;  %v4868_v53 = vand.u32 2147483647, %v10518_v12  ;;  %v4870_v25 = vand.u32 2147483648, %v10518_v12 }
 0x54a   :  { %v4728_v18 = vadd.f32 %v6941_v1, %v4727_v45  ;;  %v6951_v10 = vpop.eup %6950  ;;  %v4883_v41 = vand.u32 2147483647, %v10520_v9  ;;  %v4885_v31 = vand.u32 2147483648, %v10520_v9  ;;  %6956 = vrcp.f32 %v10536_v49 }
 0x54b   :  { %v6953_v24 = vpop.eup %6952  ;;  %v4771_v8 = vsub.f32 1.0, %v4770_v26  ;;  %v4781_v11 = vor.u32 1.1754944e-38, %v4780_v27  ;;  %6958 = vrcp.f32 %v10538_v36  ;;  %vm4864_vm14 = vweird.f32 %v10518_v12 }
 0x54c   :  { %v4732_v30 = vsel %vm4731_vm13, %v6941_v1, %v4728_v18  ;;  %v4860_v56 = vmul.f32 %v6953_v24, %v10518_v12  ;;  %vm4879_vm15 = vweird.f32 %v10520_v9  ;;  %vm4775_vm0 = vweird.f32 %v6949_v59 }
 0x54d   :  { %v6955_v57 = vpop.eup %6954  ;;  %v4737_v16 = vsel %vm10529_vm9, %v4736_v5, %v4732_v30  ;;  %v4772_v22 = vmul.f32 %v6949_v59, %v4771_v8  ;;  %vm10561_vm1 = vcmp.eq.f32.partialorder %v4868_v53, 8.507059e+37  ;;  %v4871_v6 = vor.u32 1.1754944e-38, %v4870_v25  ;;  %vm4776_vm3 = vmor %vm4774_vm11, %vm4775_vm0 }
 0x54e   :  { %5132 = vst [vmem:[%s10640_s10 + $0x360] sm:$0xff] %v4737_v16  ;;  %v4875_v61 = vmul.f32 %v6955_v57, %v10520_v9  ;;  %v4861_v44 = vsub.f32 1.0, %v4860_v56  ;;  %vm10566_vm2 = vcmp.eq.f32.partialorder %v4883_v41, 8.507059e+37  ;;  %v4886_v40 = vor.u32 1.1754944e-38, %v4885_v31 }
 0x54f   :  { %v4773_v42 = vadd.f32 %v6949_v59, %v4772_v22  ;;  %v10570_v4 = vadd.f32 1.0, %v6951_v10  ;;  %6960 = vpow2.f32 %v6183_v51  ;;  %vm4865_vm4 = vweird.f32 %v6953_v24 }
 0x550   :  { %v4876_v63 = vsub.f32 1.0, %v4875_v61  ;;  %v6957_v33 = vpop.eup %6956  ;;  %v4862_v54 = vmul.f32 %v6953_v24, %v4861_v44  ;;  %vm4880_vm5 = vweird.f32 %v6955_v57  ;;  %vm4849_vm6 = vweird.f32 %v10536_v49  ;;  %vm4866_vm7 = vmor %vm4864_vm14, %vm4865_vm4 }
 0x551   :  { %v6959_v52 = vpop.eup %6958  ;;  %v4777_v7 = vsel %vm4776_vm3, %v6949_v59, %v4773_v42  ;;  %v4845_v32 = vmul.f32 %v6957_v33, %v10536_v49  ;;  %v2443_v47 = vadd.f32 %v2442_v37, %v9450_v55  ;;  %v4853_v29 = vand.u32 2147483647, %v10536_v49  ;;  %vm4881_vm8 = vmor %vm4879_vm15, %vm4880_vm5 }
 0x552   :  { %v4877_v60 = vmul.f32 %v6955_v57, %v4876_v63  ;;  %v4782_v35 = vsel %vm10541_vm12, %v4781_v11, %v4777_v7  ;;  %v4863_v39 = vadd.f32 %v6953_v24, %v4862_v54  ;;  %v4890_v38 = vmul.f32 %v6959_v52, %v10538_v36 }
 0x553   :  { %5135 = vst [vmem:[%s10640_s10 + $0x378] sm:$0xff] %v4782_v35  ;;  %v4846_v1 = vsub.f32 1.0, %v4845_v32  ;;  %v4855_v19 = vand.u32 2147483648, %v10536_v49  ;;  %6962 = vrcp.f32 %v10570_v4  ;;  %vm4850_vm9 = vweird.f32 %v6957_v33 }
 0x554   :  { %v4878_v13 = vadd.f32 %v6955_v57, %v4877_v60  ;;  %v4867_v55 = vsel %vm4866_vm7, %v6953_v24, %v4863_v39  ;;  %v4891_v34 = vsub.f32 1.0, %v4890_v38  ;;  %v4900_v46 = vand.u32 2147483648, %v10538_v36  ;;  %vm4851_vm11 = vmor %vm4849_vm6, %vm4850_vm9 }
 0x555   :  { %v6961_v23 = vpop.eup %6960  ;;  %v4872_v20 = vsel %vm10561_vm1, %v4871_v6, %v4867_v55  ;;  %v4847_v2 = vmul.f32 %v6957_v33, %v4846_v1  ;;  %v6181_v50 = vmul.f32 -1.442695, %v2443_v47  ;;  %vm4895_vm10 = vweird.f32 %v6959_v52 }
 0x556   :  { %v4882_v12 = vsel %vm4881_vm8, %v6955_v57, %v4878_v13  ;;  %5141 = vst [vmem:[%s10640_s10 + $0x3a8] sm:$0xff] %v4872_v20  ;;  %v4892_v15 = vmul.f32 %v6959_v52, %v4891_v34  ;;  %v4898_v43 = vand.u32 2147483647, %v10538_v36  ;;  %v3102_v62 = vadd.f32 1.0, %v6961_v23 }
 0x557   :  { %v4887_v9 = vsel %vm10566_vm2, %v4886_v40, %v4882_v12  ;;  %v4848_v28 = vadd.f32 %v6957_v33, %v4847_v2  ;;  %6964 = vpow2.f32 %v6181_v50  ;;  %v2590_v21 = vadd.f32 %v2589_v17, %v9453_v58 }
 0x558   :  { %5142 = vst [vmem:[%s10640_s10 + $0x3b0] sm:$0xff] %v4887_v9  ;;  %v4856_v3 = vor.u32 1.1754944e-38, %v4855_v19  ;;  %v4893_v45 = vadd.f32 %v6959_v52, %v4892_v15  ;;  %vm4894_vm12 = vweird.f32 %v10538_v36  ;;  %vm4854_vm13 = vcmp.eq.f32.partialorder %v4853_v29, 8.507059e+37 }
 0x559   :  { %v6963_v5 = vpop.eup %6962  ;;  %v4852_v27 = vsel %vm4851_vm11, %v6957_v33, %v4848_v28  ;;  %vm4896_vm14 = vmor %vm4894_vm12, %vm4895_vm10  ;;  %v4901_v59 = vor.u32 1.1754944e-38, %v4900_v46  ;;  %6966 = vrcp.f32 %v3102_v62  ;;  %vm4899_vm15 = vcmp.eq.f32.partialorder %v4898_v43, 8.507059e+37 }
 0x55a   :  { %v4857_v51 = vsel %vm4854_vm13, %v4856_v3, %v4852_v27  ;;  %v4897_v18 = vsel %vm4896_vm14, %v6959_v52, %v4893_v45  ;;  %v4980_v26 = vmul.f32 %v6963_v5, %v10570_v4  ;;  %v6184_v49 = vmul.f32 -1.442695, %v2590_v21 }
 0x55b   :  { %5140 = vst [vmem:[%s10640_s10 + $0x3a0] sm:$0xff] %v4857_v51  ;;  %v4902_v58 = vsel %vm4899_vm15, %v4901_v59, %v4897_v18  ;;  %v4990_v53 = vand.u32 2147483648, %v10570_v4  ;;  %vm4985_vm0 = vweird.f32 %v6963_v5  ;;  %v4988_v25 = vand.u32 2147483647, %v10570_v4 }
 0x55c   :  { %5143 = vst [vmem:[%s10640_s10 + $0x3b8] sm:$0xff] %v4902_v58  ;;  %v4981_v36 = vsub.f32 1.0, %v4980_v26  ;;  %6968 = vpow2.f32 %v6184_v49  ;;  %vm4984_vm1 = vweird.f32 %v10570_v4  ;;  %v5005_v22 = vand.u32 2147483648, %v3102_v62 }
 0x55d   :  { %v6965_v48 = vpop.eup %6964  ;;  %vm4986_vm2 = vmor %vm4984_vm1, %vm4985_vm0  ;;  %v4991_v8 = vor.u32 1.1754944e-38, %v4990_v53  ;;  %vm4989_vm3 = vcmp.eq.f32.partialorder %v4988_v25, 8.507059e+37  ;;  %v5003_v61 = vand.u32 2147483647, %v3102_v62  ;;  %vm4999_vm5 = vweird.f32 %v3102_v62 }
 0x55e   :  { %v4982_v10 = vmul.f32 %v6963_v5, %v4981_v36  ;;  %v3100_v41 = vadd.f32 1.0, %v6965_v48  ;;  %v5006_v40 = vor.u32 1.1754944e-38, %v5005_v22 }
 0x55f   :  { %v6967_v31 = vpop.eup %6966  ;;  %vm5004_vm7 = vcmp.eq.f32.partialorder %v5003_v61, 8.507059e+37 }
 0x560   :  { %v4983_v24 = vadd.f32 %v6963_v5, %v4982_v10  ;;  %v4995_v30 = vmul.f32 %v6967_v31, %v3102_v62  ;;  %6970 = vrcp.f32 %v3100_v41  ;;  %vm5000_vm4 = vweird.f32 %v6967_v31 }
 0x561   :  { %vm5001_vm6 = vmor %vm4999_vm5, %vm5000_vm4  ;;  %v4975_v33 = vand.u32 2147483648, %v3100_v41  ;;  %v4973_v52 = vand.u32 2147483647, %v3100_v41  ;;  %vm4969_vm9 = vweird.f32 %v3100_v41 }
 0x562   :  { %v4987_v11 = vsel %vm4986_vm2, %v6963_v5, %v4983_v24  ;;  %v4996_v57 = vsub.f32 1.0, %v4995_v30  ;;  %v6969_v16 = vpop.eup %6968 }
 0x563   :  { %v4992_v56 = vsel %vm4989_vm3, %v4991_v8, %v4987_v11  ;;  %v3103_v44 = vadd.f32 1.0, %v6969_v16  ;;  %v4976_v47 = vor.u32 1.1754944e-38, %v4975_v33  ;;  %vm4974_vm11 = vcmp.eq.f32.partialorder %v4973_v52, 8.507059e+37 }
 0x564   :  { %5149 = vst [vmem:[%s10640_s10 + $0x3e8] sm:$0xff] %v4992_v56  ;;  %v4997_v14 = vmul.f32 %v6967_v31, %v4996_v57 }
 0x565   :  { %6972 = vrcp.f32 %v3103_v44  ;;  %v5020_v38 = vand.u32 2147483648, %v3103_v44  ;;  %v5018_v1 = vand.u32 2147483647, %v3103_v44  ;;  %vm5014_vm13 = vweird.f32 %v3103_v44 }
 0x566   :  { %v6971_v6 = vpop.eup %6970  ;;  %v4998_v0 = vadd.f32 %v6967_v31, %v4997_v14 }
 0x567   :  { %v4965_v37 = vmul.f32 %v6971_v6, %v3100_v41  ;;  %vm4970_vm8 = vweird.f32 %v6971_v6  ;;  %v5021_v55 = vor.u32 1.1754944e-38, %v5020_v38  ;;  %vm5019_vm15 = vcmp.eq.f32.partialorder %v5018_v1, 8.507059e+37 }
 0x568   :  { %v5002_v42 = vsel %vm5001_vm6, %v6967_v31, %v4998_v0  ;;  %vm4971_vm10 = vmor %vm4969_vm9, %vm4970_vm8 }
 0x569   :  { %v5007_v63 = vsel %vm5004_vm7, %v5006_v40, %v5002_v42  ;;  %v4966_v4 = vsub.f32 1.0, %v4965_v37 }
 0x56a   :  { %5150 = vst [vmem:[%s10640_s10 + $0x3f0] sm:$0xff] %v5007_v63 }
 0x56b   :  { %v4967_v54 = vmul.f32 %v6971_v6, %v4966_v4  ;;  %v6973_v7 = vpop.eup %6972 }
 0x56c   :  { %v5010_v32 = vmul.f32 %v6973_v7, %v3103_v44  ;;  %vm5015_vm12 = vweird.f32 %v6973_v7 }
 0x56d   :  { %v4968_v60 = vadd.f32 %v6971_v6, %v4967_v54  ;;  %vm5016_vm14 = vmor %vm5014_vm13, %vm5015_vm12 }
 0x56e   :  { %v5011_v39 = vsub.f32 1.0, %v5010_v32 }
 0x56f   :  { %v4972_v35 = vsel %vm4971_vm10, %v6971_v6, %v4968_v60 }
 0x570   :  { %v4977_v29 = vsel %vm4974_vm11, %v4976_v47, %v4972_v35  ;;  %v5012_v13 = vmul.f32 %v6973_v7, %v5011_v39 }
 0x571   :  { %5148 = vst [vmem:[%s10640_s10 + $0x3e0] sm:$0xff] %v4977_v29 }
 0x572   :  { %v5013_v19 = vadd.f32 %v6973_v7, %v5012_v13 }
 0x574   :  { %v5017_v34 = vsel %vm5016_vm14, %v6973_v7, %v5013_v19 }
 0x575   :  { %v5022_v46 = vsel %vm5019_vm15, %v5021_v55, %v5017_v34 }
 0x576   :  { %5151 = vst [vmem:[%s10640_s10 + $0x3f8] sm:$0xff] %v5022_v46 }
 0x577   :  { %5192 = vsyncpa [#allocation3], 1 }

</bundles_post_ra>
